<compile_context>
chip_gen: v7x
topology: tpu7x:2x2x1
jax: 0.10.0
libtpu: 0.0.40
codegen_flags: <defaults>
</compile_context>

<pallas_src>
import functools
import math

import jax
import jax.numpy as jnp
from jax.experimental import pallas as pl
from jax.experimental.pallas import tpu as pltpu

EPS = 1e-5

PARAM_NAMES = [
    # self-attention (q/k/v/out proj weights then biases)
    "sa_wq", "sa_wk", "sa_wv", "sa_wo", "sa_bq", "sa_bk", "sa_bv", "sa_bo",
    # cross-attention
    "ca_wq", "ca_wk", "ca_wv", "ca_wo", "ca_bq", "ca_bk", "ca_bv", "ca_bo",
    # norms 1..3
    "n1_g", "n1_b", "n2_g", "n2_b", "n3_g", "n3_b",
    # SwiGLU mlp: w1/w2 (E,H), ffn layernorm (H), w3 (H,E)
    "w1", "b1", "w2", "b2", "ln_g", "ln_b", "w3", "b3",
]


# ----------------------------------------------------------------------------------
# Kernel
# ----------------------------------------------------------------------------------
def decoder_kernel(q_ref, k_ref, v_ref, qp_ref, kp_ref,
                   sa_wqk_ref, w6_ref, w12_ref, w3_ref, vec_e_ref, vec_h_ref,
                   o_ref, *, B, L, S, E, num_heads, h_real, h_pad):
    f32 = jnp.float32
    bf16 = jnp.bfloat16
    nh = num_heads
    dh = E // nh

    def mm(x, w):  # bf16 operands, f32 accumulation (MXU native)
        return jnp.dot(x.astype(bf16), w, preferred_element_type=f32)

    def layer_norm(x, g, b):
        mu = jnp.mean(x, axis=-1, keepdims=True)
        var = jnp.mean(jnp.square(x - mu), axis=-1, keepdims=True)
        return (x - mu) * jax.lax.rsqrt(var + EPS) * g + b

    # ---- unpack stacked small vectors ------------------------------------------
    ve = vec_e_ref[...]                      # (16, E)  f32
    vh = vec_h_ref[...]                      # (4, Hpad) f32
    sa_bq, sa_bk, sa_bv, sa_bo = ve[0:1], ve[1:2], ve[2:3], ve[3:4]
    ca_bq, ca_bk, ca_bv, ca_bo = ve[4:5], ve[5:6], ve[6:7], ve[7:8]
    n1_g, n1_b = ve[8:9], ve[9:10]
    n2_g, n2_b = ve[10:11], ve[11:12]
    n3_g, n3_b = ve[12:13], ve[13:14]
    b3 = ve[14:15]
    b1, b2 = vh[0:1], vh[1:2]
    ln_g, ln_b = vh[2:3], vh[3:4]

    sa_wv, sa_wo = w6_ref[0], w6_ref[1]
    ca_wq, ca_wk = w6_ref[2], w6_ref[3]
    ca_wv, ca_wo = w6_ref[4], w6_ref[5]

    q = q_ref[...]                           # (B*L, E)
    k_in = k_ref[...]                        # (B*S, E)
    v_in = v_ref[...]                        # (B*S, E)
    qp = qp_ref[...]
    kp = kp_ref[...]

    def attn_core(Q, K, V, wo, bo, lq, lk):
        """Per-batch per-head softmax attention. Q is pre-scaled (scale folded into
        the Q projection). Head outputs are accumulated through the per-head row
        slice of the output projection (no lane concat)."""
        outs = []
        for b in range(B):                    # static tiny batch loop
            Qb = Q[b * lq:(b + 1) * lq]
            Kb = K[b * lk:(b + 1) * lk]
            Vb = V[b * lk:(b + 1) * lk]
            acc = jnp.zeros((lq, E), f32)
            for h in range(nh):               # static head loop
                qh = Qb[:, h * dh:(h + 1) * dh].astype(bf16)
                kh = Kb[:, h * dh:(h + 1) * dh].astype(bf16)
                vhh = Vb[:, h * dh:(h + 1) * dh].astype(bf16)
                # qh @ kh.T without an explicit transpose
                s = jax.lax.dot_general(qh, kh, (((1,), (1,)), ((), ())),
                                        preferred_element_type=f32)
                s = s - jnp.max(s, axis=-1, keepdims=True)
                p = jnp.exp(s)
                p = p * pl.reciprocal(jnp.sum(p, axis=-1, keepdims=True), approx=True)
                ctx = jnp.dot(p.astype(bf16), vhh, preferred_element_type=f32)
                acc = acc + jnp.dot(ctx.astype(bf16), wo[h * dh:(h + 1) * dh, :],
                                    preferred_element_type=f32)
            outs.append(acc)
        return jnp.concatenate(outs, axis=0) + bo

    # ---- self-attention: key = value = query, key_pos = query_pos ---------------
    xq = q + qp
    qk = mm(xq, sa_wqk_ref[...])             # fused Q|K projection, N = 2E
    Q = qk[:, :E] + sa_bq                    # scale already folded into Wq / bq
    K = qk[:, E:] + sa_bk
    V = mm(q, sa_wv) + sa_bv
    x = q + attn_core(Q, K, V, sa_wo, sa_bo, L, L)

    # ---- query = query + norm1(query) -------------------------------------------
    x = x + layer_norm(x, n1_g, n1_b)

    # ---- cross-attention ---------------------------------------------------------
    Qc = mm(x + qp, ca_wq) + ca_bq           # scale folded into ca_wq / ca_bq
    Kc = mm(k_in + kp, ca_wk) + ca_bk
    Vc = mm(v_in, ca_wv) + ca_bv
    x = x + attn_core(Qc, Kc, Vc, ca_wo, ca_bo, L, S)

    # ---- query = query + SwiGLU(norm2(query)) ------------------------------------
    y = layer_norm(x, n2_g, n2_b)
    h12 = mm(y, w12_ref[...])                # fused w1|w2, N = 2*Hpad (lane-dense)
    h1 = h12[:, :h_pad] + b1
    h2 = h12[:, h_pad:] + b2
    hid = (h1 * jax.nn.sigmoid(h1)) * h2     # SiLU(w1 y) * (w2 y)

    # ffn LayerNorm with statistics masked to the real (unpadded) h_real columns
    col = jax.lax.broadcasted_iota(jnp.int32, hid.shape, 1)
    mask = (col < h_real).astype(f32)
    hid = hid * mask
    mu = jnp.sum(hid, axis=-1, keepdims=True) * (1.0 / h_real)
    d = (hid - mu) * mask
    var = jnp.sum(d * d, axis=-1, keepdims=True) * (1.0 / h_real)
    hidn = d * jax.lax.rsqrt(var + EPS) * ln_g + ln_b   # padded cols -> 0 (g/b padded 0)

    mlp = mm(hidn, w3_ref[...]) + b3         # w3 padded rows are zero
    x = x + mlp

    # ---- query = norm3(query) -----------------------------------------------------
    o_ref[...] = layer_norm(x, n3_g, n3_b)


# ----------------------------------------------------------------------------------
# Parameter packing (plain JAX, outside the kernel — free at runtime)
# ----------------------------------------------------------------------------------
def pack_params(params, num_heads):
    E = params["sa_wq"].shape[0]
    H = params["w1"].shape[1]
    Hp = -(-H // 128) * 128                  # pad hidden dim up to a multiple of 128
    dh = E // num_heads
    scale = 1.0 / math.sqrt(dh)
    bf16 = jnp.bfloat16

    def pad_h(a):                            # pad last dim H -> Hp with zeros
        return jnp.pad(a, ((0, 0), (0, Hp - H)))

    sa_wqk = jnp.concatenate([params["sa_wq"] * scale, params["sa_wk"]],
                             axis=1).astype(bf16)                       # (E, 2E)
    w6 = jnp.stack([params["sa_wv"], params["sa_wo"],
                    params["ca_wq"] * scale, params["ca_wk"],
                    params["ca_wv"], params["ca_wo"]], axis=0).astype(bf16)  # (6,E,E)
    w12 = jnp.concatenate([pad_h(params["w1"]), pad_h(params["w2"])],
                          axis=1).astype(bf16)                          # (E, 2*Hp)
    w3 = jnp.pad(params["w3"], ((0, Hp - H), (0, 0))).astype(bf16)      # (Hp, E)

    vec_e = jnp.concatenate(
        [params["sa_bq"] * scale, params["sa_bk"], params["sa_bv"], params["sa_bo"],
         params["ca_bq"] * scale, params["ca_bk"], params["ca_bv"], params["ca_bo"],
         params["n1_g"], params["n1_b"], params["n2_g"], params["n2_b"],
         params["n3_g"], params["n3_b"], params["b3"],
         jnp.zeros((1, E), jnp.float32)], axis=0).astype(jnp.float32)   # (16, E)
    vec_h = jnp.concatenate(
        [pad_h(params["b1"]), pad_h(params["b2"]),
         pad_h(params["ln_g"]), pad_h(params["ln_b"])],
        axis=0).astype(jnp.float32)                                     # (4, Hp)

    return dict(sa_wqk=sa_wqk, w6=w6, w12=w12, w3=w3,
                vec_e=vec_e, vec_h=vec_h, H=H, Hp=Hp)


def decoder_block(query, key, value, query_pos, key_pos, params, num_heads):
    B, L, E = query.shape
    S = key.shape[1]
    pk = pack_params(params, num_heads)

    kernel = functools.partial(
        decoder_kernel, B=B, L=L, S=S, E=E, num_heads=num_heads,
        h_real=pk["H"], h_pad=pk["Hp"])

    n_in = 11
    vmem = pltpu.MemorySpace.VMEM
    out2d = pl.pallas_call(
        kernel,
        out_shape=jax.ShapeDtypeStruct((B * L, E), jnp.float32),
        in_specs=[pl.BlockSpec(memory_space=vmem)] * n_in,
        out_specs=pl.BlockSpec(memory_space=vmem),
    )(
        query.reshape(B * L, E), key.reshape(B * S, E), value.reshape(B * S, E),
        query_pos.reshape(B * L, E), key_pos.reshape(B * S, E),
        pk["sa_wqk"], pk["w6"], pk["w12"], pk["w3"], pk["vec_e"], pk["vec_h"],
    )
    return out2d.reshape(B, L, E)


# ----------------------------------------------------------------------------------
# Synthetic parameters + pure-JAX reference (original unfused f32 math)
# ----------------------------------------------------------------------------------
def make_params(key, embed_dim, hidden_dim):
    """Deterministic synthetic parameters (PyTorch Linear weights pre-transposed to (in,out))."""
    E, H = embed_dim, hidden_dim
    shapes = {
        "sa_wq": (E, E), "sa_wk": (E, E), "sa_wv": (E, E), "sa_wo": (E, E),
        "sa_bq": (1, E), "sa_bk": (1, E), "sa_bv": (1, E), "sa_bo": (1, E),
        "ca_wq": (E, E), "ca_wk": (E, E), "ca_wv": (E, E), "ca_wo": (E, E),
        "ca_bq": (1, E), "ca_bk": (1, E), "ca_bv": (1, E), "ca_bo": (1, E),
        "n1_g": (1, E), "n1_b": (1, E), "n2_g": (1, E), "n2_b": (1, E),
        "n3_g": (1, E), "n3_b": (1, E),
        "w1": (E, H), "b1": (1, H), "w2": (E, H), "b2": (1, H),
        "ln_g": (1, H), "ln_b": (1, H), "w3": (H, E), "b3": (1, E),
    }
    params = {}
    keys = jax.random.split(key, len(PARAM_NAMES))
    for k_, name in zip(keys, PARAM_NAMES):
        shp = shapes[name]
        if name.endswith("_g"):            # layernorm gamma ~ 1
            params[name] = 1.0 + 0.02 * jax.random.normal(k_, shp, jnp.float32)
        else:                              # weights / biases / betas
            params[name] = 0.02 * jax.random.normal(k_, shp, jnp.float32)
    return params


def _ref_layer_norm(x, g, b):
    mu = jnp.mean(x, axis=-1, keepdims=True)
    var = jnp.mean(jnp.square(x - mu), axis=-1, keepdims=True)
    return (x - mu) * jax.lax.rsqrt(var + EPS) * g + b


def _ref_mha(q_in, k_in, v_in, wq, bq, wk, bk, wv, bv, wo, bo, num_heads):
    E = q_in.shape[-1]
    dh = E // num_heads
    scale = 1.0 / math.sqrt(dh)
    hp = jax.lax.Precision.HIGHEST
    Q = jnp.dot(q_in, wq, precision=hp) + bq
    K = jnp.dot(k_in, wk, precision=hp) + bk
    V = jnp.dot(v_in, wv, precision=hp) + bv
    ctx = []
    for h in range(num_heads):
        qh = Q[:, h * dh:(h + 1) * dh] * scale
        kh = K[:, h * dh:(h + 1) * dh]
        vh = V[:, h * dh:(h + 1) * dh]
        s = jnp.dot(qh, kh.T, precision=hp)
        s = s - jnp.max(s, axis=-1, keepdims=True)
        p = jnp.exp(s)
        p = p / jnp.sum(p, axis=-1, keepdims=True)
        ctx.append(jnp.dot(p, vh, precision=hp))
    ctx = jnp.concatenate(ctx, axis=-1)
    return jnp.dot(ctx, wo, precision=hp) + bo


def _ref_decoder_single(x, k, v, qp, kp, p, num_heads):
    hp = jax.lax.Precision.HIGHEST
    sa = _ref_mha(x + qp, x + qp, x,
                  p["sa_wq"], p["sa_bq"], p["sa_wk"], p["sa_bk"],
                  p["sa_wv"], p["sa_bv"], p["sa_wo"], p["sa_bo"], num_heads)
    x = x + sa
    x = x + _ref_layer_norm(x, p["n1_g"], p["n1_b"])
    ca = _ref_mha(x + qp, k + kp, v,
                  p["ca_wq"], p["ca_bq"], p["ca_wk"], p["ca_bk"],
                  p["ca_wv"], p["ca_bv"], p["ca_wo"], p["ca_bo"], num_heads)
    x = x + ca
    y = _ref_layer_norm(x, p["n2_g"], p["n2_b"])
    h1 = jnp.dot(y, p["w1"], precision=hp) + p["b1"]
    h2 = jnp.dot(y, p["w2"], precision=hp) + p["b2"]
    hid = (h1 * jax.nn.sigmoid(h1)) * h2
    hid = _ref_layer_norm(hid, p["ln_g"], p["ln_b"])
    mlp = jnp.dot(hid, p["w3"], precision=hp) + p["b3"]
    x = x + mlp
    return _ref_layer_norm(x, p["n3_g"], p["n3_b"])


def ref_decoder(query, key, value, query_pos, key_pos, params, num_heads):
    f = lambda q, k, v, qp, kp: _ref_decoder_single(q, k, v, qp, kp, params, num_heads)
    return jax.vmap(f)(query, key, value, query_pos, key_pos)


# ----------------------------------------------------------------------------------
if __name__ == "__main__":
    B, L, S = 2, 8, 16
    E, NUM_HEADS = 128, 4
    MLP_RATIO = 2.6666666666666665
    H = int(E * MLP_RATIO)  # SwiGLU hidden features (= 341 for E=128)

    root = jax.random.PRNGKey(0)
    k_q, k_k, k_v, k_qp, k_kp, k_w = jax.random.split(root, 6)
    query = jax.random.normal(k_q, (B, L, E), jnp.float32)
    key = jax.random.normal(k_k, (B, S, E), jnp.float32)
    value = jax.random.normal(k_v, (B, S, E), jnp.float32)
    query_pos = jax.random.normal(k_qp, (B, L, E), jnp.float32)
    key_pos = jax.random.normal(k_kp, (B, S, E), jnp.float32)
    params = make_params(k_w, E, H)

    out = decoder_block(query, key, value, query_pos, key_pos, params, NUM_HEADS)
    out = jax.block_until_ready(out)

    ref = jax.block_until_ready(
        ref_decoder(query, key, value, query_pos, key_pos, params, NUM_HEADS))

    assert out.shape == (B, L, E) and out.dtype == jnp.float32
    # Kernel uses bf16 MXU matmuls (f32 accumulation); reference is full-f32 highest
    # precision, so allow bf16-level absolute error on ~unit-scale LayerNorm outputs.
    err = float(jnp.max(jnp.abs(out - ref)))
    assert err < 3e-2, f"mismatch vs reference: max abs err {err}"
    print("KERNEL_OK")
</pallas_src>

<mosaic_0001>
module attributes {stable_mosaic.version = 11 : i64} {
  func.func @decoder_kernel(%arg0: memref<16x128xf32, #tpu.memory_space<vmem>>, %arg1: memref<32x128xf32, #tpu.memory_space<vmem>>, %arg2: memref<32x128xf32, #tpu.memory_space<vmem>>, %arg3: memref<16x128xf32, #tpu.memory_space<vmem>>, %arg4: memref<32x128xf32, #tpu.memory_space<vmem>>, %arg5: memref<128x256xbf16, #tpu.memory_space<vmem>>, %arg6: memref<6x128x128xbf16, #tpu.memory_space<vmem>>, %arg7: memref<128x768xbf16, #tpu.memory_space<vmem>>, %arg8: memref<384x128xbf16, #tpu.memory_space<vmem>>, %arg9: memref<16x128xf32, #tpu.memory_space<vmem>>, %arg10: memref<4x384xf32, #tpu.memory_space<vmem>>, %arg11: memref<16x128xf32, #tpu.memory_space<vmem>>) attributes {dimension_semantics = [], scalar_prefetch = 0 : i64, scratch_operands = 0 : i64, tpu.core_type = #tpu.core_type<tc>} {
    %c0 = arith.constant 0 : index
    %c0_0 = arith.constant 0 : index
    %0 = vector.load %arg9[%c0, %c0_0] : memref<16x128xf32, #tpu.memory_space<vmem>>, vector<16x128xf32>
    %c0_1 = arith.constant 0 : index
    %c0_2 = arith.constant 0 : index
    %1 = vector.load %arg10[%c0_1, %c0_2] : memref<4x384xf32, #tpu.memory_space<vmem>>, vector<4x384xf32>
    %2 = vector.extract_strided_slice %0 {offsets = [0, 0], sizes = [1, 128], strides = [1, 1]} : vector<16x128xf32> to vector<1x128xf32>
    %3 = vector.extract_strided_slice %0 {offsets = [1, 0], sizes = [1, 128], strides = [1, 1]} : vector<16x128xf32> to vector<1x128xf32>
    %4 = vector.extract_strided_slice %0 {offsets = [2, 0], sizes = [1, 128], strides = [1, 1]} : vector<16x128xf32> to vector<1x128xf32>
    %5 = vector.extract_strided_slice %0 {offsets = [3, 0], sizes = [1, 128], strides = [1, 1]} : vector<16x128xf32> to vector<1x128xf32>
    %6 = vector.extract_strided_slice %0 {offsets = [4, 0], sizes = [1, 128], strides = [1, 1]} : vector<16x128xf32> to vector<1x128xf32>
    %7 = vector.extract_strided_slice %0 {offsets = [5, 0], sizes = [1, 128], strides = [1, 1]} : vector<16x128xf32> to vector<1x128xf32>
    %8 = vector.extract_strided_slice %0 {offsets = [6, 0], sizes = [1, 128], strides = [1, 1]} : vector<16x128xf32> to vector<1x128xf32>
    %9 = vector.extract_strided_slice %0 {offsets = [7, 0], sizes = [1, 128], strides = [1, 1]} : vector<16x128xf32> to vector<1x128xf32>
    %10 = vector.extract_strided_slice %0 {offsets = [8, 0], sizes = [1, 128], strides = [1, 1]} : vector<16x128xf32> to vector<1x128xf32>
    %11 = vector.extract_strided_slice %0 {offsets = [9, 0], sizes = [1, 128], strides = [1, 1]} : vector<16x128xf32> to vector<1x128xf32>
    %12 = vector.extract_strided_slice %0 {offsets = [10, 0], sizes = [1, 128], strides = [1, 1]} : vector<16x128xf32> to vector<1x128xf32>
    %13 = vector.extract_strided_slice %0 {offsets = [11, 0], sizes = [1, 128], strides = [1, 1]} : vector<16x128xf32> to vector<1x128xf32>
    %14 = vector.extract_strided_slice %0 {offsets = [12, 0], sizes = [1, 128], strides = [1, 1]} : vector<16x128xf32> to vector<1x128xf32>
    %15 = vector.extract_strided_slice %0 {offsets = [13, 0], sizes = [1, 128], strides = [1, 1]} : vector<16x128xf32> to vector<1x128xf32>
    %16 = vector.extract_strided_slice %0 {offsets = [14, 0], sizes = [1, 128], strides = [1, 1]} : vector<16x128xf32> to vector<1x128xf32>
    %17 = vector.extract_strided_slice %1 {offsets = [0, 0], sizes = [1, 384], strides = [1, 1]} : vector<4x384xf32> to vector<1x384xf32>
    %18 = vector.extract_strided_slice %1 {offsets = [1, 0], sizes = [1, 384], strides = [1, 1]} : vector<4x384xf32> to vector<1x384xf32>
    %19 = vector.extract_strided_slice %1 {offsets = [2, 0], sizes = [1, 384], strides = [1, 1]} : vector<4x384xf32> to vector<1x384xf32>
    %20 = vector.extract_strided_slice %1 {offsets = [3, 0], sizes = [1, 384], strides = [1, 1]} : vector<4x384xf32> to vector<1x384xf32>
    %c0_3 = arith.constant 0 : index
    %c0_4 = arith.constant 0 : index
    %c0_5 = arith.constant 0 : index
    %21 = vector.load %arg6[%c0_3, %c0_4, %c0_5] : memref<6x128x128xbf16, #tpu.memory_space<vmem>>, vector<1x128x128xbf16>
    %22 = vector.shape_cast %21 : vector<1x128x128xbf16> to vector<128x128xbf16>
    %c1 = arith.constant 1 : index
    %c0_6 = arith.constant 0 : index
    %c0_7 = arith.constant 0 : index
    %23 = vector.load %arg6[%c1, %c0_6, %c0_7] : memref<6x128x128xbf16, #tpu.memory_space<vmem>>, vector<1x128x128xbf16>
    %24 = vector.shape_cast %23 : vector<1x128x128xbf16> to vector<128x128xbf16>
    %c2 = arith.constant 2 : index
    %c0_8 = arith.constant 0 : index
    %c0_9 = arith.constant 0 : index
    %25 = vector.load %arg6[%c2, %c0_8, %c0_9] : memref<6x128x128xbf16, #tpu.memory_space<vmem>>, vector<1x128x128xbf16>
    %26 = vector.shape_cast %25 : vector<1x128x128xbf16> to vector<128x128xbf16>
    %c3 = arith.constant 3 : index
    %c0_10 = arith.constant 0 : index
    %c0_11 = arith.constant 0 : index
    %27 = vector.load %arg6[%c3, %c0_10, %c0_11] : memref<6x128x128xbf16, #tpu.memory_space<vmem>>, vector<1x128x128xbf16>
    %28 = vector.shape_cast %27 : vector<1x128x128xbf16> to vector<128x128xbf16>
    %c4 = arith.constant 4 : index
    %c0_12 = arith.constant 0 : index
    %c0_13 = arith.constant 0 : index
    %29 = vector.load %arg6[%c4, %c0_12, %c0_13] : memref<6x128x128xbf16, #tpu.memory_space<vmem>>, vector<1x128x128xbf16>
    %30 = vector.shape_cast %29 : vector<1x128x128xbf16> to vector<128x128xbf16>
    %c5 = arith.constant 5 : index
    %c0_14 = arith.constant 0 : index
    %c0_15 = arith.constant 0 : index
    %31 = vector.load %arg6[%c5, %c0_14, %c0_15] : memref<6x128x128xbf16, #tpu.memory_space<vmem>>, vector<1x128x128xbf16>
    %32 = vector.shape_cast %31 : vector<1x128x128xbf16> to vector<128x128xbf16>
    %c0_16 = arith.constant 0 : index
    %c0_17 = arith.constant 0 : index
    %33 = vector.load %arg0[%c0_16, %c0_17] : memref<16x128xf32, #tpu.memory_space<vmem>>, vector<16x128xf32>
    %c0_18 = arith.constant 0 : index
    %c0_19 = arith.constant 0 : index
    %34 = vector.load %arg1[%c0_18, %c0_19] : memref<32x128xf32, #tpu.memory_space<vmem>>, vector<32x128xf32>
    %c0_20 = arith.constant 0 : index
    %c0_21 = arith.constant 0 : index
    %35 = vector.load %arg2[%c0_20, %c0_21] : memref<32x128xf32, #tpu.memory_space<vmem>>, vector<32x128xf32>
    %c0_22 = arith.constant 0 : index
    %c0_23 = arith.constant 0 : index
    %36 = vector.load %arg3[%c0_22, %c0_23] : memref<16x128xf32, #tpu.memory_space<vmem>>, vector<16x128xf32>
    %c0_24 = arith.constant 0 : index
    %c0_25 = arith.constant 0 : index
    %37 = vector.load %arg4[%c0_24, %c0_25] : memref<32x128xf32, #tpu.memory_space<vmem>>, vector<32x128xf32>
    %38 = arith.addf %33, %36 : vector<16x128xf32>
    %c0_26 = arith.constant 0 : index
    %c0_27 = arith.constant 0 : index
    %39 = vector.load %arg5[%c0_26, %c0_27] : memref<128x256xbf16, #tpu.memory_space<vmem>>, vector<128x256xbf16>
    %40 = arith.truncf %38 : vector<16x128xf32> to vector<16x128xbf16>
    %cst = arith.constant dense<0.000000e+00> : vector<16x256xf32>
    %41 = tpu.matmul %40, %39, %cst {dimension_numbers = #tpu.dot_dimension_numbers<[1], [0], [0], [1], [0, 0, 1, 1], [], []>} : vector<16x128xbf16>, vector<128x256xbf16>, vector<16x256xf32> -> vector<16x256xf32>
    %42 = vector.extract_strided_slice %41 {offsets = [0, 0], sizes = [16, 128], strides = [1, 1]} : vector<16x256xf32> to vector<16x128xf32>
    %43 = vector.broadcast %2 : vector<1x128xf32> to vector<16x128xf32>
    %44 = arith.addf %42, %43 : vector<16x128xf32>
    %45 = vector.extract_strided_slice %41 {offsets = [0, 128], sizes = [16, 128], strides = [1, 1]} : vector<16x256xf32> to vector<16x128xf32>
    %46 = vector.broadcast %3 : vector<1x128xf32> to vector<16x128xf32>
    %47 = arith.addf %45, %46 : vector<16x128xf32>
    %48 = arith.truncf %33 : vector<16x128xf32> to vector<16x128xbf16>
    %cst_28 = arith.constant dense<0.000000e+00> : vector<16x128xf32>
    %49 = tpu.matmul %48, %22, %cst_28 {dimension_numbers = #tpu.dot_dimension_numbers<[1], [0], [0], [1], [0, 0, 1, 1], [], []>} : vector<16x128xbf16>, vector<128x128xbf16>, vector<16x128xf32> -> vector<16x128xf32>
    %50 = vector.broadcast %4 : vector<1x128xf32> to vector<16x128xf32>
    %51 = arith.addf %49, %50 : vector<16x128xf32>
    %52 = vector.extract_strided_slice %44 {offsets = [0, 0], sizes = [8, 128], strides = [1, 1]} : vector<16x128xf32> to vector<8x128xf32>
    %53 = vector.extract_strided_slice %47 {offsets = [0, 0], sizes = [8, 128], strides = [1, 1]} : vector<16x128xf32> to vector<8x128xf32>
    %54 = vector.extract_strided_slice %51 {offsets = [0, 0], sizes = [8, 128], strides = [1, 1]} : vector<16x128xf32> to vector<8x128xf32>
    %cst_29 = arith.constant 0.000000e+00 : f32
    %55 = vector.broadcast %cst_29 : f32 to vector<8x128xf32>
    %56 = vector.extract_strided_slice %52 {offsets = [0, 0], sizes = [8, 32], strides = [1, 1]} : vector<8x128xf32> to vector<8x32xf32>
    %57 = arith.truncf %56 : vector<8x32xf32> to vector<8x32xbf16>
    %58 = vector.extract_strided_slice %53 {offsets = [0, 0], sizes = [8, 32], strides = [1, 1]} : vector<8x128xf32> to vector<8x32xf32>
    %59 = arith.truncf %58 : vector<8x32xf32> to vector<8x32xbf16>
    %60 = vector.extract_strided_slice %54 {offsets = [0, 0], sizes = [8, 32], strides = [1, 1]} : vector<8x128xf32> to vector<8x32xf32>
    %61 = arith.truncf %60 : vector<8x32xf32> to vector<8x32xbf16>
    %cst_30 = arith.constant dense<0.000000e+00> : vector<8x8xf32>
    %62 = tpu.matmul %57, %59, %cst_30 {dimension_numbers = #tpu.dot_dimension_numbers<[1], [1], [0], [0], [0, 0, 1, 0], [], []>} : vector<8x32xbf16>, vector<8x32xbf16>, vector<8x8xf32> -> vector<8x8xf32>
    %cst_31 = arith.constant dense<0xFF800000> : vector<8xf32>
    %63 = vector.multi_reduction <maximumf>, %62, %cst_31 [1] : vector<8x8xf32> to vector<8xf32>
    %64 = vector.shape_cast %63 : vector<8xf32> to vector<8x1xf32>
    %65 = vector.broadcast %64 : vector<8x1xf32> to vector<8x8xf32>
    %66 = arith.subf %62, %65 : vector<8x8xf32>
    %67 = math.exp %66 : vector<8x8xf32>
    %cst_32 = arith.constant dense<0.000000e+00> : vector<8xf32>
    %68 = vector.multi_reduction <add>, %67, %cst_32 [1] : vector<8x8xf32> to vector<8xf32>
    %69 = vector.shape_cast %68 : vector<8xf32> to vector<8x1xf32>
    %70 = tpu.reciprocal %69 {approx = true} : vector<8x1xf32> -> vector<8x1xf32>
    %71 = vector.broadcast %70 : vector<8x1xf32> to vector<8x8xf32>
    %72 = arith.mulf %67, %71 : vector<8x8xf32>
    %73 = arith.truncf %72 : vector<8x8xf32> to vector<8x8xbf16>
    %cst_33 = arith.constant dense<0.000000e+00> : vector<8x32xf32>
    %74 = tpu.matmul %73, %61, %cst_33 {dimension_numbers = #tpu.dot_dimension_numbers<[1], [0], [0], [1], [0, 0, 1, 1], [], []>} : vector<8x8xbf16>, vector<8x32xbf16>, vector<8x32xf32> -> vector<8x32xf32>
    %75 = arith.truncf %74 : vector<8x32xf32> to vector<8x32xbf16>
    %76 = vector.extract_strided_slice %24 {offsets = [0, 0], sizes = [32, 128], strides = [1, 1]} : vector<128x128xbf16> to vector<32x128xbf16>
    %cst_34 = arith.constant dense<0.000000e+00> : vector<8x128xf32>
    %77 = tpu.matmul %75, %76, %cst_34 {dimension_numbers = #tpu.dot_dimension_numbers<[1], [0], [0], [1], [0, 0, 1, 1], [], []>} : vector<8x32xbf16>, vector<32x128xbf16>, vector<8x128xf32> -> vector<8x128xf32>
    %78 = arith.addf %55, %77 : vector<8x128xf32>
    %79 = vector.extract_strided_slice %52 {offsets = [0, 32], sizes = [8, 32], strides = [1, 1]} : vector<8x128xf32> to vector<8x32xf32>
    %80 = arith.truncf %79 : vector<8x32xf32> to vector<8x32xbf16>
    %81 = vector.extract_strided_slice %53 {offsets = [0, 32], sizes = [8, 32], strides = [1, 1]} : vector<8x128xf32> to vector<8x32xf32>
    %82 = arith.truncf %81 : vector<8x32xf32> to vector<8x32xbf16>
    %83 = vector.extract_strided_slice %54 {offsets = [0, 32], sizes = [8, 32], strides = [1, 1]} : vector<8x128xf32> to vector<8x32xf32>
    %84 = arith.truncf %83 : vector<8x32xf32> to vector<8x32xbf16>
    %cst_35 = arith.constant dense<0.000000e+00> : vector<8x8xf32>
    %85 = tpu.matmul %80, %82, %cst_35 {dimension_numbers = #tpu.dot_dimension_numbers<[1], [1], [0], [0], [0, 0, 1, 0], [], []>} : vector<8x32xbf16>, vector<8x32xbf16>, vector<8x8xf32> -> vector<8x8xf32>
    %cst_36 = arith.constant dense<0xFF800000> : vector<8xf32>
    %86 = vector.multi_reduction <maximumf>, %85, %cst_36 [1] : vector<8x8xf32> to vector<8xf32>
    %87 = vector.shape_cast %86 : vector<8xf32> to vector<8x1xf32>
    %88 = vector.broadcast %87 : vector<8x1xf32> to vector<8x8xf32>
    %89 = arith.subf %85, %88 : vector<8x8xf32>
    %90 = math.exp %89 : vector<8x8xf32>
    %cst_37 = arith.constant dense<0.000000e+00> : vector<8xf32>
    %91 = vector.multi_reduction <add>, %90, %cst_37 [1] : vector<8x8xf32> to vector<8xf32>
    %92 = vector.shape_cast %91 : vector<8xf32> to vector<8x1xf32>
    %93 = tpu.reciprocal %92 {approx = true} : vector<8x1xf32> -> vector<8x1xf32>
    %94 = vector.broadcast %93 : vector<8x1xf32> to vector<8x8xf32>
    %95 = arith.mulf %90, %94 : vector<8x8xf32>
    %96 = arith.truncf %95 : vector<8x8xf32> to vector<8x8xbf16>
    %cst_38 = arith.constant dense<0.000000e+00> : vector<8x32xf32>
    %97 = tpu.matmul %96, %84, %cst_38 {dimension_numbers = #tpu.dot_dimension_numbers<[1], [0], [0], [1], [0, 0, 1, 1], [], []>} : vector<8x8xbf16>, vector<8x32xbf16>, vector<8x32xf32> -> vector<8x32xf32>
    %98 = arith.truncf %97 : vector<8x32xf32> to vector<8x32xbf16>
    %99 = vector.extract_strided_slice %24 {offsets = [32, 0], sizes = [32, 128], strides = [1, 1]} : vector<128x128xbf16> to vector<32x128xbf16>
    %cst_39 = arith.constant dense<0.000000e+00> : vector<8x128xf32>
    %100 = tpu.matmul %98, %99, %cst_39 {dimension_numbers = #tpu.dot_dimension_numbers<[1], [0], [0], [1], [0, 0, 1, 1], [], []>} : vector<8x32xbf16>, vector<32x128xbf16>, vector<8x128xf32> -> vector<8x128xf32>
    %101 = arith.addf %78, %100 : vector<8x128xf32>
    %102 = vector.extract_strided_slice %52 {offsets = [0, 64], sizes = [8, 32], strides = [1, 1]} : vector<8x128xf32> to vector<8x32xf32>
    %103 = arith.truncf %102 : vector<8x32xf32> to vector<8x32xbf16>
    %104 = vector.extract_strided_slice %53 {offsets = [0, 64], sizes = [8, 32], strides = [1, 1]} : vector<8x128xf32> to vector<8x32xf32>
    %105 = arith.truncf %104 : vector<8x32xf32> to vector<8x32xbf16>
    %106 = vector.extract_strided_slice %54 {offsets = [0, 64], sizes = [8, 32], strides = [1, 1]} : vector<8x128xf32> to vector<8x32xf32>
    %107 = arith.truncf %106 : vector<8x32xf32> to vector<8x32xbf16>
    %cst_40 = arith.constant dense<0.000000e+00> : vector<8x8xf32>
    %108 = tpu.matmul %103, %105, %cst_40 {dimension_numbers = #tpu.dot_dimension_numbers<[1], [1], [0], [0], [0, 0, 1, 0], [], []>} : vector<8x32xbf16>, vector<8x32xbf16>, vector<8x8xf32> -> vector<8x8xf32>
    %cst_41 = arith.constant dense<0xFF800000> : vector<8xf32>
    %109 = vector.multi_reduction <maximumf>, %108, %cst_41 [1] : vector<8x8xf32> to vector<8xf32>
    %110 = vector.shape_cast %109 : vector<8xf32> to vector<8x1xf32>
    %111 = vector.broadcast %110 : vector<8x1xf32> to vector<8x8xf32>
    %112 = arith.subf %108, %111 : vector<8x8xf32>
    %113 = math.exp %112 : vector<8x8xf32>
    %cst_42 = arith.constant dense<0.000000e+00> : vector<8xf32>
    %114 = vector.multi_reduction <add>, %113, %cst_42 [1] : vector<8x8xf32> to vector<8xf32>
    %115 = vector.shape_cast %114 : vector<8xf32> to vector<8x1xf32>
    %116 = tpu.reciprocal %115 {approx = true} : vector<8x1xf32> -> vector<8x1xf32>
    %117 = vector.broadcast %116 : vector<8x1xf32> to vector<8x8xf32>
    %118 = arith.mulf %113, %117 : vector<8x8xf32>
    %119 = arith.truncf %118 : vector<8x8xf32> to vector<8x8xbf16>
    %cst_43 = arith.constant dense<0.000000e+00> : vector<8x32xf32>
    %120 = tpu.matmul %119, %107, %cst_43 {dimension_numbers = #tpu.dot_dimension_numbers<[1], [0], [0], [1], [0, 0, 1, 1], [], []>} : vector<8x8xbf16>, vector<8x32xbf16>, vector<8x32xf32> -> vector<8x32xf32>
    %121 = arith.truncf %120 : vector<8x32xf32> to vector<8x32xbf16>
    %122 = vector.extract_strided_slice %24 {offsets = [64, 0], sizes = [32, 128], strides = [1, 1]} : vector<128x128xbf16> to vector<32x128xbf16>
    %cst_44 = arith.constant dense<0.000000e+00> : vector<8x128xf32>
    %123 = tpu.matmul %121, %122, %cst_44 {dimension_numbers = #tpu.dot_dimension_numbers<[1], [0], [0], [1], [0, 0, 1, 1], [], []>} : vector<8x32xbf16>, vector<32x128xbf16>, vector<8x128xf32> -> vector<8x128xf32>
    %124 = arith.addf %101, %123 : vector<8x128xf32>
    %125 = vector.extract_strided_slice %52 {offsets = [0, 96], sizes = [8, 32], strides = [1, 1]} : vector<8x128xf32> to vector<8x32xf32>
    %126 = arith.truncf %125 : vector<8x32xf32> to vector<8x32xbf16>
    %127 = vector.extract_strided_slice %53 {offsets = [0, 96], sizes = [8, 32], strides = [1, 1]} : vector<8x128xf32> to vector<8x32xf32>
    %128 = arith.truncf %127 : vector<8x32xf32> to vector<8x32xbf16>
    %129 = vector.extract_strided_slice %54 {offsets = [0, 96], sizes = [8, 32], strides = [1, 1]} : vector<8x128xf32> to vector<8x32xf32>
    %130 = arith.truncf %129 : vector<8x32xf32> to vector<8x32xbf16>
    %cst_45 = arith.constant dense<0.000000e+00> : vector<8x8xf32>
    %131 = tpu.matmul %126, %128, %cst_45 {dimension_numbers = #tpu.dot_dimension_numbers<[1], [1], [0], [0], [0, 0, 1, 0], [], []>} : vector<8x32xbf16>, vector<8x32xbf16>, vector<8x8xf32> -> vector<8x8xf32>
    %cst_46 = arith.constant dense<0xFF800000> : vector<8xf32>
    %132 = vector.multi_reduction <maximumf>, %131, %cst_46 [1] : vector<8x8xf32> to vector<8xf32>
    %133 = vector.shape_cast %132 : vector<8xf32> to vector<8x1xf32>
    %134 = vector.broadcast %133 : vector<8x1xf32> to vector<8x8xf32>
    %135 = arith.subf %131, %134 : vector<8x8xf32>
    %136 = math.exp %135 : vector<8x8xf32>
    %cst_47 = arith.constant dense<0.000000e+00> : vector<8xf32>
    %137 = vector.multi_reduction <add>, %136, %cst_47 [1] : vector<8x8xf32> to vector<8xf32>
    %138 = vector.shape_cast %137 : vector<8xf32> to vector<8x1xf32>
    %139 = tpu.reciprocal %138 {approx = true} : vector<8x1xf32> -> vector<8x1xf32>
    %140 = vector.broadcast %139 : vector<8x1xf32> to vector<8x8xf32>
    %141 = arith.mulf %136, %140 : vector<8x8xf32>
    %142 = arith.truncf %141 : vector<8x8xf32> to vector<8x8xbf16>
    %cst_48 = arith.constant dense<0.000000e+00> : vector<8x32xf32>
    %143 = tpu.matmul %142, %130, %cst_48 {dimension_numbers = #tpu.dot_dimension_numbers<[1], [0], [0], [1], [0, 0, 1, 1], [], []>} : vector<8x8xbf16>, vector<8x32xbf16>, vector<8x32xf32> -> vector<8x32xf32>
    %144 = arith.truncf %143 : vector<8x32xf32> to vector<8x32xbf16>
    %145 = vector.extract_strided_slice %24 {offsets = [96, 0], sizes = [32, 128], strides = [1, 1]} : vector<128x128xbf16> to vector<32x128xbf16>
    %cst_49 = arith.constant dense<0.000000e+00> : vector<8x128xf32>
    %146 = tpu.matmul %144, %145, %cst_49 {dimension_numbers = #tpu.dot_dimension_numbers<[1], [0], [0], [1], [0, 0, 1, 1], [], []>} : vector<8x32xbf16>, vector<32x128xbf16>, vector<8x128xf32> -> vector<8x128xf32>
    %147 = arith.addf %124, %146 : vector<8x128xf32>
    %148 = vector.extract_strided_slice %44 {offsets = [8, 0], sizes = [8, 128], strides = [1, 1]} : vector<16x128xf32> to vector<8x128xf32>
    %149 = vector.extract_strided_slice %47 {offsets = [8, 0], sizes = [8, 128], strides = [1, 1]} : vector<16x128xf32> to vector<8x128xf32>
    %150 = vector.extract_strided_slice %51 {offsets = [8, 0], sizes = [8, 128], strides = [1, 1]} : vector<16x128xf32> to vector<8x128xf32>
    %cst_50 = arith.constant 0.000000e+00 : f32
    %151 = vector.broadcast %cst_50 : f32 to vector<8x128xf32>
    %152 = vector.extract_strided_slice %148 {offsets = [0, 0], sizes = [8, 32], strides = [1, 1]} : vector<8x128xf32> to vector<8x32xf32>
    %153 = arith.truncf %152 : vector<8x32xf32> to vector<8x32xbf16>
    %154 = vector.extract_strided_slice %149 {offsets = [0, 0], sizes = [8, 32], strides = [1, 1]} : vector<8x128xf32> to vector<8x32xf32>
    %155 = arith.truncf %154 : vector<8x32xf32> to vector<8x32xbf16>
    %156 = vector.extract_strided_slice %150 {offsets = [0, 0], sizes = [8, 32], strides = [1, 1]} : vector<8x128xf32> to vector<8x32xf32>
    %157 = arith.truncf %156 : vector<8x32xf32> to vector<8x32xbf16>
    %cst_51 = arith.constant dense<0.000000e+00> : vector<8x8xf32>
    %158 = tpu.matmul %153, %155, %cst_51 {dimension_numbers = #tpu.dot_dimension_numbers<[1], [1], [0], [0], [0, 0, 1, 0], [], []>} : vector<8x32xbf16>, vector<8x32xbf16>, vector<8x8xf32> -> vector<8x8xf32>
    %cst_52 = arith.constant dense<0xFF800000> : vector<8xf32>
    %159 = vector.multi_reduction <maximumf>, %158, %cst_52 [1] : vector<8x8xf32> to vector<8xf32>
    %160 = vector.shape_cast %159 : vector<8xf32> to vector<8x1xf32>
    %161 = vector.broadcast %160 : vector<8x1xf32> to vector<8x8xf32>
    %162 = arith.subf %158, %161 : vector<8x8xf32>
    %163 = math.exp %162 : vector<8x8xf32>
    %cst_53 = arith.constant dense<0.000000e+00> : vector<8xf32>
    %164 = vector.multi_reduction <add>, %163, %cst_53 [1] : vector<8x8xf32> to vector<8xf32>
    %165 = vector.shape_cast %164 : vector<8xf32> to vector<8x1xf32>
    %166 = tpu.reciprocal %165 {approx = true} : vector<8x1xf32> -> vector<8x1xf32>
    %167 = vector.broadcast %166 : vector<8x1xf32> to vector<8x8xf32>
    %168 = arith.mulf %163, %167 : vector<8x8xf32>
    %169 = arith.truncf %168 : vector<8x8xf32> to vector<8x8xbf16>
    %cst_54 = arith.constant dense<0.000000e+00> : vector<8x32xf32>
    %170 = tpu.matmul %169, %157, %cst_54 {dimension_numbers = #tpu.dot_dimension_numbers<[1], [0], [0], [1], [0, 0, 1, 1], [], []>} : vector<8x8xbf16>, vector<8x32xbf16>, vector<8x32xf32> -> vector<8x32xf32>
    %171 = arith.truncf %170 : vector<8x32xf32> to vector<8x32xbf16>
    %172 = vector.extract_strided_slice %24 {offsets = [0, 0], sizes = [32, 128], strides = [1, 1]} : vector<128x128xbf16> to vector<32x128xbf16>
    %cst_55 = arith.constant dense<0.000000e+00> : vector<8x128xf32>
    %173 = tpu.matmul %171, %172, %cst_55 {dimension_numbers = #tpu.dot_dimension_numbers<[1], [0], [0], [1], [0, 0, 1, 1], [], []>} : vector<8x32xbf16>, vector<32x128xbf16>, vector<8x128xf32> -> vector<8x128xf32>
    %174 = arith.addf %151, %173 : vector<8x128xf32>
    %175 = vector.extract_strided_slice %148 {offsets = [0, 32], sizes = [8, 32], strides = [1, 1]} : vector<8x128xf32> to vector<8x32xf32>
    %176 = arith.truncf %175 : vector<8x32xf32> to vector<8x32xbf16>
    %177 = vector.extract_strided_slice %149 {offsets = [0, 32], sizes = [8, 32], strides = [1, 1]} : vector<8x128xf32> to vector<8x32xf32>
    %178 = arith.truncf %177 : vector<8x32xf32> to vector<8x32xbf16>
    %179 = vector.extract_strided_slice %150 {offsets = [0, 32], sizes = [8, 32], strides = [1, 1]} : vector<8x128xf32> to vector<8x32xf32>
    %180 = arith.truncf %179 : vector<8x32xf32> to vector<8x32xbf16>
    %cst_56 = arith.constant dense<0.000000e+00> : vector<8x8xf32>
    %181 = tpu.matmul %176, %178, %cst_56 {dimension_numbers = #tpu.dot_dimension_numbers<[1], [1], [0], [0], [0, 0, 1, 0], [], []>} : vector<8x32xbf16>, vector<8x32xbf16>, vector<8x8xf32> -> vector<8x8xf32>
    %cst_57 = arith.constant dense<0xFF800000> : vector<8xf32>
    %182 = vector.multi_reduction <maximumf>, %181, %cst_57 [1] : vector<8x8xf32> to vector<8xf32>
    %183 = vector.shape_cast %182 : vector<8xf32> to vector<8x1xf32>
    %184 = vector.broadcast %183 : vector<8x1xf32> to vector<8x8xf32>
    %185 = arith.subf %181, %184 : vector<8x8xf32>
    %186 = math.exp %185 : vector<8x8xf32>
    %cst_58 = arith.constant dense<0.000000e+00> : vector<8xf32>
    %187 = vector.multi_reduction <add>, %186, %cst_58 [1] : vector<8x8xf32> to vector<8xf32>
    %188 = vector.shape_cast %187 : vector<8xf32> to vector<8x1xf32>
    %189 = tpu.reciprocal %188 {approx = true} : vector<8x1xf32> -> vector<8x1xf32>
    %190 = vector.broadcast %189 : vector<8x1xf32> to vector<8x8xf32>
    %191 = arith.mulf %186, %190 : vector<8x8xf32>
    %192 = arith.truncf %191 : vector<8x8xf32> to vector<8x8xbf16>
    %cst_59 = arith.constant dense<0.000000e+00> : vector<8x32xf32>
    %193 = tpu.matmul %192, %180, %cst_59 {dimension_numbers = #tpu.dot_dimension_numbers<[1], [0], [0], [1], [0, 0, 1, 1], [], []>} : vector<8x8xbf16>, vector<8x32xbf16>, vector<8x32xf32> -> vector<8x32xf32>
    %194 = arith.truncf %193 : vector<8x32xf32> to vector<8x32xbf16>
    %195 = vector.extract_strided_slice %24 {offsets = [32, 0], sizes = [32, 128], strides = [1, 1]} : vector<128x128xbf16> to vector<32x128xbf16>
    %cst_60 = arith.constant dense<0.000000e+00> : vector<8x128xf32>
    %196 = tpu.matmul %194, %195, %cst_60 {dimension_numbers = #tpu.dot_dimension_numbers<[1], [0], [0], [1], [0, 0, 1, 1], [], []>} : vector<8x32xbf16>, vector<32x128xbf16>, vector<8x128xf32> -> vector<8x128xf32>
    %197 = arith.addf %174, %196 : vector<8x128xf32>
    %198 = vector.extract_strided_slice %148 {offsets = [0, 64], sizes = [8, 32], strides = [1, 1]} : vector<8x128xf32> to vector<8x32xf32>
    %199 = arith.truncf %198 : vector<8x32xf32> to vector<8x32xbf16>
    %200 = vector.extract_strided_slice %149 {offsets = [0, 64], sizes = [8, 32], strides = [1, 1]} : vector<8x128xf32> to vector<8x32xf32>
    %201 = arith.truncf %200 : vector<8x32xf32> to vector<8x32xbf16>
    %202 = vector.extract_strided_slice %150 {offsets = [0, 64], sizes = [8, 32], strides = [1, 1]} : vector<8x128xf32> to vector<8x32xf32>
    %203 = arith.truncf %202 : vector<8x32xf32> to vector<8x32xbf16>
    %cst_61 = arith.constant dense<0.000000e+00> : vector<8x8xf32>
    %204 = tpu.matmul %199, %201, %cst_61 {dimension_numbers = #tpu.dot_dimension_numbers<[1], [1], [0], [0], [0, 0, 1, 0], [], []>} : vector<8x32xbf16>, vector<8x32xbf16>, vector<8x8xf32> -> vector<8x8xf32>
    %cst_62 = arith.constant dense<0xFF800000> : vector<8xf32>
    %205 = vector.multi_reduction <maximumf>, %204, %cst_62 [1] : vector<8x8xf32> to vector<8xf32>
    %206 = vector.shape_cast %205 : vector<8xf32> to vector<8x1xf32>
    %207 = vector.broadcast %206 : vector<8x1xf32> to vector<8x8xf32>
    %208 = arith.subf %204, %207 : vector<8x8xf32>
    %209 = math.exp %208 : vector<8x8xf32>
    %cst_63 = arith.constant dense<0.000000e+00> : vector<8xf32>
    %210 = vector.multi_reduction <add>, %209, %cst_63 [1] : vector<8x8xf32> to vector<8xf32>
    %211 = vector.shape_cast %210 : vector<8xf32> to vector<8x1xf32>
    %212 = tpu.reciprocal %211 {approx = true} : vector<8x1xf32> -> vector<8x1xf32>
    %213 = vector.broadcast %212 : vector<8x1xf32> to vector<8x8xf32>
    %214 = arith.mulf %209, %213 : vector<8x8xf32>
    %215 = arith.truncf %214 : vector<8x8xf32> to vector<8x8xbf16>
    %cst_64 = arith.constant dense<0.000000e+00> : vector<8x32xf32>
    %216 = tpu.matmul %215, %203, %cst_64 {dimension_numbers = #tpu.dot_dimension_numbers<[1], [0], [0], [1], [0, 0, 1, 1], [], []>} : vector<8x8xbf16>, vector<8x32xbf16>, vector<8x32xf32> -> vector<8x32xf32>
    %217 = arith.truncf %216 : vector<8x32xf32> to vector<8x32xbf16>
    %218 = vector.extract_strided_slice %24 {offsets = [64, 0], sizes = [32, 128], strides = [1, 1]} : vector<128x128xbf16> to vector<32x128xbf16>
    %cst_65 = arith.constant dense<0.000000e+00> : vector<8x128xf32>
    %219 = tpu.matmul %217, %218, %cst_65 {dimension_numbers = #tpu.dot_dimension_numbers<[1], [0], [0], [1], [0, 0, 1, 1], [], []>} : vector<8x32xbf16>, vector<32x128xbf16>, vector<8x128xf32> -> vector<8x128xf32>
    %220 = arith.addf %197, %219 : vector<8x128xf32>
    %221 = vector.extract_strided_slice %148 {offsets = [0, 96], sizes = [8, 32], strides = [1, 1]} : vector<8x128xf32> to vector<8x32xf32>
    %222 = arith.truncf %221 : vector<8x32xf32> to vector<8x32xbf16>
    %223 = vector.extract_strided_slice %149 {offsets = [0, 96], sizes = [8, 32], strides = [1, 1]} : vector<8x128xf32> to vector<8x32xf32>
    %224 = arith.truncf %223 : vector<8x32xf32> to vector<8x32xbf16>
    %225 = vector.extract_strided_slice %150 {offsets = [0, 96], sizes = [8, 32], strides = [1, 1]} : vector<8x128xf32> to vector<8x32xf32>
    %226 = arith.truncf %225 : vector<8x32xf32> to vector<8x32xbf16>
    %cst_66 = arith.constant dense<0.000000e+00> : vector<8x8xf32>
    %227 = tpu.matmul %222, %224, %cst_66 {dimension_numbers = #tpu.dot_dimension_numbers<[1], [1], [0], [0], [0, 0, 1, 0], [], []>} : vector<8x32xbf16>, vector<8x32xbf16>, vector<8x8xf32> -> vector<8x8xf32>
    %cst_67 = arith.constant dense<0xFF800000> : vector<8xf32>
    %228 = vector.multi_reduction <maximumf>, %227, %cst_67 [1] : vector<8x8xf32> to vector<8xf32>
    %229 = vector.shape_cast %228 : vector<8xf32> to vector<8x1xf32>
    %230 = vector.broadcast %229 : vector<8x1xf32> to vector<8x8xf32>
    %231 = arith.subf %227, %230 : vector<8x8xf32>
    %232 = math.exp %231 : vector<8x8xf32>
    %cst_68 = arith.constant dense<0.000000e+00> : vector<8xf32>
    %233 = vector.multi_reduction <add>, %232, %cst_68 [1] : vector<8x8xf32> to vector<8xf32>
    %234 = vector.shape_cast %233 : vector<8xf32> to vector<8x1xf32>
    %235 = tpu.reciprocal %234 {approx = true} : vector<8x1xf32> -> vector<8x1xf32>
    %236 = vector.broadcast %235 : vector<8x1xf32> to vector<8x8xf32>
    %237 = arith.mulf %232, %236 : vector<8x8xf32>
    %238 = arith.truncf %237 : vector<8x8xf32> to vector<8x8xbf16>
    %cst_69 = arith.constant dense<0.000000e+00> : vector<8x32xf32>
    %239 = tpu.matmul %238, %226, %cst_69 {dimension_numbers = #tpu.dot_dimension_numbers<[1], [0], [0], [1], [0, 0, 1, 1], [], []>} : vector<8x8xbf16>, vector<8x32xbf16>, vector<8x32xf32> -> vector<8x32xf32>
    %240 = arith.truncf %239 : vector<8x32xf32> to vector<8x32xbf16>
    %241 = vector.extract_strided_slice %24 {offsets = [96, 0], sizes = [32, 128], strides = [1, 1]} : vector<128x128xbf16> to vector<32x128xbf16>
    %cst_70 = arith.constant dense<0.000000e+00> : vector<8x128xf32>
    %242 = tpu.matmul %240, %241, %cst_70 {dimension_numbers = #tpu.dot_dimension_numbers<[1], [0], [0], [1], [0, 0, 1, 1], [], []>} : vector<8x32xbf16>, vector<32x128xbf16>, vector<8x128xf32> -> vector<8x128xf32>
    %243 = arith.addf %220, %242 : vector<8x128xf32>
    %244 = tpu.concatenate %147, %243 in 0 : vector<8x128xf32>, vector<8x128xf32> -> vector<16x128xf32>
    %245 = vector.broadcast %5 : vector<1x128xf32> to vector<16x128xf32>
    %246 = arith.addf %244, %245 : vector<16x128xf32>
    %247 = arith.addf %33, %246 : vector<16x128xf32>
    %cst_71 = arith.constant dense<0.000000e+00> : vector<16xf32>
    %248 = vector.multi_reduction <add>, %247, %cst_71 [1] : vector<16x128xf32> to vector<16xf32>
    %249 = vector.shape_cast %248 : vector<16xf32> to vector<16x1xf32>
    %cst_72 = arith.constant 1.280000e+02 : f32
    %250 = vector.broadcast %cst_72 : f32 to vector<16x1xf32>
    %251 = arith.divf %249, %250 : vector<16x1xf32>
    %252 = vector.broadcast %251 : vector<16x1xf32> to vector<16x128xf32>
    %253 = arith.subf %247, %252 : vector<16x128xf32>
    %254 = arith.mulf %253, %253 : vector<16x128xf32>
    %cst_73 = arith.constant dense<0.000000e+00> : vector<16xf32>
    %255 = vector.multi_reduction <add>, %254, %cst_73 [1] : vector<16x128xf32> to vector<16xf32>
    %256 = vector.shape_cast %255 : vector<16xf32> to vector<16x1xf32>
    %cst_74 = arith.constant 1.280000e+02 : f32
    %257 = vector.broadcast %cst_74 : f32 to vector<16x1xf32>
    %258 = arith.divf %256, %257 : vector<16x1xf32>
    %259 = vector.broadcast %251 : vector<16x1xf32> to vector<16x128xf32>
    %260 = arith.subf %247, %259 : vector<16x128xf32>
    %cst_75 = arith.constant 9.99999974E-6 : f32
    %261 = vector.broadcast %cst_75 : f32 to vector<16x1xf32>
    %262 = arith.addf %258, %261 : vector<16x1xf32>
    %263 = math.rsqrt %262 : vector<16x1xf32>
    %264 = vector.broadcast %263 : vector<16x1xf32> to vector<16x128xf32>
    %265 = arith.mulf %260, %264 : vector<16x128xf32>
    %266 = vector.broadcast %10 : vector<1x128xf32> to vector<16x128xf32>
    %267 = arith.mulf %265, %266 : vector<16x128xf32>
    %268 = vector.broadcast %11 : vector<1x128xf32> to vector<16x128xf32>
    %269 = arith.addf %267, %268 : vector<16x128xf32>
    %270 = arith.addf %247, %269 : vector<16x128xf32>
    %271 = arith.addf %270, %36 : vector<16x128xf32>
    %272 = arith.truncf %271 : vector<16x128xf32> to vector<16x128xbf16>
    %cst_76 = arith.constant dense<0.000000e+00> : vector<16x128xf32>
    %273 = tpu.matmul %272, %26, %cst_76 {dimension_numbers = #tpu.dot_dimension_numbers<[1], [0], [0], [1], [0, 0, 1, 1], [], []>} : vector<16x128xbf16>, vector<128x128xbf16>, vector<16x128xf32> -> vector<16x128xf32>
    %274 = vector.broadcast %6 : vector<1x128xf32> to vector<16x128xf32>
    %275 = arith.addf %273, %274 : vector<16x128xf32>
    %276 = arith.addf %34, %37 : vector<32x128xf32>
    %277 = arith.truncf %276 : vector<32x128xf32> to vector<32x128xbf16>
    %cst_77 = arith.constant dense<0.000000e+00> : vector<32x128xf32>
    %278 = tpu.matmul %277, %28, %cst_77 {dimension_numbers = #tpu.dot_dimension_numbers<[1], [0], [0], [1], [0, 0, 1, 1], [], []>} : vector<32x128xbf16>, vector<128x128xbf16>, vector<32x128xf32> -> vector<32x128xf32>
    %279 = vector.broadcast %7 : vector<1x128xf32> to vector<32x128xf32>
    %280 = arith.addf %278, %279 : vector<32x128xf32>
    %281 = arith.truncf %35 : vector<32x128xf32> to vector<32x128xbf16>
    %cst_78 = arith.constant dense<0.000000e+00> : vector<32x128xf32>
    %282 = tpu.matmul %281, %30, %cst_78 {dimension_numbers = #tpu.dot_dimension_numbers<[1], [0], [0], [1], [0, 0, 1, 1], [], []>} : vector<32x128xbf16>, vector<128x128xbf16>, vector<32x128xf32> -> vector<32x128xf32>
    %283 = vector.broadcast %8 : vector<1x128xf32> to vector<32x128xf32>
    %284 = arith.addf %282, %283 : vector<32x128xf32>
    %285 = vector.extract_strided_slice %275 {offsets = [0, 0], sizes = [8, 128], strides = [1, 1]} : vector<16x128xf32> to vector<8x128xf32>
    %286 = vector.extract_strided_slice %280 {offsets = [0, 0], sizes = [16, 128], strides = [1, 1]} : vector<32x128xf32> to vector<16x128xf32>
    %287 = vector.extract_strided_slice %284 {offsets = [0, 0], sizes = [16, 128], strides = [1, 1]} : vector<32x128xf32> to vector<16x128xf32>
    %cst_79 = arith.constant 0.000000e+00 : f32
    %288 = vector.broadcast %cst_79 : f32 to vector<8x128xf32>
    %289 = vector.extract_strided_slice %285 {offsets = [0, 0], sizes = [8, 32], strides = [1, 1]} : vector<8x128xf32> to vector<8x32xf32>
    %290 = arith.truncf %289 : vector<8x32xf32> to vector<8x32xbf16>
    %291 = vector.extract_strided_slice %286 {offsets = [0, 0], sizes = [16, 32], strides = [1, 1]} : vector<16x128xf32> to vector<16x32xf32>
    %292 = arith.truncf %291 : vector<16x32xf32> to vector<16x32xbf16>
    %293 = vector.extract_strided_slice %287 {offsets = [0, 0], sizes = [16, 32], strides = [1, 1]} : vector<16x128xf32> to vector<16x32xf32>
    %294 = arith.truncf %293 : vector<16x32xf32> to vector<16x32xbf16>
    %cst_80 = arith.constant dense<0.000000e+00> : vector<8x16xf32>
    %295 = tpu.matmul %290, %292, %cst_80 {dimension_numbers = #tpu.dot_dimension_numbers<[1], [1], [0], [0], [0, 0, 1, 0], [], []>} : vector<8x32xbf16>, vector<16x32xbf16>, vector<8x16xf32> -> vector<8x16xf32>
    %cst_81 = arith.constant dense<0xFF800000> : vector<8xf32>
    %296 = vector.multi_reduction <maximumf>, %295, %cst_81 [1] : vector<8x16xf32> to vector<8xf32>
    %297 = vector.shape_cast %296 : vector<8xf32> to vector<8x1xf32>
    %298 = vector.broadcast %297 : vector<8x1xf32> to vector<8x16xf32>
    %299 = arith.subf %295, %298 : vector<8x16xf32>
    %300 = math.exp %299 : vector<8x16xf32>
    %cst_82 = arith.constant dense<0.000000e+00> : vector<8xf32>
    %301 = vector.multi_reduction <add>, %300, %cst_82 [1] : vector<8x16xf32> to vector<8xf32>
    %302 = vector.shape_cast %301 : vector<8xf32> to vector<8x1xf32>
    %303 = tpu.reciprocal %302 {approx = true} : vector<8x1xf32> -> vector<8x1xf32>
    %304 = vector.broadcast %303 : vector<8x1xf32> to vector<8x16xf32>
    %305 = arith.mulf %300, %304 : vector<8x16xf32>
    %306 = arith.truncf %305 : vector<8x16xf32> to vector<8x16xbf16>
    %cst_83 = arith.constant dense<0.000000e+00> : vector<8x32xf32>
    %307 = tpu.matmul %306, %294, %cst_83 {dimension_numbers = #tpu.dot_dimension_numbers<[1], [0], [0], [1], [0, 0, 1, 1], [], []>} : vector<8x16xbf16>, vector<16x32xbf16>, vector<8x32xf32> -> vector<8x32xf32>
    %308 = arith.truncf %307 : vector<8x32xf32> to vector<8x32xbf16>
    %309 = vector.extract_strided_slice %32 {offsets = [0, 0], sizes = [32, 128], strides = [1, 1]} : vector<128x128xbf16> to vector<32x128xbf16>
    %cst_84 = arith.constant dense<0.000000e+00> : vector<8x128xf32>
    %310 = tpu.matmul %308, %309, %cst_84 {dimension_numbers = #tpu.dot_dimension_numbers<[1], [0], [0], [1], [0, 0, 1, 1], [], []>} : vector<8x32xbf16>, vector<32x128xbf16>, vector<8x128xf32> -> vector<8x128xf32>
    %311 = arith.addf %288, %310 : vector<8x128xf32>
    %312 = vector.extract_strided_slice %285 {offsets = [0, 32], sizes = [8, 32], strides = [1, 1]} : vector<8x128xf32> to vector<8x32xf32>
    %313 = arith.truncf %312 : vector<8x32xf32> to vector<8x32xbf16>
    %314 = vector.extract_strided_slice %286 {offsets = [0, 32], sizes = [16, 32], strides = [1, 1]} : vector<16x128xf32> to vector<16x32xf32>
    %315 = arith.truncf %314 : vector<16x32xf32> to vector<16x32xbf16>
    %316 = vector.extract_strided_slice %287 {offsets = [0, 32], sizes = [16, 32], strides = [1, 1]} : vector<16x128xf32> to vector<16x32xf32>
    %317 = arith.truncf %316 : vector<16x32xf32> to vector<16x32xbf16>
    %cst_85 = arith.constant dense<0.000000e+00> : vector<8x16xf32>
    %318 = tpu.matmul %313, %315, %cst_85 {dimension_numbers = #tpu.dot_dimension_numbers<[1], [1], [0], [0], [0, 0, 1, 0], [], []>} : vector<8x32xbf16>, vector<16x32xbf16>, vector<8x16xf32> -> vector<8x16xf32>
    %cst_86 = arith.constant dense<0xFF800000> : vector<8xf32>
    %319 = vector.multi_reduction <maximumf>, %318, %cst_86 [1] : vector<8x16xf32> to vector<8xf32>
    %320 = vector.shape_cast %319 : vector<8xf32> to vector<8x1xf32>
    %321 = vector.broadcast %320 : vector<8x1xf32> to vector<8x16xf32>
    %322 = arith.subf %318, %321 : vector<8x16xf32>
    %323 = math.exp %322 : vector<8x16xf32>
    %cst_87 = arith.constant dense<0.000000e+00> : vector<8xf32>
    %324 = vector.multi_reduction <add>, %323, %cst_87 [1] : vector<8x16xf32> to vector<8xf32>
    %325 = vector.shape_cast %324 : vector<8xf32> to vector<8x1xf32>
    %326 = tpu.reciprocal %325 {approx = true} : vector<8x1xf32> -> vector<8x1xf32>
    %327 = vector.broadcast %326 : vector<8x1xf32> to vector<8x16xf32>
    %328 = arith.mulf %323, %327 : vector<8x16xf32>
    %329 = arith.truncf %328 : vector<8x16xf32> to vector<8x16xbf16>
    %cst_88 = arith.constant dense<0.000000e+00> : vector<8x32xf32>
    %330 = tpu.matmul %329, %317, %cst_88 {dimension_numbers = #tpu.dot_dimension_numbers<[1], [0], [0], [1], [0, 0, 1, 1], [], []>} : vector<8x16xbf16>, vector<16x32xbf16>, vector<8x32xf32> -> vector<8x32xf32>
    %331 = arith.truncf %330 : vector<8x32xf32> to vector<8x32xbf16>
    %332 = vector.extract_strided_slice %32 {offsets = [32, 0], sizes = [32, 128], strides = [1, 1]} : vector<128x128xbf16> to vector<32x128xbf16>
    %cst_89 = arith.constant dense<0.000000e+00> : vector<8x128xf32>
    %333 = tpu.matmul %331, %332, %cst_89 {dimension_numbers = #tpu.dot_dimension_numbers<[1], [0], [0], [1], [0, 0, 1, 1], [], []>} : vector<8x32xbf16>, vector<32x128xbf16>, vector<8x128xf32> -> vector<8x128xf32>
    %334 = arith.addf %311, %333 : vector<8x128xf32>
    %335 = vector.extract_strided_slice %285 {offsets = [0, 64], sizes = [8, 32], strides = [1, 1]} : vector<8x128xf32> to vector<8x32xf32>
    %336 = arith.truncf %335 : vector<8x32xf32> to vector<8x32xbf16>
    %337 = vector.extract_strided_slice %286 {offsets = [0, 64], sizes = [16, 32], strides = [1, 1]} : vector<16x128xf32> to vector<16x32xf32>
    %338 = arith.truncf %337 : vector<16x32xf32> to vector<16x32xbf16>
    %339 = vector.extract_strided_slice %287 {offsets = [0, 64], sizes = [16, 32], strides = [1, 1]} : vector<16x128xf32> to vector<16x32xf32>
    %340 = arith.truncf %339 : vector<16x32xf32> to vector<16x32xbf16>
    %cst_90 = arith.constant dense<0.000000e+00> : vector<8x16xf32>
    %341 = tpu.matmul %336, %338, %cst_90 {dimension_numbers = #tpu.dot_dimension_numbers<[1], [1], [0], [0], [0, 0, 1, 0], [], []>} : vector<8x32xbf16>, vector<16x32xbf16>, vector<8x16xf32> -> vector<8x16xf32>
    %cst_91 = arith.constant dense<0xFF800000> : vector<8xf32>
    %342 = vector.multi_reduction <maximumf>, %341, %cst_91 [1] : vector<8x16xf32> to vector<8xf32>
    %343 = vector.shape_cast %342 : vector<8xf32> to vector<8x1xf32>
    %344 = vector.broadcast %343 : vector<8x1xf32> to vector<8x16xf32>
    %345 = arith.subf %341, %344 : vector<8x16xf32>
    %346 = math.exp %345 : vector<8x16xf32>
    %cst_92 = arith.constant dense<0.000000e+00> : vector<8xf32>
    %347 = vector.multi_reduction <add>, %346, %cst_92 [1] : vector<8x16xf32> to vector<8xf32>
    %348 = vector.shape_cast %347 : vector<8xf32> to vector<8x1xf32>
    %349 = tpu.reciprocal %348 {approx = true} : vector<8x1xf32> -> vector<8x1xf32>
    %350 = vector.broadcast %349 : vector<8x1xf32> to vector<8x16xf32>
    %351 = arith.mulf %346, %350 : vector<8x16xf32>
    %352 = arith.truncf %351 : vector<8x16xf32> to vector<8x16xbf16>
    %cst_93 = arith.constant dense<0.000000e+00> : vector<8x32xf32>
    %353 = tpu.matmul %352, %340, %cst_93 {dimension_numbers = #tpu.dot_dimension_numbers<[1], [0], [0], [1], [0, 0, 1, 1], [], []>} : vector<8x16xbf16>, vector<16x32xbf16>, vector<8x32xf32> -> vector<8x32xf32>
    %354 = arith.truncf %353 : vector<8x32xf32> to vector<8x32xbf16>
    %355 = vector.extract_strided_slice %32 {offsets = [64, 0], sizes = [32, 128], strides = [1, 1]} : vector<128x128xbf16> to vector<32x128xbf16>
    %cst_94 = arith.constant dense<0.000000e+00> : vector<8x128xf32>
    %356 = tpu.matmul %354, %355, %cst_94 {dimension_numbers = #tpu.dot_dimension_numbers<[1], [0], [0], [1], [0, 0, 1, 1], [], []>} : vector<8x32xbf16>, vector<32x128xbf16>, vector<8x128xf32> -> vector<8x128xf32>
    %357 = arith.addf %334, %356 : vector<8x128xf32>
    %358 = vector.extract_strided_slice %285 {offsets = [0, 96], sizes = [8, 32], strides = [1, 1]} : vector<8x128xf32> to vector<8x32xf32>
    %359 = arith.truncf %358 : vector<8x32xf32> to vector<8x32xbf16>
    %360 = vector.extract_strided_slice %286 {offsets = [0, 96], sizes = [16, 32], strides = [1, 1]} : vector<16x128xf32> to vector<16x32xf32>
    %361 = arith.truncf %360 : vector<16x32xf32> to vector<16x32xbf16>
    %362 = vector.extract_strided_slice %287 {offsets = [0, 96], sizes = [16, 32], strides = [1, 1]} : vector<16x128xf32> to vector<16x32xf32>
    %363 = arith.truncf %362 : vector<16x32xf32> to vector<16x32xbf16>
    %cst_95 = arith.constant dense<0.000000e+00> : vector<8x16xf32>
    %364 = tpu.matmul %359, %361, %cst_95 {dimension_numbers = #tpu.dot_dimension_numbers<[1], [1], [0], [0], [0, 0, 1, 0], [], []>} : vector<8x32xbf16>, vector<16x32xbf16>, vector<8x16xf32> -> vector<8x16xf32>
    %cst_96 = arith.constant dense<0xFF800000> : vector<8xf32>
    %365 = vector.multi_reduction <maximumf>, %364, %cst_96 [1] : vector<8x16xf32> to vector<8xf32>
    %366 = vector.shape_cast %365 : vector<8xf32> to vector<8x1xf32>
    %367 = vector.broadcast %366 : vector<8x1xf32> to vector<8x16xf32>
    %368 = arith.subf %364, %367 : vector<8x16xf32>
    %369 = math.exp %368 : vector<8x16xf32>
    %cst_97 = arith.constant dense<0.000000e+00> : vector<8xf32>
    %370 = vector.multi_reduction <add>, %369, %cst_97 [1] : vector<8x16xf32> to vector<8xf32>
    %371 = vector.shape_cast %370 : vector<8xf32> to vector<8x1xf32>
    %372 = tpu.reciprocal %371 {approx = true} : vector<8x1xf32> -> vector<8x1xf32>
    %373 = vector.broadcast %372 : vector<8x1xf32> to vector<8x16xf32>
    %374 = arith.mulf %369, %373 : vector<8x16xf32>
    %375 = arith.truncf %374 : vector<8x16xf32> to vector<8x16xbf16>
    %cst_98 = arith.constant dense<0.000000e+00> : vector<8x32xf32>
    %376 = tpu.matmul %375, %363, %cst_98 {dimension_numbers = #tpu.dot_dimension_numbers<[1], [0], [0], [1], [0, 0, 1, 1], [], []>} : vector<8x16xbf16>, vector<16x32xbf16>, vector<8x32xf32> -> vector<8x32xf32>
    %377 = arith.truncf %376 : vector<8x32xf32> to vector<8x32xbf16>
    %378 = vector.extract_strided_slice %32 {offsets = [96, 0], sizes = [32, 128], strides = [1, 1]} : vector<128x128xbf16> to vector<32x128xbf16>
    %cst_99 = arith.constant dense<0.000000e+00> : vector<8x128xf32>
    %379 = tpu.matmul %377, %378, %cst_99 {dimension_numbers = #tpu.dot_dimension_numbers<[1], [0], [0], [1], [0, 0, 1, 1], [], []>} : vector<8x32xbf16>, vector<32x128xbf16>, vector<8x128xf32> -> vector<8x128xf32>
    %380 = arith.addf %357, %379 : vector<8x128xf32>
    %381 = vector.extract_strided_slice %275 {offsets = [8, 0], sizes = [8, 128], strides = [1, 1]} : vector<16x128xf32> to vector<8x128xf32>
    %382 = vector.extract_strided_slice %280 {offsets = [16, 0], sizes = [16, 128], strides = [1, 1]} : vector<32x128xf32> to vector<16x128xf32>
    %383 = vector.extract_strided_slice %284 {offsets = [16, 0], sizes = [16, 128], strides = [1, 1]} : vector<32x128xf32> to vector<16x128xf32>
    %cst_100 = arith.constant 0.000000e+00 : f32
    %384 = vector.broadcast %cst_100 : f32 to vector<8x128xf32>
    %385 = vector.extract_strided_slice %381 {offsets = [0, 0], sizes = [8, 32], strides = [1, 1]} : vector<8x128xf32> to vector<8x32xf32>
    %386 = arith.truncf %385 : vector<8x32xf32> to vector<8x32xbf16>
    %387 = vector.extract_strided_slice %382 {offsets = [0, 0], sizes = [16, 32], strides = [1, 1]} : vector<16x128xf32> to vector<16x32xf32>
    %388 = arith.truncf %387 : vector<16x32xf32> to vector<16x32xbf16>
    %389 = vector.extract_strided_slice %383 {offsets = [0, 0], sizes = [16, 32], strides = [1, 1]} : vector<16x128xf32> to vector<16x32xf32>
    %390 = arith.truncf %389 : vector<16x32xf32> to vector<16x32xbf16>
    %cst_101 = arith.constant dense<0.000000e+00> : vector<8x16xf32>
    %391 = tpu.matmul %386, %388, %cst_101 {dimension_numbers = #tpu.dot_dimension_numbers<[1], [1], [0], [0], [0, 0, 1, 0], [], []>} : vector<8x32xbf16>, vector<16x32xbf16>, vector<8x16xf32> -> vector<8x16xf32>
    %cst_102 = arith.constant dense<0xFF800000> : vector<8xf32>
    %392 = vector.multi_reduction <maximumf>, %391, %cst_102 [1] : vector<8x16xf32> to vector<8xf32>
    %393 = vector.shape_cast %392 : vector<8xf32> to vector<8x1xf32>
    %394 = vector.broadcast %393 : vector<8x1xf32> to vector<8x16xf32>
    %395 = arith.subf %391, %394 : vector<8x16xf32>
    %396 = math.exp %395 : vector<8x16xf32>
    %cst_103 = arith.constant dense<0.000000e+00> : vector<8xf32>
    %397 = vector.multi_reduction <add>, %396, %cst_103 [1] : vector<8x16xf32> to vector<8xf32>
    %398 = vector.shape_cast %397 : vector<8xf32> to vector<8x1xf32>
    %399 = tpu.reciprocal %398 {approx = true} : vector<8x1xf32> -> vector<8x1xf32>
    %400 = vector.broadcast %399 : vector<8x1xf32> to vector<8x16xf32>
    %401 = arith.mulf %396, %400 : vector<8x16xf32>
    %402 = arith.truncf %401 : vector<8x16xf32> to vector<8x16xbf16>
    %cst_104 = arith.constant dense<0.000000e+00> : vector<8x32xf32>
    %403 = tpu.matmul %402, %390, %cst_104 {dimension_numbers = #tpu.dot_dimension_numbers<[1], [0], [0], [1], [0, 0, 1, 1], [], []>} : vector<8x16xbf16>, vector<16x32xbf16>, vector<8x32xf32> -> vector<8x32xf32>
    %404 = arith.truncf %403 : vector<8x32xf32> to vector<8x32xbf16>
    %405 = vector.extract_strided_slice %32 {offsets = [0, 0], sizes = [32, 128], strides = [1, 1]} : vector<128x128xbf16> to vector<32x128xbf16>
    %cst_105 = arith.constant dense<0.000000e+00> : vector<8x128xf32>
    %406 = tpu.matmul %404, %405, %cst_105 {dimension_numbers = #tpu.dot_dimension_numbers<[1], [0], [0], [1], [0, 0, 1, 1], [], []>} : vector<8x32xbf16>, vector<32x128xbf16>, vector<8x128xf32> -> vector<8x128xf32>
    %407 = arith.addf %384, %406 : vector<8x128xf32>
    %408 = vector.extract_strided_slice %381 {offsets = [0, 32], sizes = [8, 32], strides = [1, 1]} : vector<8x128xf32> to vector<8x32xf32>
    %409 = arith.truncf %408 : vector<8x32xf32> to vector<8x32xbf16>
    %410 = vector.extract_strided_slice %382 {offsets = [0, 32], sizes = [16, 32], strides = [1, 1]} : vector<16x128xf32> to vector<16x32xf32>
    %411 = arith.truncf %410 : vector<16x32xf32> to vector<16x32xbf16>
    %412 = vector.extract_strided_slice %383 {offsets = [0, 32], sizes = [16, 32], strides = [1, 1]} : vector<16x128xf32> to vector<16x32xf32>
    %413 = arith.truncf %412 : vector<16x32xf32> to vector<16x32xbf16>
    %cst_106 = arith.constant dense<0.000000e+00> : vector<8x16xf32>
    %414 = tpu.matmul %409, %411, %cst_106 {dimension_numbers = #tpu.dot_dimension_numbers<[1], [1], [0], [0], [0, 0, 1, 0], [], []>} : vector<8x32xbf16>, vector<16x32xbf16>, vector<8x16xf32> -> vector<8x16xf32>
    %cst_107 = arith.constant dense<0xFF800000> : vector<8xf32>
    %415 = vector.multi_reduction <maximumf>, %414, %cst_107 [1] : vector<8x16xf32> to vector<8xf32>
    %416 = vector.shape_cast %415 : vector<8xf32> to vector<8x1xf32>
    %417 = vector.broadcast %416 : vector<8x1xf32> to vector<8x16xf32>
    %418 = arith.subf %414, %417 : vector<8x16xf32>
    %419 = math.exp %418 : vector<8x16xf32>
    %cst_108 = arith.constant dense<0.000000e+00> : vector<8xf32>
    %420 = vector.multi_reduction <add>, %419, %cst_108 [1] : vector<8x16xf32> to vector<8xf32>
    %421 = vector.shape_cast %420 : vector<8xf32> to vector<8x1xf32>
    %422 = tpu.reciprocal %421 {approx = true} : vector<8x1xf32> -> vector<8x1xf32>
    %423 = vector.broadcast %422 : vector<8x1xf32> to vector<8x16xf32>
    %424 = arith.mulf %419, %423 : vector<8x16xf32>
    %425 = arith.truncf %424 : vector<8x16xf32> to vector<8x16xbf16>
    %cst_109 = arith.constant dense<0.000000e+00> : vector<8x32xf32>
    %426 = tpu.matmul %425, %413, %cst_109 {dimension_numbers = #tpu.dot_dimension_numbers<[1], [0], [0], [1], [0, 0, 1, 1], [], []>} : vector<8x16xbf16>, vector<16x32xbf16>, vector<8x32xf32> -> vector<8x32xf32>
    %427 = arith.truncf %426 : vector<8x32xf32> to vector<8x32xbf16>
    %428 = vector.extract_strided_slice %32 {offsets = [32, 0], sizes = [32, 128], strides = [1, 1]} : vector<128x128xbf16> to vector<32x128xbf16>
    %cst_110 = arith.constant dense<0.000000e+00> : vector<8x128xf32>
    %429 = tpu.matmul %427, %428, %cst_110 {dimension_numbers = #tpu.dot_dimension_numbers<[1], [0], [0], [1], [0, 0, 1, 1], [], []>} : vector<8x32xbf16>, vector<32x128xbf16>, vector<8x128xf32> -> vector<8x128xf32>
    %430 = arith.addf %407, %429 : vector<8x128xf32>
    %431 = vector.extract_strided_slice %381 {offsets = [0, 64], sizes = [8, 32], strides = [1, 1]} : vector<8x128xf32> to vector<8x32xf32>
    %432 = arith.truncf %431 : vector<8x32xf32> to vector<8x32xbf16>
    %433 = vector.extract_strided_slice %382 {offsets = [0, 64], sizes = [16, 32], strides = [1, 1]} : vector<16x128xf32> to vector<16x32xf32>
    %434 = arith.truncf %433 : vector<16x32xf32> to vector<16x32xbf16>
    %435 = vector.extract_strided_slice %383 {offsets = [0, 64], sizes = [16, 32], strides = [1, 1]} : vector<16x128xf32> to vector<16x32xf32>
    %436 = arith.truncf %435 : vector<16x32xf32> to vector<16x32xbf16>
    %cst_111 = arith.constant dense<0.000000e+00> : vector<8x16xf32>
    %437 = tpu.matmul %432, %434, %cst_111 {dimension_numbers = #tpu.dot_dimension_numbers<[1], [1], [0], [0], [0, 0, 1, 0], [], []>} : vector<8x32xbf16>, vector<16x32xbf16>, vector<8x16xf32> -> vector<8x16xf32>
    %cst_112 = arith.constant dense<0xFF800000> : vector<8xf32>
    %438 = vector.multi_reduction <maximumf>, %437, %cst_112 [1] : vector<8x16xf32> to vector<8xf32>
    %439 = vector.shape_cast %438 : vector<8xf32> to vector<8x1xf32>
    %440 = vector.broadcast %439 : vector<8x1xf32> to vector<8x16xf32>
    %441 = arith.subf %437, %440 : vector<8x16xf32>
    %442 = math.exp %441 : vector<8x16xf32>
    %cst_113 = arith.constant dense<0.000000e+00> : vector<8xf32>
    %443 = vector.multi_reduction <add>, %442, %cst_113 [1] : vector<8x16xf32> to vector<8xf32>
    %444 = vector.shape_cast %443 : vector<8xf32> to vector<8x1xf32>
    %445 = tpu.reciprocal %444 {approx = true} : vector<8x1xf32> -> vector<8x1xf32>
    %446 = vector.broadcast %445 : vector<8x1xf32> to vector<8x16xf32>
    %447 = arith.mulf %442, %446 : vector<8x16xf32>
    %448 = arith.truncf %447 : vector<8x16xf32> to vector<8x16xbf16>
    %cst_114 = arith.constant dense<0.000000e+00> : vector<8x32xf32>
    %449 = tpu.matmul %448, %436, %cst_114 {dimension_numbers = #tpu.dot_dimension_numbers<[1], [0], [0], [1], [0, 0, 1, 1], [], []>} : vector<8x16xbf16>, vector<16x32xbf16>, vector<8x32xf32> -> vector<8x32xf32>
    %450 = arith.truncf %449 : vector<8x32xf32> to vector<8x32xbf16>
    %451 = vector.extract_strided_slice %32 {offsets = [64, 0], sizes = [32, 128], strides = [1, 1]} : vector<128x128xbf16> to vector<32x128xbf16>
    %cst_115 = arith.constant dense<0.000000e+00> : vector<8x128xf32>
    %452 = tpu.matmul %450, %451, %cst_115 {dimension_numbers = #tpu.dot_dimension_numbers<[1], [0], [0], [1], [0, 0, 1, 1], [], []>} : vector<8x32xbf16>, vector<32x128xbf16>, vector<8x128xf32> -> vector<8x128xf32>
    %453 = arith.addf %430, %452 : vector<8x128xf32>
    %454 = vector.extract_strided_slice %381 {offsets = [0, 96], sizes = [8, 32], strides = [1, 1]} : vector<8x128xf32> to vector<8x32xf32>
    %455 = arith.truncf %454 : vector<8x32xf32> to vector<8x32xbf16>
    %456 = vector.extract_strided_slice %382 {offsets = [0, 96], sizes = [16, 32], strides = [1, 1]} : vector<16x128xf32> to vector<16x32xf32>
    %457 = arith.truncf %456 : vector<16x32xf32> to vector<16x32xbf16>
    %458 = vector.extract_strided_slice %383 {offsets = [0, 96], sizes = [16, 32], strides = [1, 1]} : vector<16x128xf32> to vector<16x32xf32>
    %459 = arith.truncf %458 : vector<16x32xf32> to vector<16x32xbf16>
    %cst_116 = arith.constant dense<0.000000e+00> : vector<8x16xf32>
    %460 = tpu.matmul %455, %457, %cst_116 {dimension_numbers = #tpu.dot_dimension_numbers<[1], [1], [0], [0], [0, 0, 1, 0], [], []>} : vector<8x32xbf16>, vector<16x32xbf16>, vector<8x16xf32> -> vector<8x16xf32>
    %cst_117 = arith.constant dense<0xFF800000> : vector<8xf32>
    %461 = vector.multi_reduction <maximumf>, %460, %cst_117 [1] : vector<8x16xf32> to vector<8xf32>
    %462 = vector.shape_cast %461 : vector<8xf32> to vector<8x1xf32>
    %463 = vector.broadcast %462 : vector<8x1xf32> to vector<8x16xf32>
    %464 = arith.subf %460, %463 : vector<8x16xf32>
    %465 = math.exp %464 : vector<8x16xf32>
    %cst_118 = arith.constant dense<0.000000e+00> : vector<8xf32>
    %466 = vector.multi_reduction <add>, %465, %cst_118 [1] : vector<8x16xf32> to vector<8xf32>
    %467 = vector.shape_cast %466 : vector<8xf32> to vector<8x1xf32>
    %468 = tpu.reciprocal %467 {approx = true} : vector<8x1xf32> -> vector<8x1xf32>
    %469 = vector.broadcast %468 : vector<8x1xf32> to vector<8x16xf32>
    %470 = arith.mulf %465, %469 : vector<8x16xf32>
    %471 = arith.truncf %470 : vector<8x16xf32> to vector<8x16xbf16>
    %cst_119 = arith.constant dense<0.000000e+00> : vector<8x32xf32>
    %472 = tpu.matmul %471, %459, %cst_119 {dimension_numbers = #tpu.dot_dimension_numbers<[1], [0], [0], [1], [0, 0, 1, 1], [], []>} : vector<8x16xbf16>, vector<16x32xbf16>, vector<8x32xf32> -> vector<8x32xf32>
    %473 = arith.truncf %472 : vector<8x32xf32> to vector<8x32xbf16>
    %474 = vector.extract_strided_slice %32 {offsets = [96, 0], sizes = [32, 128], strides = [1, 1]} : vector<128x128xbf16> to vector<32x128xbf16>
    %cst_120 = arith.constant dense<0.000000e+00> : vector<8x128xf32>
    %475 = tpu.matmul %473, %474, %cst_120 {dimension_numbers = #tpu.dot_dimension_numbers<[1], [0], [0], [1], [0, 0, 1, 1], [], []>} : vector<8x32xbf16>, vector<32x128xbf16>, vector<8x128xf32> -> vector<8x128xf32>
    %476 = arith.addf %453, %475 : vector<8x128xf32>
    %477 = tpu.concatenate %380, %476 in 0 : vector<8x128xf32>, vector<8x128xf32> -> vector<16x128xf32>
    %478 = vector.broadcast %9 : vector<1x128xf32> to vector<16x128xf32>
    %479 = arith.addf %477, %478 : vector<16x128xf32>
    %480 = arith.addf %270, %479 : vector<16x128xf32>
    %cst_121 = arith.constant dense<0.000000e+00> : vector<16xf32>
    %481 = vector.multi_reduction <add>, %480, %cst_121 [1] : vector<16x128xf32> to vector<16xf32>
    %482 = vector.shape_cast %481 : vector<16xf32> to vector<16x1xf32>
    %cst_122 = arith.constant 1.280000e+02 : f32
    %483 = vector.broadcast %cst_122 : f32 to vector<16x1xf32>
    %484 = arith.divf %482, %483 : vector<16x1xf32>
    %485 = vector.broadcast %484 : vector<16x1xf32> to vector<16x128xf32>
    %486 = arith.subf %480, %485 : vector<16x128xf32>
    %487 = arith.mulf %486, %486 : vector<16x128xf32>
    %cst_123 = arith.constant dense<0.000000e+00> : vector<16xf32>
    %488 = vector.multi_reduction <add>, %487, %cst_123 [1] : vector<16x128xf32> to vector<16xf32>
    %489 = vector.shape_cast %488 : vector<16xf32> to vector<16x1xf32>
    %cst_124 = arith.constant 1.280000e+02 : f32
    %490 = vector.broadcast %cst_124 : f32 to vector<16x1xf32>
    %491 = arith.divf %489, %490 : vector<16x1xf32>
    %492 = vector.broadcast %484 : vector<16x1xf32> to vector<16x128xf32>
    %493 = arith.subf %480, %492 : vector<16x128xf32>
    %cst_125 = arith.constant 9.99999974E-6 : f32
    %494 = vector.broadcast %cst_125 : f32 to vector<16x1xf32>
    %495 = arith.addf %491, %494 : vector<16x1xf32>
    %496 = math.rsqrt %495 : vector<16x1xf32>
    %497 = vector.broadcast %496 : vector<16x1xf32> to vector<16x128xf32>
    %498 = arith.mulf %493, %497 : vector<16x128xf32>
    %499 = vector.broadcast %12 : vector<1x128xf32> to vector<16x128xf32>
    %500 = arith.mulf %498, %499 : vector<16x128xf32>
    %501 = vector.broadcast %13 : vector<1x128xf32> to vector<16x128xf32>
    %502 = arith.addf %500, %501 : vector<16x128xf32>
    %c0_126 = arith.constant 0 : index
    %c0_127 = arith.constant 0 : index
    %503 = vector.load %arg7[%c0_126, %c0_127] : memref<128x768xbf16, #tpu.memory_space<vmem>>, vector<128x768xbf16>
    %504 = arith.truncf %502 : vector<16x128xf32> to vector<16x128xbf16>
    %cst_128 = arith.constant dense<0.000000e+00> : vector<16x768xf32>
    %505 = tpu.matmul %504, %503, %cst_128 {dimension_numbers = #tpu.dot_dimension_numbers<[1], [0], [0], [1], [0, 0, 1, 1], [], []>} : vector<16x128xbf16>, vector<128x768xbf16>, vector<16x768xf32> -> vector<16x768xf32>
    %506 = vector.extract_strided_slice %505 {offsets = [0, 0], sizes = [16, 384], strides = [1, 1]} : vector<16x768xf32> to vector<16x384xf32>
    %507 = vector.broadcast %17 : vector<1x384xf32> to vector<16x384xf32>
    %508 = arith.addf %506, %507 : vector<16x384xf32>
    %509 = vector.extract_strided_slice %505 {offsets = [0, 384], sizes = [16, 384], strides = [1, 1]} : vector<16x768xf32> to vector<16x384xf32>
    %510 = vector.broadcast %18 : vector<1x384xf32> to vector<16x384xf32>
    %511 = arith.addf %509, %510 : vector<16x384xf32>
    %512 = arith.negf %508 : vector<16x384xf32>
    %513 = math.exp %512 : vector<16x384xf32>
    %cst_129 = arith.constant 1.000000e+00 : f32
    %514 = vector.broadcast %cst_129 : f32 to vector<16x384xf32>
    %515 = arith.addf %514, %513 : vector<16x384xf32>
    %516 = arith.divf %514, %515 : vector<16x384xf32>
    %517 = arith.mulf %508, %516 : vector<16x384xf32>
    %518 = arith.mulf %517, %511 : vector<16x384xf32>
    %519 = tpu.iota {dimensions = array<i32: 1>} : vector<16x384xi32>
    %c341_i32 = arith.constant 341 : i32
    %520 = vector.broadcast %c341_i32 : i32 to vector<16x384xi32>
    %521 = arith.cmpi slt, %519, %520 : vector<16x384xi32>
    %522 = arith.extui %521 : vector<16x384xi1> to vector<16x384xi32>
    %523 = arith.sitofp %522 : vector<16x384xi32> to vector<16x384xf32>
    %524 = arith.mulf %518, %523 : vector<16x384xf32>
    %cst_130 = arith.constant dense<0.000000e+00> : vector<16xf32>
    %525 = vector.multi_reduction <add>, %524, %cst_130 [1] : vector<16x384xf32> to vector<16xf32>
    %526 = vector.shape_cast %525 : vector<16xf32> to vector<16x1xf32>
    %cst_131 = arith.constant 0.00293255132 : f32
    %527 = vector.broadcast %cst_131 : f32 to vector<16x1xf32>
    %528 = arith.mulf %526, %527 : vector<16x1xf32>
    %529 = vector.broadcast %528 : vector<16x1xf32> to vector<16x384xf32>
    %530 = arith.subf %524, %529 : vector<16x384xf32>
    %531 = arith.mulf %530, %523 : vector<16x384xf32>
    %532 = arith.mulf %531, %531 : vector<16x384xf32>
    %cst_132 = arith.constant dense<0.000000e+00> : vector<16xf32>
    %533 = vector.multi_reduction <add>, %532, %cst_132 [1] : vector<16x384xf32> to vector<16xf32>
    %534 = vector.shape_cast %533 : vector<16xf32> to vector<16x1xf32>
    %cst_133 = arith.constant 0.00293255132 : f32
    %535 = vector.broadcast %cst_133 : f32 to vector<16x1xf32>
    %536 = arith.mulf %534, %535 : vector<16x1xf32>
    %cst_134 = arith.constant 9.99999974E-6 : f32
    %537 = vector.broadcast %cst_134 : f32 to vector<16x1xf32>
    %538 = arith.addf %536, %537 : vector<16x1xf32>
    %539 = math.rsqrt %538 : vector<16x1xf32>
    %540 = vector.broadcast %539 : vector<16x1xf32> to vector<16x384xf32>
    %541 = arith.mulf %531, %540 : vector<16x384xf32>
    %542 = vector.broadcast %19 : vector<1x384xf32> to vector<16x384xf32>
    %543 = arith.mulf %541, %542 : vector<16x384xf32>
    %544 = vector.broadcast %20 : vector<1x384xf32> to vector<16x384xf32>
    %545 = arith.addf %543, %544 : vector<16x384xf32>
    %c0_135 = arith.constant 0 : index
    %c0_136 = arith.constant 0 : index
    %546 = vector.load %arg8[%c0_135, %c0_136] : memref<384x128xbf16, #tpu.memory_space<vmem>>, vector<384x128xbf16>
    %547 = arith.truncf %545 : vector<16x384xf32> to vector<16x384xbf16>
    %cst_137 = arith.constant dense<0.000000e+00> : vector<16x128xf32>
    %548 = tpu.matmul %547, %546, %cst_137 {dimension_numbers = #tpu.dot_dimension_numbers<[1], [0], [0], [1], [0, 0, 1, 1], [], []>} : vector<16x384xbf16>, vector<384x128xbf16>, vector<16x128xf32> -> vector<16x128xf32>
    %549 = vector.broadcast %16 : vector<1x128xf32> to vector<16x128xf32>
    %550 = arith.addf %548, %549 : vector<16x128xf32>
    %551 = arith.addf %480, %550 : vector<16x128xf32>
    %cst_138 = arith.constant dense<0.000000e+00> : vector<16xf32>
    %552 = vector.multi_reduction <add>, %551, %cst_138 [1] : vector<16x128xf32> to vector<16xf32>
    %553 = vector.shape_cast %552 : vector<16xf32> to vector<16x1xf32>
    %cst_139 = arith.constant 1.280000e+02 : f32
    %554 = vector.broadcast %cst_139 : f32 to vector<16x1xf32>
    %555 = arith.divf %553, %554 : vector<16x1xf32>
    %556 = vector.broadcast %555 : vector<16x1xf32> to vector<16x128xf32>
    %557 = arith.subf %551, %556 : vector<16x128xf32>
    %558 = arith.mulf %557, %557 : vector<16x128xf32>
    %cst_140 = arith.constant dense<0.000000e+00> : vector<16xf32>
    %559 = vector.multi_reduction <add>, %558, %cst_140 [1] : vector<16x128xf32> to vector<16xf32>
    %560 = vector.shape_cast %559 : vector<16xf32> to vector<16x1xf32>
    %cst_141 = arith.constant 1.280000e+02 : f32
    %561 = vector.broadcast %cst_141 : f32 to vector<16x1xf32>
    %562 = arith.divf %560, %561 : vector<16x1xf32>
    %563 = vector.broadcast %555 : vector<16x1xf32> to vector<16x128xf32>
    %564 = arith.subf %551, %563 : vector<16x128xf32>
    %cst_142 = arith.constant 9.99999974E-6 : f32
    %565 = vector.broadcast %cst_142 : f32 to vector<16x1xf32>
    %566 = arith.addf %562, %565 : vector<16x1xf32>
    %567 = math.rsqrt %566 : vector<16x1xf32>
    %568 = vector.broadcast %567 : vector<16x1xf32> to vector<16x128xf32>
    %569 = arith.mulf %564, %568 : vector<16x128xf32>
    %570 = vector.broadcast %14 : vector<1x128xf32> to vector<16x128xf32>
    %571 = arith.mulf %569, %570 : vector<16x128xf32>
    %572 = vector.broadcast %15 : vector<1x128xf32> to vector<16x128xf32>
    %573 = arith.addf %571, %572 : vector<16x128xf32>
    %c0_143 = arith.constant 0 : index
    %c0_144 = arith.constant 0 : index
    %574 = vector.load %arg11[%c0_143, %c0_144] : memref<16x128xf32, #tpu.memory_space<vmem>>, vector<16x128xf32>
    tpu.vector_store %arg11[%c0_143, %c0_144], %573 {strides = array<i32>} : memref<16x128xf32, #tpu.memory_space<vmem>>, vector<16x128xf32>,
    return
  }
}

</mosaic_0001>

<bundles_post_ra>
// kernel: tpu_custom_call.1
= control target key start
LH: loop header
LB: loop body
LE: loop exit
PB: predicated region body
PF: predicated region fallthrough
CT: control target
= control target key end

     0   :  { %16 = vsyncpa [#allocation3], 0  ;;  %s6774_s0 = inlined_call_operand.hbm [shape: f32[16,128], index: 0, kind: input, shape index: {}]   ;;  %s6775_s1 = inlined_call_operand.hbm [shape: f32[32,128], index: 1, kind: input, shape index: {}]   ;;  %s6776_s2 = inlined_call_operand.hbm [shape: f32[32,128], index: 2, kind: input, shape index: {}]   ;;  %s6777_s3 = inlined_call_operand.hbm [shape: f32[16,128], index: 3, kind: input, shape index: {}]   ;;  %s6778_s4 = inlined_call_operand.hbm [shape: f32[32,128], index: 4, kind: input, shape index: {}]   ;;  %s6779_s5 = inlined_call_operand.hbm [shape: bf16[128,256], index: 5, kind: input, shape index: {}]   ;;  %s6780_s6 = inlined_call_operand.hbm [shape: bf16[6,128,128], index: 6, kind: input, shape index: {}]   ;;  %s6781_s7 = inlined_call_operand.hbm [shape: bf16[128,768], index: 7, kind: input, shape index: {}]   ;;  %s6782_s8 = inlined_call_operand.hbm [shape: bf16[384,128], index: 8, kind: input, shape index: {}]   ;;  %s6783_s9 = inlined_call_operand.vmem [shape: f32[16,128], index: 9, kind: input, shape index: {}]   ;;  %s6784_s10 = inlined_call_operand.vmem [shape: f32[4,384], index: 10, kind: input, shape index: {}]   ;;  %s6785_s11 = inlined_call_operand.hbm [shape: f32[16,128], index: 11, kind: output, shape index: {}]  }
   0x1   :  { %17 = vsyncpa [#allocation6], 0 }
   0x2   :  { %18 = vsyncpa [#allocation9], 0 }
   0x3   :  { %19 = vsyncpa [#allocation12], 0 }
   0x4   :  { %20 = vsyncpa [#allocation15], 0 }
   0x5   :  { %21 = vsyncpa [#allocation4], 0  ;;  %s5808_s17 = smov [#allocation5]   ;;  %s5809_s19 = smov [#allocation8]  }
   0x6   :  { %s39_s18 = sshll.u32 %s5808_s17, 4  ;;  %s63_s20 = sshll.u32 %s5809_s19, 4  ;;  %s40_s18 = int_to_ptr.vmem [resolvable:$true] %s39_s18  ;;  %s5889_s20 = int_to_ptr.vmem [resolvable:$true] %s63_s20 }
   0x7   :  { %s5576_s23 = scalar_lea.hbm %s6775_s1, 512 }
   0x8   :  { %p5577_p0 = scmp.ne.s32.totalorder %s6775_s1, %s5576_s23  ;;  %p5580_p1 = scmp.lt.u32.totalorder %s5576_s23, %s6775_s1 }
   0xa   :  { %p5582_p2 = pnand %p5580_p1, %p5577_p0 }
   0xc   :  { %5585 = shalt.err (!%p5582_p2)
}
   0xd   :  { %s5586_s28 = scalar_lea.vmem %s40_s18, 512  ;;  %p5591_p4 = scmp.lt.s32.totalorder %s40_s18, %s40_s18 }
   0xe   :  { %p5587_p3 = scmp.ne.s32.totalorder %s40_s18, %s5586_s28  ;;  %p5592_p5 = scmp.lt.s32.totalorder %s5586_s28, %s5586_s28 }
  0x10   :  { %p5593_p6 = por %p5592_p5, %p5591_p4 }
  0x12   :  { %p5594_p7 = pnand %p5593_p6, %p5587_p3 }
  0x14   :  { %5597 = shalt.err (!%p5594_p7)
}
  0x15   :  { %s5810_s29 = smov 128   ;;  %s5811_s30 = smov 8  }
  0x16   :  { %45 = dma.hbm_to_vmem [thread:$0]  %s6775_s1, 512, %s40_s18, [#allocation6], %s5810_s29, %s5810_s29, %s5811_s30  }
  0x17   :  { %s5598_s16 = scalar_lea.hbm %s6777_s3, 256 }
  0x18   :  { %p5599_p8 = scmp.ne.s32.totalorder %s6777_s3, %s5598_s16  ;;  %p5602_p9 = scmp.lt.u32.totalorder %s5598_s16, %s6777_s3 }
  0x1a   :  { %p5604_p10 = pnand %p5602_p9, %p5599_p8 }
  0x1c   :  { %5607 = shalt.err (!%p5604_p10)
}
  0x1d   :  { %s5608_s23 = scalar_lea.vmem %s5889_s20, 256  ;;  %p5613_p12 = scmp.lt.s32.totalorder %s5889_s20, %s5889_s20 }
  0x1e   :  { %p5609_p11 = scmp.ne.s32.totalorder %s5889_s20, %s5608_s23  ;;  %p5614_p13 = scmp.lt.s32.totalorder %s5608_s23, %s5608_s23 }
  0x20   :  { %p5615_p0 = por %p5614_p13, %p5613_p12 }
  0x22   :  { %p5616_p1 = pnand %p5615_p0, %p5609_p11 }
  0x24   :  { %5619 = shalt.err (!%p5616_p1)
}
  0x25   :  { %69 = dma.hbm_to_vmem [thread:$0]  %s6777_s3, 256, %s5889_s20, [#allocation9], %s5810_s29, %s5810_s29, %s5811_s30  }
  0x26   :  { %s5812_s24 = smov [#allocation11]   ;;  %s5813_s26 = smov [#allocation14]  }
  0x27   :  { %s87_s25 = sshll.u32 %s5812_s24, 4  ;;  %s111_s27 = sshll.u32 %s5813_s26, 4  ;;  %s88_s25 = int_to_ptr.vmem [resolvable:$true] %s87_s25  ;;  %s5926_s27 = int_to_ptr.vmem [resolvable:$true] %s111_s27 }
  0x28   :  { %s5620_s13 = scalar_lea.hbm %s6779_s5, 2048 }
  0x29   :  { %p5621_p2 = scmp.ne.s32.totalorder %s6779_s5, %s5620_s13  ;;  %p5624_p3 = scmp.lt.u32.totalorder %s5620_s13, %s6779_s5 }
  0x2b   :  { %p5626_p4 = pnand %p5624_p3, %p5621_p2 }
  0x2d   :  { %5629 = shalt.err (!%p5626_p4)
}
  0x2e   :  { %s5630_s3 = scalar_lea.vmem %s88_s25, 2048  ;;  %p5635_p6 = scmp.lt.s32.totalorder %s88_s25, %s88_s25 }
  0x2f   :  { %p5631_p5 = scmp.ne.s32.totalorder %s88_s25, %s5630_s3  ;;  %p5636_p7 = scmp.lt.s32.totalorder %s5630_s3, %s5630_s3 }
  0x31   :  { %p5637_p8 = por %p5636_p7, %p5635_p6 }
  0x33   :  { %p5638_p9 = pnand %p5637_p8, %p5631_p5 }
  0x35   :  { %5641 = shalt.err (!%p5638_p9)
}
  0x36   :  { %93 = dma.hbm_to_vmem [thread:$0]  %s6779_s5, 2048, %s88_s25, [#allocation12], %s5810_s29, %s5810_s29, %s5811_s30  }
  0x37   :  { %s5642_s23 = scalar_lea.hbm %s6781_s7, 6144 }
  0x38   :  { %p5643_p10 = scmp.ne.s32.totalorder %s6781_s7, %s5642_s23  ;;  %p5646_p11 = scmp.lt.u32.totalorder %s5642_s23, %s6781_s7 }
  0x3a   :  { %p5648_p12 = pnand %p5646_p11, %p5643_p10 }
  0x3c   :  { %5651 = shalt.err (!%p5648_p12)
}
  0x3d   :  { %s5652_s28 = scalar_lea.vmem %s5926_s27, 6144  ;;  %p5657_p0 = scmp.lt.s32.totalorder %s5926_s27, %s5926_s27 }
  0x3e   :  { %p5653_p13 = scmp.ne.s32.totalorder %s5926_s27, %s5652_s28  ;;  %p5658_p1 = scmp.lt.s32.totalorder %s5652_s28, %s5652_s28 }
  0x40   :  { %p5659_p2 = por %p5658_p1, %p5657_p0 }
  0x42   :  { %p5660_p3 = pnand %p5659_p2, %p5653_p13 }
  0x44   :  { %5663 = shalt.err (!%p5660_p3)
}
  0x45   :  { %s5814_s5 = smov 384   ;;  %s5815_s25 = smov 24  }
  0x46   :  { %117 = dma.hbm_to_vmem [thread:$0]  %s6781_s7, 6144, %s5926_s27, [#allocation15], %s5814_s5, %s5814_s5, %s5815_s25  }
  0x47   :  { %s5816_s14 = smov [#allocation2]   ;;  %s5817_s16 = smov [#allocation7]  }
  0x48   :  { %s27_s15 = sshll.u32 %s5816_s14, 4  ;;  %s51_s17 = sshll.u32 %s5817_s16, 4  ;;  %s28_s15 = int_to_ptr.vmem [resolvable:$true] %s27_s15  ;;  %s5960_s17 = int_to_ptr.vmem [resolvable:$true] %s51_s17 }
  0x49   :  { %s5664_s19 = scalar_lea.hbm %s6774_s0, 256 }
  0x4a   :  { %p5665_p4 = scmp.ne.s32.totalorder %s6774_s0, %s5664_s19  ;;  %p5668_p5 = scmp.lt.u32.totalorder %s5664_s19, %s6774_s0 }
  0x4c   :  { %p5670_p6 = pnand %p5668_p5, %p5665_p4 }
  0x4e   :  { %5673 = shalt.err (!%p5670_p6)
}
  0x4f   :  { %s5674_s7 = scalar_lea.vmem %s28_s15, 256  ;;  %p5679_p8 = scmp.lt.s32.totalorder %s28_s15, %s28_s15 }
  0x50   :  { %p5675_p7 = scmp.ne.s32.totalorder %s28_s15, %s5674_s7  ;;  %p5680_p9 = scmp.lt.s32.totalorder %s5674_s7, %s5674_s7 }
  0x52   :  { %p5681_p10 = por %p5680_p9, %p5679_p8 }
  0x54   :  { %p5682_p11 = pnand %p5681_p10, %p5675_p7 }
  0x56   :  { %5685 = shalt.err (!%p5682_p11)
}
  0x57   :  { %33 = dma.hbm_to_vmem [thread:$0]  %s6774_s0, 256, %s28_s15, [#allocation3], %s5810_s29, %s5810_s29, %s5811_s30  }
  0x58   :  { %s5686_s28 = scalar_lea.hbm %s6776_s2, 512 }
  0x59   :  { %p5687_p12 = scmp.ne.s32.totalorder %s6776_s2, %s5686_s28  ;;  %p5690_p13 = scmp.lt.u32.totalorder %s5686_s28, %s6776_s2 }
  0x5b   :  { %p5692_p0 = pnand %p5690_p13, %p5687_p12 }
  0x5d   :  { %5695 = shalt.err (!%p5692_p0)
}
  0x5e   :  { %s5696_s14 = scalar_lea.vmem %s5960_s17, 512  ;;  %p5701_p2 = scmp.lt.s32.totalorder %s5960_s17, %s5960_s17 }
  0x5f   :  { %p5697_p1 = scmp.ne.s32.totalorder %s5960_s17, %s5696_s14  ;;  %p5702_p3 = scmp.lt.s32.totalorder %s5696_s14, %s5696_s14 }
  0x61   :  { %p5703_p4 = por %p5702_p3, %p5701_p2 }
  0x63   :  { %p5704_p5 = pnand %p5703_p4, %p5697_p1 }
  0x65   :  { %5707 = shalt.err (!%p5704_p5)
}
  0x66   :  { %57 = dma.hbm_to_vmem [thread:$0]  %s6776_s2, 512, %s5960_s17, [#allocation6], %s5810_s29, %s5810_s29, %s5811_s30  }
  0x67   :  { %s5818_s16 = smov [#allocation10]   ;;  %s5819_s20 = smov [#allocation13]  }
  0x68   :  { %s75_s3 = sshll.u32 %s5818_s16, 4  ;;  %s99_s19 = sshll.u32 %s5819_s20, 4  ;;  %s76_s3 = int_to_ptr.vmem [resolvable:$true] %s75_s3  ;;  %s5997_s19 = int_to_ptr.vmem [resolvable:$true] %s99_s19 }
  0x69   :  { %s5708_s23 = scalar_lea.hbm %s6778_s4, 512 }
  0x6a   :  { %p5709_p6 = scmp.ne.s32.totalorder %s6778_s4, %s5708_s23  ;;  %p5712_p7 = scmp.lt.u32.totalorder %s5708_s23, %s6778_s4 }
  0x6c   :  { %p5714_p8 = pnand %p5712_p7, %p5709_p6 }
  0x6e   :  { %5717 = shalt.err (!%p5714_p8)
}
  0x6f   :  { %s5718_s2 = scalar_lea.vmem %s76_s3, 512  ;;  %p5723_p10 = scmp.lt.s32.totalorder %s76_s3, %s76_s3 }
  0x70   :  { %p5719_p9 = scmp.ne.s32.totalorder %s76_s3, %s5718_s2  ;;  %p5724_p11 = scmp.lt.s32.totalorder %s5718_s2, %s5718_s2 }
  0x72   :  { %p5725_p12 = por %p5724_p11, %p5723_p10 }
  0x74   :  { %p5726_p13 = pnand %p5725_p12, %p5719_p9 }
  0x76   :  { %5729 = shalt.err (!%p5726_p13)
}
  0x77   :  { %81 = dma.hbm_to_vmem [thread:$0]  %s6778_s4, 512, %s76_s3, [#allocation9], %s5810_s29, %s5810_s29, %s5811_s30  }
  0x78   :  { %s5730_s5 = scalar_lea.hbm %s6780_s6, 6144 }
  0x79   :  { %p5731_p0 = scmp.ne.s32.totalorder %s6780_s6, %s5730_s5  ;;  %p5734_p1 = scmp.lt.u32.totalorder %s5730_s5, %s6780_s6 }
  0x7b   :  { %p5736_p2 = pnand %p5734_p1, %p5731_p0 }
  0x7d   :  { %5739 = shalt.err (!%p5736_p2)
}
  0x7e   :  { %s5740_s0 = scalar_lea.vmem %s5997_s19, 6144  ;;  %p5745_p4 = scmp.lt.s32.totalorder %s5997_s19, %s5997_s19 }
  0x7f   :  { %p5741_p3 = scmp.ne.s32.totalorder %s5997_s19, %s5740_s0  ;;  %p5746_p5 = scmp.lt.s32.totalorder %s5740_s0, %s5740_s0 }
  0x81   :  { %p5747_p6 = por %p5746_p5, %p5745_p4 }
  0x83   :  { %p5748_p7 = pnand %p5747_p6, %p5741_p3 }
  0x85   :  { %5751 = shalt.err (!%p5748_p7)
}
  0x86   :  { %s5820_s4 = smov 64   ;;  %s5821_s15 = smov 4  }
  0x87   :  { %105 = dma.hbm_to_vmem [thread:$0]  %s6780_s6, 6144, %s5997_s19, [#allocation12], %s5820_s4, %s5820_s4, %s5821_s15  }
  0x88   :  { %s5822_s20 = smov [#allocation16]   ;;  %s5752_s1 = scalar_lea.hbm %s6782_s8, 3072 }
  0x89   :  { %s123_s21 = sshll.u32 %s5822_s20, 4  ;;  %p5753_p8 = scmp.ne.s32.totalorder %s6782_s8, %s5752_s1  ;;  %s124_s21 = int_to_ptr.vmem [resolvable:$true] %s123_s21 }
  0x8a   :  { %p5756_p9 = scmp.lt.u32.totalorder %s5752_s1, %s6782_s8 }
  0x8c   :  { %p5758_p10 = pnand %p5756_p9, %p5753_p8 }
  0x8e   :  { %5761 = shalt.err (!%p5758_p10)
}
  0x8f   :  { %s5762_s17 = scalar_lea.vmem %s124_s21, 3072  ;;  %p5767_p12 = scmp.lt.s32.totalorder %s124_s21, %s124_s21 }
  0x90   :  { %p5763_p11 = scmp.ne.s32.totalorder %s124_s21, %s5762_s17  ;;  %p5768_p13 = scmp.lt.s32.totalorder %s5762_s17, %s5762_s17 }
  0x92   :  { %p5769_p0 = por %p5768_p13, %p5767_p12 }
  0x94   :  { %p5770_p1 = pnand %p5769_p0, %p5763_p11 }
  0x96   :  { %5773 = shalt.err (!%p5770_p1)
}
  0x97   :  { %129 = dma.hbm_to_vmem [thread:$0]  %s6782_s8, 3072, %s124_s21, [#allocation15], %s5820_s4, %s5820_s4, %s5821_s15  }
  0x98   :  { %5796 = dma.done.wait [#allocation3], 256  }
  0x99   :  { %5797 = vsyncadd [#allocation3], 4294967040 }
  0x9a   :  { %5798 = dma.done.wait [#allocation6], 1024  }
  0x9b   :  { %5799 = vsyncadd [#allocation6], 4294966272 }
  0x9c   :  { %5800 = dma.done.wait [#allocation9], 768  }
  0x9d   :  { %5801 = vsyncadd [#allocation9], 4294966528 }
  0x9e   :  { %5802 = dma.done.wait [#allocation12], 8192  }
  0x9f   :  { %5803 = vsyncadd [#allocation12], 4294959104 }
  0xa0   :  { %5804 = dma.done.wait [#allocation15], 9216  }
  0xa1   :  { %5805 = vsyncadd [#allocation15], 4294958080  ;;  %v5823_v0 = vmov 0   ;;  %v5824_v1 = vmov 0.0   ;;  %v5298_v2 = vld [vmem:[#allocation11 + $0x4] ss:$8 sps:$4 sm:$0xff]   ;;  %v425_v34 = vlaneseq }
  0xa2   :  { %414 = vmatprep.mubr.bf16.mxu0 %v5823_v0  ;;  %4857 = vmatprep.subr.bf16.mxu1 %v5824_v1  ;;  %v5300_v3 = vld [vmem:[#allocation11] ss:$8 sps:$4 sm:$0xff]   ;;  %v5301_v4 = vld [vmem:[#allocation11 + $0x14] ss:$8 sps:$4 sm:$0xff]   ;;  %v5303_v5 = vld [vmem:[#allocation11 + $0x10] ss:$8 sps:$4 sm:$0xff]  }
  0xa3   :  { %382 = vmatprep.subr.bf16.mxu0 %v5298_v2  ;;  %v5304_v6 = vld [vmem:[#allocation11 + $0x24] ss:$8 sps:$4 sm:$0xff]   ;;  %v5306_v7 = vld [vmem:[#allocation11 + $0x20] ss:$8 sps:$4 sm:$0xff]   ;;  %v5307_v8 = vld [vmem:[#allocation11 + $0x34] ss:$8 sps:$4 sm:$0xff]  }
  0xa4   :  { %383 = vmatpush1.bf16.msra.mxu0 %v5300_v3  ;;  %v5309_v9 = vld [vmem:[#allocation11 + $0x30] ss:$8 sps:$4 sm:$0xff]   ;;  %v5310_v10 = vld [vmem:[#allocation11 + $0x44] ss:$8 sps:$4 sm:$0xff]   ;;  %v5312_v13 = vld [vmem:[#allocation11 + $0x40] ss:$8 sps:$4 sm:$0xff]  }
  0xa5   :  { %384 = vmatprep.subr.bf16.mxu0 %v5301_v4  ;;  %v5322_v11 = vld [vmem:[#allocation13] sm:$0xff]   ;;  %v5323_v12 = vld [vmem:[#allocation13 + $0x8] sm:$0xff]   ;;  %v5313_v14 = vld [vmem:[#allocation11 + $0x54] ss:$8 sps:$4 sm:$0xff]   ;;  %vm5825_vm0 = vmmov 0   ;;  %v6065_v35 = vshrl.u32 %v425_v34, 7 }
  0xa6   :  { %4858 = vmatpush3.bf16.msra.mxu1 %v5322_v11  ;;  %v5315_v15 = vld [vmem:[#allocation11 + $0x50] ss:$8 sps:$4 sm:$0xff]   ;;  %v5316_v17 = vld [vmem:[#allocation11 + $0x64] ss:$8 sps:$4 sm:$0xff]   ;;  %v5318_v19 = vld [vmem:[#allocation11 + $0x60] ss:$8 sps:$4 sm:$0xff]   ;;  %4873 = vmatprep.mubr.msk.bf16.mxu1 %vm5825_vm0, %v5824_v1 }
  0xa7   :  { %4859 = vmatprep.subr.bf16.mxu1 %v5824_v1  ;;  %v5324_v16 = vld [vmem:[#allocation13 + $0x10] sm:$0xff]   ;;  %v5325_v18 = vld [vmem:[#allocation13 + $0x18] sm:$0xff]   ;;  %v267_v20 = vld [vmem:[#allocation2] sm:$0xff]  ;;  %v6068_v36 = vsub.s32 1, %v6065_v35  ;;  %v6076_v38 = vsub.s32 0, %v6065_v35  ;;  %vm534_vm1 = vcmask 261120  }
  0xa8   :  { %385 = vmatpush1.bf16.msra.mxu0 %v5303_v5  ;;  %v268_v21 = vld [vmem:[#allocation2 + $0x8] sm:$0xff]  ;;  %v277_v22 = vld [vmem:[#allocation8] sm:$0xff]  ;;  %v278_v23 = vld [vmem:[#allocation8 + $0x8] sm:$0xff]  ;;  %s5826_s26 = smov 96   ;;  %v6102_v52 = vsub.s32 2, %v6065_v35  ;;  %vm597_vm2 = vcmask 1043456  }
  0xa9   :  { %386 = vmatprep.subr.bf16.mxu0 %v5304_v6  ;;  %v5319_v24 = vld [vmem:[#allocation11 + $0x74] ss:$8 sps:$4 sm:$0xff]   ;;  %v5326_v25 = vld [vmem:[#allocation13 + $0x20] sm:$0xff]   ;;  %v5321_v26 = vld [vmem:[#allocation11 + $0x70] ss:$8 sps:$4 sm:$0xff]   ;;  %v283_v27 = vadd.f32 %v277_v22, %v267_v20  ;;  %v284_v28 = vadd.f32 %v278_v23, %v268_v21  ;;  %v437_v33 = vpack.c.bf16 %v268_v21, %v267_v20  ;;  %vm581_vm3 = vcmask 64512  }
  0xaa   :  { %4860 = vmatpush3.bf16.msra.mxu1 %v5323_v12  ;;  %v5327_v29 = vld [vmem:[#allocation13 + $0x28] sm:$0xff]   ;;  %v5328_v31 = vld [vmem:[#allocation13 + $0x30] sm:$0xff]   ;;  %v5329_v32 = vld [vmem:[#allocation13 + $0x38] sm:$0xff]   ;;  %s5827_s28 = smov 32   ;;  %vm2218_vm4 = vcmask 130048  }
  0xab   :  { %4861 = vmatprep.subr.bf16.mxu1 %v5824_v1  ;;  %v301_v30 = vpack.c.bf16 %v284_v28, %v283_v27  ;;  %v6073_v37 = vld [vmem:[%s6783_s9] sm:$0xff] }
  0xac   :  { %387 = vmatpush1.bf16.msra.mxu0 %v5306_v7  ;;  %v434_v39 = vrot.slane %v6073_v37, %v6068_v36  ;;  %v428_v41 = vrot.slane %v6073_v37, %v6076_v38  ;;  %v441_v53 = vrot.slane %v6073_v37, %v6102_v52 }
  0xad   :  { %388 = vmatprep.subr.bf16.mxu0 %v5307_v8 }
  0xae   :  { %4862 = vmatpush3.bf16.msra.mxu1 %v5324_v16 }
  0xaf   :  { %4863 = vmatprep.subr.bf16.mxu1 %v5824_v1 }
  0xb0   :  { %389 = vmatpush1.bf16.msra.mxu0 %v5309_v9 }
  0xb1   :  { %390 = vmatprep.subr.bf16.mxu0 %v5310_v10 }
  0xb2   :  { %4864 = vmatpush3.bf16.msra.mxu1 %v5325_v18 }
  0xb3   :  { %4865 = vmatprep.subr.bf16.mxu1 %v5824_v1 }
  0xb4   :  { %391 = vmatpush1.bf16.msra.mxu0 %v5312_v13 }
  0xb5   :  { %392 = vmatprep.subr.bf16.mxu0 %v5313_v14 }
  0xb6   :  { %4866 = vmatpush3.bf16.msra.mxu1 %v5326_v25 }
  0xb7   :  { %4867 = vmatprep.subr.bf16.mxu1 %v5824_v1 }
  0xb8   :  { %393 = vmatpush1.bf16.msra.mxu0 %v5315_v15 }
  0xb9   :  { %394 = vmatprep.subr.bf16.mxu0 %v5316_v17 }
  0xba   :  { %4868 = vmatpush3.bf16.msra.mxu1 %v5327_v29 }
  0xbb   :  { %4869 = vmatprep.subr.bf16.mxu1 %v5824_v1 }
  0xbc   :  { %395 = vmatpush1.bf16.msra.mxu0 %v5318_v19 }
  0xbd   :  { %396 = vmatprep.subr.bf16.mxu0 %v5319_v24 }
  0xbe   :  { %4870 = vmatpush3.bf16.msra.mxu1 %v5328_v31 }
  0xbf   :  { %4871 = vmatprep.subr.bf16.mxu1 %v5824_v1 }
  0xc0   :  { %397 = vmatpush1.bf16.msra.mxu0 %v5321_v26 }
  0xc1   :  { %4901 = vmatprep.subr.bf16.mxu0 %v5824_v1 }
  0xc2   :  { %4872 = vmatpush3.bf16.msra.mxu1 %v5329_v32 }
  0xc3   :  { %415 = vmatmul.mubr.bf16.vlgmr.msra.gmra.mrb[0].mxu0 %v301_v30  ;;  %4877 = vmatprep.subr.bf16.mxu1 %v5824_v1 }
  0xc4   :  { %4905 = vmatprep.mubr.msk.bf16.mxu0 %vm5825_vm0, %v5824_v1 }
  0xc5   :  { %4874 = vmatmul.mubr.bf16.vlgmr.msra.gmra.mrb[0].mxu1 %v437_v33  ;;  %v6135_v33 = vld [vmem:[#allocation13 + $0x50] sm:$0xff]  }
  0xc6   :  { %4879 = vmatprep.mubr.msk.bf16.mxu1 %vm5825_vm0, %v5824_v1  ;;  %4902 = vmatpush3.bf16.msra.mxu0 %v6135_v33 }
  0xc7   :  { %4903 = vmatprep.subr.bf16.mxu0 %v5824_v1 }
 0x196   :  { %v416_v40 = vpop.f32.mrb[0].mxu0 }
 0x197   :  { %v418_v42 = vpop.f32.mrb[1].mxu0  ;;  %v429_v47 = vadd.f32 %v428_v41, %v416_v40 }
 0x198   :  { %v435_v43 = vadd.f32 %v434_v39, %v418_v42  ;;  %v420_v44 = vpop.f32.mrb[2].mxu0  ;;  %v524_v54 = vpop.f32.mrb[0].mxu1 }
 0x199   :  { %v6082_v45 = vadd.f32 %v428_v41, %v420_v44  ;;  %v422_v46 = vpop.f32.mrb[3].mxu0  ;;  %v6092_v51 = vpack.c.bf16 %v429_v47, %v429_v47  ;;  %v525_v55 = vadd.f32 %v524_v54, %v441_v53  ;;  %v4875_v56 = vpop.f32.mrb[1].mxu1 }
 0x19a   :  { %v6084_v48 = vpack.c.bf16 %v435_v43, %v435_v43  ;;  %v6086_v49 = vadd.f32 %v434_v39, %v422_v46  ;;  %v527_v57 = vpop.f32.mrb[2].mxu1  ;;  %v6138_v39 = vld [vmem:[#allocation13 + $0x58] sm:$0xff]   ;;  %v6143_v43 = vld [vmem:[#allocation13 + $0x40] sm:$0xff]   ;;  %v6147_v46 = vld [vmem:[#allocation13 + $0x48] sm:$0xff]  }
 0x19b   :  { %v6106_v58 = vpack.c.bf16 %v525_v55, %v525_v55  ;;  %v6108_v59 = vadd.f32 %v527_v57, %v441_v53  ;;  %v4876_v60 = vpop.f32.mrb[3].mxu1  ;;  %4904 = vmatpush3.bf16.msra.mxu0 %v6138_v39 }
 0x19c   :  { %646 = vrot.lane.b32.xlu1 %v6084_v48, %s5826_s26  ;;  %v539_v50 = vsel %vm534_vm1, %v6084_v48, 0  ;;  %4917 = vmatprep.subr.bf16.mxu0 %v5824_v1 }
 0x19d   :  { %4878 = vmatpush3.bf16.xpose.msra.mxu1 %v539_v50  ;;  %v599_v61 = vsel %vm597_vm2, %v6106_v58, 0 }
 0x19e   :  { %4883 = vmatprep.subr.bf16.mxu1 %v5824_v1 }
 0x1a0   :  { %643 = vrot.lane.b32.xlu1 %v6092_v51, %s5826_s26 }
 0x1a4   :  { %4880 = vmatmul.mubr.msk.bf16.vlgmr.msra.gmra.mrb[4].mxu1 %vm534_vm1, %v6092_v51 }
 0x1a5   :  { %4885 = vmatprep.mubr.msk.bf16.mxu1 %vm5825_vm0, %v5824_v1  ;;  %4884 = vmatpush3.bf16.msra.mxu1 %v599_v61 }
 0x1a6   :  { %4889 = vmatprep.subr.bf16.mxu1 %v5824_v1 }
 0x20e   :  { %v647_v13 = vpop.permute.xlu1 %646 }
 0x20f   :  { %v652_v15 = vsel %vm534_vm1, %v647_v13, 0 }
 0x212   :  { %v644_v16 = vpop.permute.xlu1 %643 }
 0x277   :  { %v575_v62 = vpop.f32.mrb[4].mxu1 }
 0x278   :  { %v4881_v63 = vpop.f32.mrb[5].mxu1  ;;  %v582_v2 = vsel %vm581_vm3, %v575_v62, -inf }
 0x279   :  { %583 = vmax.xlane.f32.xlu0 %v582_v2  ;;  %v578_v3 = vpop.f32.mrb[6].mxu1 }
 0x27a   :  { %v4882_v4 = vpop.f32.mrb[7].mxu1 }
 0x306   :  { %v584_v5 = vpop.xlane.xlu0 %583 }
 0x307   :  { %v585_v6 = vsub.f32 %v575_v62, %v584_v5 }
 0x309   :  { %v586_v7 = vmul.f32 1.442695, %v585_v6 }
 0x30b   :  { %5466 = vpow2.f32 %v586_v7 }
 0x315   :  { %v5467_v8 = vpop.eup %5466 }
 0x316   :  { %v588_v9 = vsel %vm581_vm3, %v5467_v8, 0.0 }
 0x317   :  { %589 = vadd.xlane.f32.xlu0 %v588_v9 }
 0x3a4   :  { %v590_v10 = vpop.xlane.xlu0 %589 }
 0x3a5   :  { %5468 = vrcp.f32 %v590_v10 }
 0x3af   :  { %v5469_v11 = vpop.eup %5468 }
 0x3b0   :  { %v592_v12 = vmul.f32 %v5469_v11, %v5467_v8 }
 0x3b2   :  { %v593_v14 = vpack.c.bf16 %v592_v12, %v592_v12 }
 0x3b4   :  { %4886 = vmatmul.mubr.msk.bf16.vlgmr.msra.gmra.mrb[8].mxu1 %vm581_vm3, %v593_v14 }
 0x3b5   :  { %4890 = vmatpush3.bf16.xpose.msra.mxu1 %v652_v15  ;;  %4891 = vmatprep.mubr.msk.bf16.mxu1 %vm5825_vm0, %v5824_v1 }
 0x3b6   :  { %4895 = vmatprep.subr.bf16.mxu1 %v5824_v1 }
 0x3bc   :  { %4892 = vmatmul.mubr.msk.bf16.vlgmr.msra.gmra.mrb[12].mxu1 %vm534_vm1, %v644_v16 }
 0x3bd   :  { %4897 = vmatprep.mubr.msk.bf16.mxu1 %vm5825_vm0, %v5824_v1 }
 0x487   :  { %v635_v17 = vpop.f32.mrb[8].mxu1 }
 0x488   :  { %v4887_v18 = vpop.f32.mrb[9].mxu1  ;;  %v641_v50 = vpack.c.bf16 %v635_v17, %v635_v17 }
 0x489   :  { %v638_v19 = vpop.f32.mrb[10].mxu1 }
 0x48a   :  { %v4888_v20 = vpop.f32.mrb[11].mxu1 }
 0x48f   :  { %v688_v21 = vpop.f32.mrb[12].mxu1 }
 0x490   :  { %v4893_v22 = vpop.f32.mrb[13].mxu1  ;;  %v694_v23 = vsel %vm581_vm3, %v688_v21, -inf }
 0x491   :  { %695 = vmax.xlane.f32.xlu0 %v694_v23  ;;  %v691_v24 = vpop.f32.mrb[14].mxu1 }
 0x492   :  { %v4894_v25 = vpop.f32.mrb[15].mxu1 }
 0x4a7   :  { %707 = vrot.lane.b32.xlu0 %v6106_v58, %s5826_s26 }
 0x4ab   :  { %868 = vrot.lane.b32.xlu0 %v6084_v48, %s5820_s4 }
 0x4af   :  { %866 = vrot.lane.b32.xlu0 %v6092_v51, %s5820_s4 }
 0x51e   :  { %v696_v26 = vpop.xlane.xlu0 %695 }
 0x51f   :  { %v697_v27 = vsub.f32 %v688_v21, %v696_v26  ;;  %v6175_v21 = vld [vmem:[#allocation13 + $0x60] sm:$0xff]  }
 0x521   :  { %v698_v28 = vmul.f32 1.442695, %v697_v27 }
 0x522   :  { %v708_v29 = vpop.permute.xlu0 %707 }
 0x523   :  { %5470 = vpow2.f32 %v698_v28  ;;  %v713_v30 = vsel %vm597_vm2, %v708_v29, 0 }
 0x524   :  { %4896 = vmatpush3.bf16.msra.mxu1 %v713_v30 }
 0x525   :  { %4909 = vmatprep.subr.bf16.mxu1 %v5824_v1 }
 0x526   :  { %v869_v54 = vpop.permute.xlu0 %868 }
 0x527   :  { %v874_v61 = vsel %vm534_vm1, %v869_v54, 0 }
 0x52a   :  { %v867_v3 = vpop.permute.xlu0 %866 }
 0x52d   :  { %v5471_v31 = vpop.eup %5470 }
 0x52e   :  { %v700_v32 = vsel %vm581_vm3, %v5471_v31, 0.0 }
 0x52f   :  { %701 = vadd.xlane.f32.xlu1 %v700_v32 }
 0x540   :  { %928 = vrot.lane.b32.xlu1 %v6106_v58, %s5820_s4 }
 0x5bc   :  { %v702_v40 = vpop.xlane.xlu1 %701 }
 0x5bd   :  { %5472 = vrcp.f32 %v702_v40 }
 0x5c0   :  { %v929_v47 = vpop.permute.xlu1 %928 }
 0x5c1   :  { %v934_v53 = vsel %vm597_vm2, %v929_v47, 0 }
 0x5c7   :  { %v5473_v41 = vpop.eup %5472 }
 0x5c8   :  { %v704_v42 = vmul.f32 %v5473_v41, %v5471_v31 }
 0x5ca   :  { %v705_v44 = vpack.c.bf16 %v704_v42, %v704_v42 }
 0x5cc   :  { %4898 = vmatmul.mubr.msk.bf16.vlgmr.msra.gmra.mrb[16].mxu1 %vm581_vm3, %v705_v44 }
 0x5cd   :  { %4910 = vmatpush3.bf16.msra.mxu1 %v6143_v43  ;;  %4913 = vmatprep.mubr.msk.bf16.mxu1 %vm5825_vm0, %v5824_v1 }
 0x5ce   :  { %4911 = vmatprep.subr.bf16.mxu1 %v5824_v1 }
 0x5d1   :  { %4912 = vmatpush3.bf16.msra.mxu1 %v6147_v46 }
 0x5d2   :  { %4923 = vmatprep.subr.bf16.mxu1 %v5824_v1 }
 0x5d4   :  { %4914 = vmatmul.mubr.msk.bf16.vlgmr.msra.gmra.mrb[20].mxu1 %vm534_vm1, %v641_v50  ;;  %v6199_v50 = vpack.c.bf16 %v6086_v49, %v6086_v49 }
 0x5d5   :  { %4924 = vmatpush3.bf16.msra.mxu1 %v934_v53  ;;  %4925 = vmatprep.mubr.msk.bf16.mxu1 %vm5825_vm0, %v5824_v1  ;;  %v6205_v53 = vpack.c.bf16 %v6082_v45, %v6082_v45 }
 0x5d6   :  { %4937 = vmatprep.subr.bf16.mxu1 %v5824_v1 }
 0x69f   :  { %v749_v55 = vpop.f32.mrb[16].mxu1 }
 0x6a0   :  { %v755_v56 = vpack.c.bf16 %v749_v55, %v749_v55  ;;  %v4899_v57 = vpop.f32.mrb[17].mxu1 }
 0x6a1   :  { %v752_v60 = vpop.f32.mrb[18].mxu1 }
 0x6a2   :  { %v4900_v62 = vpop.f32.mrb[19].mxu1  ;;  %4906 = vmatmul.mubr.msk.bf16.vlgmr.msra.gmra.mrb[4].mxu0 %vm534_vm1, %v755_v56 }
 0x6a3   :  { %4918 = vmatpush3.bf16.xpose.msra.mxu0 %v874_v61  ;;  %4919 = vmatprep.mubr.msk.bf16.mxu0 %vm5825_vm0, %v5824_v1  ;;  %v6212_v61 = vld [vmem:[#allocation13 + $0x70] sm:$0xff]  }
 0x6a4   :  { %4929 = vmatprep.subr.bf16.mxu0 %v5824_v1 }
 0x6a7   :  { %v860_v63 = vpop.f32.mrb[20].mxu1 }
 0x6a8   :  { %v4915_v2 = vpop.f32.mrb[21].mxu1 }
 0x6a9   :  { %v863_v4 = vpop.f32.mrb[22].mxu1  ;;  %v6218_v2 = vld [vmem:[#allocation13 + $0x78] sm:$0xff]  }
 0x6aa   :  { %v4916_v5 = vpop.f32.mrb[23].mxu1  ;;  %4920 = vmatmul.mubr.msk.bf16.vlgmr.msra.gmra.mrb[8].mxu0 %vm534_vm1, %v867_v3 }
 0x6ab   :  { %4933 = vmatprep.mubr.msk.bf16.mxu0 %vm5825_vm0, %v5824_v1  ;;  %4930 = vmatpush3.bf16.msra.mxu0 %v6175_v21 }
 0x6ac   :  { %4931 = vmatprep.subr.bf16.mxu0 %v5824_v1 }
 0x775   :  { %v805_v6 = vpop.f32.mrb[4].mxu0 }
 0x776   :  { %v6167_v7 = vadd.f32 %v860_v63, %v805_v6  ;;  %v4907_v8 = vpop.f32.mrb[5].mxu0 }
 0x777   :  { %v808_v9 = vpop.f32.mrb[6].mxu0 }
 0x778   :  { %v4908_v10 = vpop.f32.mrb[7].mxu0 }
 0x77d   :  { %v910_v11 = vpop.f32.mrb[8].mxu0 }
 0x77e   :  { %v4921_v12 = vpop.f32.mrb[9].mxu0  ;;  %v916_v13 = vsel %vm581_vm3, %v910_v11, -inf }
 0x77f   :  { %917 = vmax.xlane.f32.xlu0 %v916_v13  ;;  %v913_v14 = vpop.f32.mrb[10].mxu0  ;;  %v6244_v13 = vpack.c.bf16 %v6108_v59, %v6108_v59 }
 0x780   :  { %v4922_v15 = vpop.f32.mrb[11].mxu0 }
 0x80c   :  { %v918_v16 = vpop.xlane.xlu0 %917 }
 0x80d   :  { %v919_v17 = vsub.f32 %v910_v11, %v918_v16 }
 0x80f   :  { %v920_v18 = vmul.f32 1.442695, %v919_v17 }
 0x811   :  { %5474 = vpow2.f32 %v920_v18 }
 0x81b   :  { %v5475_v19 = vpop.eup %5474 }
 0x81c   :  { %v922_v20 = vsel %vm581_vm3, %v5475_v19, 0.0 }
 0x81d   :  { %923 = vadd.xlane.f32.xlu1 %v922_v20 }
 0x82e   :  { %1035 = vrot.lane.b32.xlu1 %v6084_v48, %s5827_s28 }
 0x832   :  { %1033 = vrot.lane.b32.xlu1 %v6092_v51, %s5827_s28  ;;  %v6187_v51 = vld [vmem:[#allocation13 + $0x68] sm:$0xff]  }
 0x833   :  { %4932 = vmatpush3.bf16.msra.mxu0 %v6187_v51 }
 0x834   :  { %4943 = vmatprep.subr.bf16.mxu0 %v5824_v1 }
 0x8aa   :  { %v924_v22 = vpop.xlane.xlu1 %923 }
 0x8ab   :  { %5476 = vrcp.f32 %v924_v22 }
 0x8ae   :  { %v1036_v25 = vpop.permute.xlu1 %1035 }
 0x8af   :  { %v1041_v27 = vsel %vm534_vm1, %v1036_v25, 0 }
 0x8b2   :  { %v1034_v48 = vpop.permute.xlu1 %1033 }
 0x8b5   :  { %v5477_v23 = vpop.eup %5476 }
 0x8b6   :  { %v926_v24 = vmul.f32 %v5477_v23, %v5475_v19 }
 0x8b8   :  { %v927_v26 = vpack.c.bf16 %v926_v24, %v926_v24 }
 0x8ba   :  { %4926 = vmatmul.mubr.msk.bf16.vlgmr.msra.gmra.mrb[24].mxu1 %vm581_vm3, %v927_v26 }
 0x8bb   :  { %4938 = vmatpush3.bf16.xpose.msra.mxu1 %v1041_v27  ;;  %4939 = vmatprep.mubr.msk.bf16.mxu1 %vm5825_vm0, %v5824_v1 }
 0x8bc   :  { %4949 = vmatprep.subr.bf16.mxu1 %v5824_v1 }
 0x8c2   :  { %4940 = vmatmul.mubr.msk.bf16.vlgmr.msra.gmra.mrb[28].mxu1 %vm534_vm1, %v1034_v48 }
 0x8c3   :  { %4953 = vmatprep.mubr.msk.bf16.mxu1 %vm5825_vm0, %v5824_v1  ;;  %4950 = vmatpush3.bf16.msra.mxu1 %v6212_v61 }
 0x8c4   :  { %4951 = vmatprep.subr.bf16.mxu1 %v5824_v1 }
 0x8c7   :  { %4952 = vmatpush3.bf16.msra.mxu1 %v6218_v2 }
 0x8c8   :  { %4963 = vmatprep.subr.bf16.mxu1 %v5824_v1 }
 0x98d   :  { %v970_v28 = vpop.f32.mrb[24].mxu1 }
 0x98e   :  { %v976_v29 = vpack.c.bf16 %v970_v28, %v970_v28  ;;  %v4927_v30 = vpop.f32.mrb[25].mxu1 }
 0x98f   :  { %v973_v31 = vpop.f32.mrb[26].mxu1 }
 0x990   :  { %v4928_v32 = vpop.f32.mrb[27].mxu1  ;;  %4934 = vmatmul.mubr.msk.bf16.vlgmr.msra.gmra.mrb[12].mxu0 %vm534_vm1, %v976_v29 }
 0x991   :  { %4945 = vmatprep.mubr.msk.bf16.mxu0 %vm5825_vm0, %v5824_v1 }
 0x995   :  { %v1077_v40 = vpop.f32.mrb[28].mxu1 }
 0x996   :  { %v4941_v41 = vpop.f32.mrb[29].mxu1  ;;  %v1083_v42 = vsel %vm581_vm3, %v1077_v40, -inf }
 0x997   :  { %1084 = vmax.xlane.f32.xlu0 %v1083_v42  ;;  %v1080_v44 = vpop.f32.mrb[30].mxu1 }
 0x998   :  { %v4942_v47 = vpop.f32.mrb[31].mxu1 }
 0x9ad   :  { %1095 = vrot.lane.b32.xlu0 %v6106_v58, %s5827_s28 }
 0x9b1   :  { %1312 = vrot.lane.b32.xlu0 %v6199_v50, %s5826_s26 }
 0x9b5   :  { %1309 = vrot.lane.b32.xlu0 %v6205_v53, %s5826_s26 }
 0xa24   :  { %v1085_v54 = vpop.xlane.xlu0 %1084 }
 0xa25   :  { %v1086_v55 = vsub.f32 %v1077_v40, %v1085_v54 }
 0xa27   :  { %v1087_v56 = vmul.f32 1.442695, %v1086_v55 }
 0xa28   :  { %v1096_v57 = vpop.permute.xlu0 %1095 }
 0xa29   :  { %5478 = vpow2.f32 %v1087_v56  ;;  %v1101_v58 = vsel %vm597_vm2, %v1096_v57, 0 }
 0xa2a   :  { %4944 = vmatpush3.bf16.msra.mxu0 %v1101_v58 }
 0xa2b   :  { %4957 = vmatprep.subr.bf16.mxu0 %v5824_v1 }
 0xa2c   :  { %v1313_v10 = vpop.permute.xlu0 %1312 }
 0xa2d   :  { %v1318_v11 = vsel %vm534_vm1, %v1313_v10, 0 }
 0xa30   :  { %v1310_v12 = vpop.permute.xlu0 %1309 }
 0xa33   :  { %v5479_v49 = vpop.eup %5478 }
 0xa34   :  { %v1089_v60 = vsel %vm581_vm3, %v5479_v49, 0.0 }
 0xa35   :  { %1090 = vadd.xlane.f32.xlu1 %v1089_v60 }
 0xa63   :  { %v1026_v45 = vpop.f32.mrb[12].mxu0 }
 0xa64   :  { %v6215_v62 = vadd.f32 %v1026_v45, %v6167_v7  ;;  %v4935_v63 = vpop.f32.mrb[13].mxu0  ;;  %v1207_v7 = vsel %vm534_vm1, %v6199_v50, 0 }
 0xa65   :  { %v1029_v3 = vpop.f32.mrb[14].mxu0 }
 0xa66   :  { %v4936_v4 = vpop.f32.mrb[15].mxu0 }
 0xac2   :  { %v1091_v5 = vpop.xlane.xlu1 %1090 }
 0xac3   :  { %5480 = vrcp.f32 %v1091_v5 }
 0xacd   :  { %v5481_v6 = vpop.eup %5480 }
 0xace   :  { %v1093_v8 = vmul.f32 %v5481_v6, %v5479_v49 }
 0xad0   :  { %v1094_v9 = vpack.c.bf16 %v1093_v8, %v1093_v8 }
 0xad2   :  { %4946 = vmatmul.mubr.msk.bf16.vlgmr.msra.gmra.mrb[16].mxu0 %vm581_vm3, %v1094_v9 }
 0xad3   :  { %4958 = vmatpush3.bf16.xpose.msra.mxu0 %v1207_v7  ;;  %4959 = vmatprep.mubr.msk.bf16.mxu0 %vm5825_vm0, %v5824_v1 }
 0xad4   :  { %4969 = vmatprep.subr.bf16.mxu0 %v5824_v1 }
 0xada   :  { %4960 = vmatmul.mubr.msk.bf16.vlgmr.msra.gmra.mrb[20].mxu0 %vm534_vm1, %v6205_v53 }
 0xadb   :  { %4970 = vmatpush3.bf16.xpose.msra.mxu0 %v1318_v11  ;;  %4971 = vmatprep.mubr.msk.bf16.mxu0 %vm5825_vm0, %v5824_v1 }
 0xadc   :  { %4981 = vmatprep.subr.bf16.mxu0 %v5824_v1 }
 0xae2   :  { %4972 = vmatmul.mubr.msk.bf16.vlgmr.msra.gmra.mrb[24].mxu0 %vm534_vm1, %v1310_v12 }
 0xae3   :  { %4982 = vmatpush3.bf16.msra.mxu0 %v6135_v33  ;;  %4985 = vmatprep.mubr.msk.bf16.mxu0 %vm5825_vm0, %v5824_v1  ;;  %v1265_v33 = vsel %vm597_vm2, %v6244_v13, 0 }
 0xae4   :  { %4983 = vmatprep.subr.bf16.mxu0 %v5824_v1 }
 0xae7   :  { %4984 = vmatpush3.bf16.msra.mxu0 %v6138_v39 }
 0xae8   :  { %4997 = vmatprep.subr.bf16.mxu0 %v5824_v1 }
 0xba5   :  { %v1137_v14 = vpop.f32.mrb[16].mxu0 }
 0xba6   :  { %v1143_v15 = vpack.c.bf16 %v1137_v14, %v1137_v14  ;;  %v4947_v16 = vpop.f32.mrb[17].mxu0 }
 0xba7   :  { %v1140_v17 = vpop.f32.mrb[18].mxu0 }
 0xba8   :  { %v4948_v18 = vpop.f32.mrb[19].mxu0  ;;  %4954 = vmatmul.mubr.msk.bf16.vlgmr.msra.gmra.mrb[32].mxu1 %vm534_vm1, %v1143_v15 }
 0xba9   :  { %4964 = vmatpush3.bf16.msra.mxu1 %v1265_v33  ;;  %4965 = vmatprep.mubr.msk.bf16.mxu1 %vm5825_vm0, %v5824_v1 }
 0xbaa   :  { %4975 = vmatprep.subr.bf16.mxu1 %v5824_v1 }
 0xbad   :  { %v1243_v39 = vpop.f32.mrb[20].mxu0 }
 0xbae   :  { %v4961_v19 = vpop.f32.mrb[21].mxu0  ;;  %v1249_v59 = vsel %vm581_vm3, %v1243_v39, -inf }
 0xbaf   :  { %1250 = vmax.xlane.f32.xlu0 %v1249_v59  ;;  %v1246_v20 = vpop.f32.mrb[22].mxu0 }
 0xbb0   :  { %v4962_v22 = vpop.f32.mrb[23].mxu0 }
 0xbb5   :  { %v1354_v23 = vpop.f32.mrb[24].mxu0 }
 0xbb6   :  { %v4973_v24 = vpop.f32.mrb[25].mxu0  ;;  %v1360_v25 = vsel %vm581_vm3, %v1354_v23, -inf }
 0xbb7   :  { %1361 = vmax.xlane.f32.xlu1 %v1360_v25  ;;  %v1357_v26 = vpop.f32.mrb[26].mxu0 }
 0xbb8   :  { %v4974_v27 = vpop.f32.mrb[27].mxu0 }
 0xbc5   :  { %1510 = vrot.lane.b32.xlu0 %v6199_v50, %s5820_s4 }
 0xc3c   :  { %v1251_v48 = vpop.xlane.xlu0 %1250 }
 0xc3d   :  { %v1252_v28 = vsub.f32 %v1243_v39, %v1251_v48 }
 0xc3f   :  { %v1253_v29 = vmul.f32 1.442695, %v1252_v28 }
 0xc41   :  { %5482 = vpow2.f32 %v1253_v29 }
 0xc44   :  { %v1362_v30 = vpop.xlane.xlu1 %1361 }
 0xc45   :  { %v1363_v31 = vsub.f32 %v1354_v23, %v1362_v30 }
 0xc47   :  { %v1364_v32 = vmul.f32 1.442695, %v1363_v31 }
 0xc49   :  { %5484 = vpow2.f32 %v1364_v32 }
 0xc4b   :  { %v5483_v40 = vpop.eup %5482 }
 0xc4c   :  { %v1255_v41 = vsel %vm581_vm3, %v5483_v40, 0.0 }
 0xc4d   :  { %1256 = vadd.xlane.f32.xlu1 %v1255_v41 }
 0xc53   :  { %v5485_v42 = vpop.eup %5484 }
 0xc54   :  { %v1366_v44 = vsel %vm581_vm3, %v5485_v42, 0.0 }
 0xc55   :  { %1367 = vadd.xlane.f32.xlu1 %v1366_v44 }
 0xc66   :  { %1373 = vrot.lane.b32.xlu1 %v6244_v13, %s5826_s26 }
 0xc6a   :  { %1508 = vrot.lane.b32.xlu1 %v6205_v53, %s5820_s4 }
 0xc7b   :  { %v1193_v47 = vpop.f32.mrb[32].mxu1 }
 0xc7c   :  { %v6263_v54 = vadd.f32 %v1193_v47, %v6215_v62  ;;  %v4955_v55 = vpop.f32.mrb[33].mxu1 }
 0xc7d   :  { %v1196_v56 = vpop.f32.mrb[34].mxu1 }
 0xc7e   :  { %v4956_v57 = vpop.f32.mrb[35].mxu1 }
 0xcda   :  { %v1257_v58 = vpop.xlane.xlu1 %1256 }
 0xcdb   :  { %5486 = vrcp.f32 %v1257_v58 }
 0xce2   :  { %v1368_v49 = vpop.xlane.xlu1 %1367 }
 0xce3   :  { %5488 = vrcp.f32 %v1368_v49 }
 0xce5   :  { %v5487_v60 = vpop.eup %5486 }
 0xce6   :  { %v1259_v45 = vmul.f32 %v5487_v60, %v5483_v40  ;;  %v1374_v63 = vpop.permute.xlu1 %1373 }
 0xce7   :  { %v1379_v4 = vsel %vm597_vm2, %v1374_v63, 0 }
 0xce8   :  { %v1260_v3 = vpack.c.bf16 %v1259_v45, %v1259_v45 }
 0xcea   :  { %4966 = vmatmul.mubr.msk.bf16.vlgmr.msra.gmra.mrb[36].mxu1 %vm581_vm3, %v1260_v3  ;;  %v1509_v18 = vpop.permute.xlu1 %1508 }
 0xceb   :  { %4976 = vmatpush3.bf16.msra.mxu1 %v1379_v4  ;;  %4977 = vmatprep.mubr.msk.bf16.mxu1 %vm5825_vm0, %v5824_v1 }
 0xcec   :  { %4989 = vmatprep.subr.bf16.mxu1 %v5824_v1 }
 0xced   :  { %v5489_v62 = vpop.eup %5488 }
 0xcee   :  { %v1370_v5 = vmul.f32 %v5489_v62, %v5485_v42 }
 0xcf0   :  { %v1371_v6 = vpack.c.bf16 %v1370_v5, %v1370_v5 }
 0xcf2   :  { %4978 = vmatmul.mubr.msk.bf16.vlgmr.msra.gmra.mrb[40].mxu1 %vm581_vm3, %v1371_v6 }
 0xcf3   :  { %4990 = vmatpush3.bf16.msra.mxu1 %v6143_v43  ;;  %4993 = vmatprep.mubr.msk.bf16.mxu1 %vm5825_vm0, %v5824_v1  ;;  %v1511_v43 = vpop.permute.xlu0 %1510 }
 0xcf4   :  { %4991 = vmatprep.subr.bf16.mxu1 %v5824_v1  ;;  %v1516_v17 = vsel %vm534_vm1, %v1511_v43, 0 }
 0xcf7   :  { %4992 = vmatpush3.bf16.msra.mxu1 %v6147_v46 }
 0xcf8   :  { %5003 = vmatprep.subr.bf16.mxu1 %v5824_v1 }
 0xdbd   :  { %v1301_v8 = vpop.f32.mrb[36].mxu1 }
 0xdbe   :  { %v1307_v9 = vpack.c.bf16 %v1301_v8, %v1301_v8  ;;  %v4967_v7 = vpop.f32.mrb[37].mxu1 }
 0xdbf   :  { %v1304_v10 = vpop.f32.mrb[38].mxu1  ;;  %v6323_v7 = vsub.s32 3, %v6065_v35 }
 0xdc0   :  { %v4968_v11 = vpop.f32.mrb[39].mxu1  ;;  %4994 = vmatmul.mubr.msk.bf16.vlgmr.msra.gmra.mrb[44].mxu1 %vm534_vm1, %v1307_v9 }
 0xdc1   :  { %5005 = vmatprep.mubr.msk.bf16.mxu1 %vm5825_vm0, %v5824_v1  ;;  %v1821_v10 = vrot.slane %v6073_v37, %v6323_v7 }
 0xdc3   :  { %v1822_v43 = vadd.f32 %v1821_v10, %v6263_v54 }
 0xdc5   :  { %v1415_v12 = vpop.f32.mrb[40].mxu1 }
 0xdc6   :  { %v1421_v14 = vpack.c.bf16 %v1415_v12, %v1415_v12  ;;  %v4979_v15 = vpop.f32.mrb[41].mxu1  ;;  %v5570_v12 = vld [vmem:[#allocation2] sm:$0xff] }
 0xdc7   :  { %v1418_v16 = vpop.f32.mrb[42].mxu1 }
 0xdc8   :  { %v4980_v46 = vpop.f32.mrb[43].mxu1  ;;  %4986 = vmatmul.mubr.msk.bf16.vlgmr.msra.gmra.mrb[28].mxu0 %vm534_vm1, %v1421_v14  ;;  %v6330_v14 = vadd.f32 %v5570_v12, %v1822_v43  ;;  %v5350_v43 = vld [vmem:[#allocation13 + $0xa0] sm:$0xff]  }
 0xdc9   :  { %4998 = vmatpush3.bf16.xpose.msra.mxu0 %v1516_v17  ;;  %4999 = vmatprep.mubr.msk.bf16.mxu0 %vm5825_vm0, %v5824_v1 }
 0xdca   :  { %5009 = vmatprep.subr.bf16.mxu0 %v5824_v1 }
 0xdd0   :  { %5000 = vmatmul.mubr.msk.bf16.vlgmr.msra.gmra.mrb[32].mxu0 %vm534_vm1, %v1509_v18 }
 0xdd1   :  { %5010 = vmatpush3.bf16.msra.mxu0 %v6175_v21  ;;  %5013 = vmatprep.mubr.msk.bf16.mxu0 %vm5825_vm0, %v5824_v1 }
 0xdd2   :  { %5011 = vmatprep.subr.bf16.mxu0 %v5824_v1 }
 0xdd5   :  { %5012 = vmatpush3.bf16.msra.mxu0 %v6187_v51 }
 0xdd6   :  { %5023 = vmatprep.subr.bf16.mxu0 %v5824_v1 }
 0xe93   :  { %v1502_v33 = vpop.f32.mrb[44].mxu1 }
 0xe94   :  { %v4995_v39 = vpop.f32.mrb[45].mxu1 }
 0xe95   :  { %v1505_v19 = vpop.f32.mrb[46].mxu1 }
 0xe96   :  { %v4996_v59 = vpop.f32.mrb[47].mxu1 }
 0xe9b   :  { %v1459_v20 = vpop.f32.mrb[28].mxu0 }
 0xe9c   :  { %v6292_v22 = vadd.f32 %v1502_v33, %v1459_v20  ;;  %v4987_v23 = vpop.f32.mrb[29].mxu0 }
 0xe9d   :  { %v1462_v24 = vpop.f32.mrb[30].mxu0 }
 0xe9e   :  { %v4988_v25 = vpop.f32.mrb[31].mxu0 }
 0xea3   :  { %v1552_v21 = vpop.f32.mrb[32].mxu0 }
 0xea4   :  { %v5001_v26 = vpop.f32.mrb[33].mxu0  ;;  %v1558_v27 = vsel %vm581_vm3, %v1552_v21, -inf }
 0xea5   :  { %1559 = vmax.xlane.f32.xlu1 %v1558_v27  ;;  %v1555_v48 = vpop.f32.mrb[34].mxu0 }
 0xea6   :  { %v5002_v28 = vpop.f32.mrb[35].mxu0 }
 0xeb6   :  { %1570 = vrot.lane.b32.xlu1 %v6244_v13, %s5820_s4 }
 0xeba   :  { %1663 = vrot.lane.b32.xlu1 %v6205_v53, %s5827_s28 }
 0xf32   :  { %v1560_v51 = vpop.xlane.xlu1 %1559 }
 0xf33   :  { %v1561_v29 = vsub.f32 %v1552_v21, %v1560_v51 }
 0xf35   :  { %v1562_v30 = vmul.f32 1.442695, %v1561_v29 }
 0xf36   :  { %v1571_v31 = vpop.permute.xlu1 %1570 }
 0xf37   :  { %5490 = vpow2.f32 %v1562_v30  ;;  %v1576_v32 = vsel %vm597_vm2, %v1571_v31, 0  ;;  %v5571_v30 = vld [vmem:[#allocation2 + $0x8] sm:$0xff] }
 0xf38   :  { %5004 = vmatpush3.bf16.msra.mxu1 %v1576_v32 }
 0xf39   :  { %5017 = vmatprep.subr.bf16.mxu1 %v5824_v1 }
 0xf3a   :  { %v1664_v57 = vpop.permute.xlu1 %1663 }
 0xf41   :  { %v5491_v40 = vpop.eup %5490 }
 0xf42   :  { %v1564_v41 = vsel %vm581_vm3, %v5491_v40, 0.0 }
 0xf43   :  { %1565 = vadd.xlane.f32.xlu0 %v1564_v41  ;;  %v5339_v41 = vld [vmem:[#allocation13 + $0xc8] sm:$0xff]  }
 0xf59   :  { %1665 = vrot.lane.b32.xlu0 %v6199_v50, %s5827_s28 }
 0xfd0   :  { %v1566_v42 = vpop.xlane.xlu0 %1565 }
 0xfd1   :  { %5492 = vrcp.f32 %v1566_v42  ;;  %v5342_v42 = vld [vmem:[#allocation13 + $0x80] sm:$0xff]  }
 0xfd4   :  { %v1666_v47 = vpop.permute.xlu0 %1665 }
 0xfd5   :  { %v1671_v56 = vsel %vm534_vm1, %v1666_v47, 0  ;;  %v5343_v47 = vld [vmem:[#allocation13 + $0xe0] sm:$0xff]  }
 0xfdb   :  { %v5493_v53 = vpop.eup %5492 }
 0xfdc   :  { %v1568_v44 = vmul.f32 %v5493_v53, %v5491_v40  ;;  %v5338_v40 = vld [vmem:[#allocation13 + $0xc0] sm:$0xff]   ;;  %v5340_v53 = vld [vmem:[#allocation13 + $0xd0] sm:$0xff]  }
 0xfde   :  { %v1569_v55 = vpack.c.bf16 %v1568_v44, %v1568_v44  ;;  %v5341_v44 = vld [vmem:[#allocation13 + $0xd8] sm:$0xff]  }
 0xfe0   :  { %5006 = vmatmul.mubr.msk.bf16.vlgmr.msra.gmra.mrb[48].mxu1 %vm581_vm3, %v1569_v55 }
 0xfe1   :  { %5018 = vmatpush3.bf16.xpose.msra.mxu1 %v1671_v56  ;;  %5019 = vmatprep.mubr.msk.bf16.mxu1 %vm5825_vm0, %v5824_v1 }
 0xfe2   :  { %5029 = vmatprep.subr.bf16.mxu1 %v5824_v1 }
 0xfe8   :  { %5020 = vmatmul.mubr.msk.bf16.vlgmr.msra.gmra.mrb[52].mxu1 %vm534_vm1, %v1664_v57 }
 0xfe9   :  { %5030 = vmatpush3.bf16.msra.mxu1 %v6212_v61  ;;  %5033 = vmatprep.mubr.msk.bf16.mxu1 %vm5825_vm0, %v5824_v1 }
 0xfea   :  { %5031 = vmatprep.subr.bf16.mxu1 %v5824_v1 }
 0xfed   :  { %5032 = vmatpush3.bf16.msra.mxu1 %v6218_v2 }
 0xfee   :  { %5057 = vmatprep.subr.bf16.mxu1 %v5338_v40 }
0x10b3   :  { %v1612_v50 = vpop.f32.mrb[48].mxu1 }
0x10b4   :  { %v1618_v58 = vpack.c.bf16 %v1612_v50, %v1612_v50  ;;  %v5007_v49 = vpop.f32.mrb[49].mxu1 }
0x10b5   :  { %v1615_v60 = vpop.f32.mrb[50].mxu1  ;;  %v5345_v49 = vld [vmem:[#allocation13 + $0xe8] sm:$0xff]  }
0x10b6   :  { %v5008_v45 = vpop.f32.mrb[51].mxu1  ;;  %5014 = vmatmul.mubr.msk.bf16.vlgmr.msra.gmra.mrb[36].mxu0 %vm534_vm1, %v1618_v58  ;;  %v5344_v58 = vld [vmem:[#allocation13 + $0x88] sm:$0xff]   ;;  %v5346_v60 = vld [vmem:[#allocation13 + $0x90] sm:$0xff]  }
0x10b7   :  { %5025 = vmatprep.mubr.msk.bf16.mxu0 %vm5825_vm0, %v5824_v1  ;;  %v5347_v45 = vld [vmem:[#allocation13 + $0xf0] sm:$0xff]  }
0x10bb   :  { %v1707_v63 = vpop.f32.mrb[52].mxu1 }
0x10bc   :  { %v5021_v3 = vpop.f32.mrb[53].mxu1  ;;  %v1713_v61 = vsel %vm581_vm3, %v1707_v63, -inf }
0x10bd   :  { %1714 = vmax.xlane.f32.xlu1 %v1713_v61  ;;  %v1710_v4 = vpop.f32.mrb[54].mxu1  ;;  %v5349_v3 = vld [vmem:[#allocation13 + $0xf8] sm:$0xff]   ;;  %v269_v61 = vld [vmem:[#allocation5] sm:$0xff] }
0x10be   :  { %v5022_v62 = vpop.f32.mrb[55].mxu1  ;;  %v270_v4 = vld [vmem:[#allocation5 + $0x8] sm:$0xff] }
0x10bf   :  { %v279_v62 = vld [vmem:[#allocation10] sm:$0xff] }
0x10ce   :  { %1725 = vrot.lane.b32.xlu1 %v6244_v13, %s5827_s28 }
0x114a   :  { %v1715_v2 = vpop.xlane.xlu1 %1714 }
0x114b   :  { %v1716_v5 = vsub.f32 %v1707_v63, %v1715_v2  ;;  %v5348_v63 = vld [vmem:[#allocation13 + $0x98] sm:$0xff]   ;;  %v280_v2 = vld [vmem:[#allocation10 + $0x8] sm:$0xff] }
0x114d   :  { %v1717_v6 = vmul.f32 1.442695, %v1716_v5  ;;  %v271_v5 = vld [vmem:[#allocation5 + $0x10] sm:$0xff] }
0x114e   :  { %v1726_v8 = vpop.permute.xlu1 %1725 }
0x114f   :  { %5494 = vpow2.f32 %v1717_v6  ;;  %v1731_v9 = vsel %vm597_vm2, %v1726_v8, 0  ;;  %v1959_v6 = vadd.f32 %v279_v62, %v269_v61  ;;  %v1960_v8 = vadd.f32 %v280_v2, %v270_v4 }
0x1150   :  { %5024 = vmatpush3.bf16.msra.mxu0 %v1731_v9  ;;  %v272_v9 = vld [vmem:[#allocation5 + $0x18] sm:$0xff]  ;;  %v6394_v61 = vsub.s32 4, %v6065_v35 }
0x1151   :  { %5037 = vmatprep.subr.bf16.mxu0 %v5824_v1 }
0x1159   :  { %v5495_v11 = vpop.eup %5494 }
0x115a   :  { %v1719_v13 = vsel %vm581_vm3, %v5495_v11, 0.0 }
0x115b   :  { %1720 = vadd.xlane.f32.xlu0 %v1719_v13 }
0x115f   :  { %1826 = vadd.xlane.f32.xlu0 %v6330_v14 }
0x1189   :  { %v1656_v15 = vpop.f32.mrb[36].mxu0 }
0x118a   :  { %v1662_v16 = vadd.f32 %v1656_v15, %v6292_v22  ;;  %v5015_v17 = vpop.f32.mrb[37].mxu0  ;;  %v1963_v15 = vpack.c.bf16 %v1960_v8, %v1959_v6 }
0x118b   :  { %v1659_v46 = vpop.f32.mrb[38].mxu0  ;;  %v5351_v17 = vld [vmem:[#allocation13 + $0xa8] sm:$0xff]  }
0x118c   :  { %v5016_v18 = vpop.f32.mrb[39].mxu0  ;;  %v5352_v46 = vld [vmem:[#allocation13 + $0xb0] sm:$0xff]  }
0x118d   :  { %v5353_v18 = vld [vmem:[#allocation13 + $0xb8] sm:$0xff]  }
0x11e8   :  { %v1721_v33 = vpop.xlane.xlu0 %1720 }
0x11e9   :  { %5496 = vrcp.f32 %v1721_v33 }
0x11ec   :  { %v1827_v22 = vpop.xlane.xlu0 %1826 }
0x11ed   :  { %v1831_v21 = vmul.f32 0.0078125, %v1827_v22 }
0x11ef   :  { %v6339_v29 = vsub.f32 %v6330_v14, %v1831_v21 }
0x11f1   :  { %v1835_v32 = vmul.f32 %v6339_v29, %v6339_v29 }
0x11f3   :  { %v5497_v37 = vpop.eup %5496 }
0x11f4   :  { %v1723_v39 = vmul.f32 %v5497_v37, %v5495_v11  ;;  %v282_v11 = vld [vmem:[#allocation10 + $0x18] sm:$0xff] }
0x11f5   :  { %v1962_v12 = vadd.f32 %v282_v11, %v272_v9  ;;  %v5354_v11 = vld [vmem:[#allocation13 + $0x100] sm:$0xff]  }
0x11f6   :  { %v1724_v19 = vpack.c.bf16 %v1723_v39, %v1723_v39 }
0x11f8   :  { %5026 = vmatmul.mubr.msk.bf16.vlgmr.msra.gmra.mrb[40].mxu0 %vm581_vm3, %v1724_v19 }
0x11f9   :  { %5053 = vmatprep.mubr.msk.bf16.mxu0 %vm5825_vm0, %v5824_v1  ;;  %5038 = vmatpush3.bf16.msra.mxu0 %v5342_v42  ;;  %v5573_v42 = vld [vmem:[#allocation8 + $0x8] sm:$0xff] }
0x11fa   :  { %5039 = vmatprep.subr.bf16.mxu0 %v5824_v1 }
0x11fd   :  { %5040 = vmatpush3.bf16.msra.mxu0 %v5344_v58 }
0x11fe   :  { %5041 = vmatprep.subr.bf16.mxu0 %v5824_v1 }
0x1201   :  { %5042 = vmatpush3.bf16.msra.mxu0 %v5346_v60 }
0x1202   :  { %5043 = vmatprep.subr.bf16.mxu0 %v5824_v1 }
0x1205   :  { %5044 = vmatpush3.bf16.msra.mxu0 %v5348_v63 }
0x1206   :  { %5045 = vmatprep.subr.bf16.mxu0 %v5824_v1 }
0x1209   :  { %5046 = vmatpush3.bf16.msra.mxu0 %v5350_v43  ;;  %v5355_v43 = vld [vmem:[#allocation13 + $0x108] sm:$0xff]  }
0x120a   :  { %5047 = vmatprep.subr.bf16.mxu0 %v5824_v1 }
0x120d   :  { %5048 = vmatpush3.bf16.msra.mxu0 %v5351_v17  ;;  %v5357_v17 = vld [vmem:[#allocation13 + $0x118] sm:$0xff]  }
0x120e   :  { %5049 = vmatprep.subr.bf16.mxu0 %v5824_v1 }
0x1211   :  { %5050 = vmatpush3.bf16.msra.mxu0 %v5352_v46  ;;  %v5358_v46 = vld [vmem:[#allocation13 + $0x120] sm:$0xff]  }
0x1212   :  { %5051 = vmatprep.subr.bf16.mxu0 %v5824_v1 }
0x1215   :  { %5052 = vmatpush3.bf16.msra.mxu0 %v5353_v18  ;;  %v5359_v18 = vld [vmem:[#allocation13 + $0x128] sm:$0xff]  }
0x1216   :  { %5077 = vmatprep.subr.bf16.mxu0 %v5354_v11 }
0x12cb   :  { %v1767_v54 = vpop.f32.mrb[40].mxu0 }
0x12cc   :  { %v1773_v59 = vpack.c.bf16 %v1767_v54, %v1767_v54  ;;  %v5027_v20 = vpop.f32.mrb[41].mxu0 }
0x12cd   :  { %v1770_v23 = vpop.f32.mrb[42].mxu0 }
0x12ce   :  { %v5028_v24 = vpop.f32.mrb[43].mxu0  ;;  %5034 = vmatmul.mubr.msk.bf16.vlgmr.msra.gmra.mrb[56].mxu1 %vm534_vm1, %v1773_v59  ;;  %v163_v23 = vld [vmem:[%s6783_s9 + $0x8] sm:$0xff] }
0x12cf   :  { %5058 = vmatpush3.bf16.msra.mxu1 %v5338_v40  ;;  %5073 = vmatprep.mubr.bf16.mxu1 %v1963_v15  ;;  %v1852_v24 = vrot.slane %v163_v23, %v6076_v38  ;;  %v1858_v21 = vrot.slane %v163_v23, %v6068_v36  ;;  %v5572_v40 = vld [vmem:[#allocation8] sm:$0xff] }
0x12d0   :  { %5059 = vmatprep.subr.bf16.mxu1 %v5339_v41  ;;  %v5356_v15 = vld [vmem:[#allocation13 + $0x110] sm:$0xff]  }
0x12d3   :  { %5060 = vmatpush3.bf16.msra.mxu1 %v5339_v41 }
0x12d4   :  { %5061 = vmatprep.subr.bf16.mxu1 %v5340_v53 }
0x12d7   :  { %5062 = vmatpush3.bf16.msra.mxu1 %v5340_v53 }
0x12d8   :  { %5063 = vmatprep.subr.bf16.mxu1 %v5341_v44 }
0x12db   :  { %5064 = vmatpush3.bf16.msra.mxu1 %v5341_v44  ;;  %v6377_v44 = vsub.s32 5, %v6065_v35 }
0x12dc   :  { %5065 = vmatprep.subr.bf16.mxu1 %v5343_v47 }
0x12df   :  { %5066 = vmatpush3.bf16.msra.mxu1 %v5343_v47  ;;  %v6382_v47 = vld [vmem:[%s6783_s9] sm:$0xff] }
0x12e0   :  { %5067 = vmatprep.subr.bf16.mxu1 %v5345_v49  ;;  %v1869_v4 = vrot.slane %v6382_v47, %v6394_v61 }
0x12e3   :  { %5068 = vmatpush3.bf16.msra.mxu1 %v5345_v49 }
0x12e4   :  { %5069 = vmatprep.subr.bf16.mxu1 %v5347_v45 }
0x12e7   :  { %5070 = vmatpush3.bf16.msra.mxu1 %v5347_v45 }
0x12e8   :  { %5071 = vmatprep.subr.bf16.mxu1 %v5349_v3 }
0x12eb   :  { %5072 = vmatpush3.bf16.msra.mxu1 %v5349_v3 }
0x12ec   :  { %5097 = vmatprep.subr.bf16.mxu1 %v5824_v1 }
0x13a1   :  { %v1811_v25 = vpop.f32.mrb[56].mxu1 }
0x13a2   :  { %v1817_v26 = vadd.f32 %v1811_v25, %v1662_v16  ;;  %v5035_v27 = vpop.f32.mrb[57].mxu1 }
0x13a3   :  { %v1814_v48 = vpop.f32.mrb[58].mxu1 }
0x13a4   :  { %v1823_v28 = vadd.f32 %v1821_v10, %v1817_v26  ;;  %v5036_v51 = vpop.f32.mrb[59].mxu1  ;;  %v281_v10 = vld [vmem:[#allocation10 + $0x10] sm:$0xff] }
0x13a5   :  { %v1961_v13 = vadd.f32 %v281_v10, %v271_v5 }
0x13a6   :  { %v6341_v31 = vadd.f32 %v5571_v30, %v1823_v28 }
0x13a7   :  { %v1964_v16 = vpack.c.bf16 %v1962_v12, %v1961_v13  ;;  %v273_v13 = vld [vmem:[#allocation7] sm:$0xff]  ;;  %v274_v12 = vld [vmem:[#allocation7 + $0x8] sm:$0xff] }
0x13a8   :  { %1828 = vadd.xlane.f32.xlu0 %v6341_v31 }
0x13a9   :  { %5074 = vmatmul.mubr.bf16.vlgmr.msra.gmra.mrb[60].mxu1 %v1964_v16  ;;  %v2066_v16 = vpack.c.bf16 %v274_v12, %v273_v13 }
0x13aa   :  { %5099 = vmatprep.mubr.msk.bf16.mxu1 %vm5825_vm0, %v5824_v1 }
0x13ac   :  { %1837 = vadd.xlane.f32.xlu0 %v1835_v32 }
0x1435   :  { %v1829_v55 = vpop.xlane.xlu0 %1828 }
0x1436   :  { %v1832_v56 = vmul.f32 0.0078125, %v1829_v55 }
0x1438   :  { %v6348_v57 = vsub.f32 %v6341_v31, %v1832_v56 }
0x1439   :  { %v1838_v33 = vpop.xlane.xlu0 %1837 }
0x143a   :  { %v1836_v50 = vmul.f32 %v6348_v57, %v6348_v57  ;;  %v1841_v37 = vmul.f32 0.0078125, %v1838_v33  ;;  %v5360_v33 = vld [vmem:[#allocation13 + $0x130] sm:$0xff]  }
0x143c   :  { %1839 = vadd.xlane.f32.xlu1 %v1836_v50  ;;  %v1843_v39 = vadd.f32 1e-05, %v1841_v37  ;;  %v5361_v37 = vld [vmem:[#allocation13 + $0x138] sm:$0xff]  }
0x143e   :  { %5498 = vrsqrt.f32 %v1843_v39  ;;  %v275_v39 = vld [vmem:[#allocation7 + $0x10] sm:$0xff] }
0x1448   :  { %v5499_v20 = vpop.eup %5498 }
0x1449   :  { %v1847_v22 = vmul.f32 %v5499_v20, %v6339_v29 }
0x144b   :  { %v1853_v25 = vmul.f32 %v1852_v24, %v1847_v22 }
0x144d   :  { %v1859_v48 = vadd.f32 %v1858_v21, %v1853_v25  ;;  %v6411_v25 = vsub.s32 6, %v6065_v35 }
0x144f   :  { %v6369_v30 = vadd.f32 %v1859_v48, %v6330_v14  ;;  %v1968_v14 = vrot.slane %v6382_v47, %v6377_v44 }
0x1451   :  { %v1863_v41 = vadd.f32 %v5572_v40, %v6369_v30 }
0x14c9   :  { %v1840_v19 = vpop.xlane.xlu1 %1839 }
0x14ca   :  { %v1842_v54 = vmul.f32 0.0078125, %v1840_v19  ;;  %v276_v19 = vld [vmem:[#allocation7 + $0x18] sm:$0xff] }
0x14cc   :  { %v1844_v59 = vadd.f32 1e-05, %v1842_v54  ;;  %v2067_v54 = vpack.c.bf16 %v276_v19, %v275_v39  ;;  %v6445_v39 = vld [vmem:[#allocation13 + $0x150] sm:$0xff]   ;;  %v6448_v19 = vld [vmem:[#allocation13 + $0x158] sm:$0xff]  }
0x14ce   :  { %5500 = vrsqrt.f32 %v1844_v59 }
0x14d8   :  { %v5501_v26 = vpop.eup %5500 }
0x14d9   :  { %v1848_v27 = vmul.f32 %v5501_v26, %v6348_v57 }
0x14db   :  { %v1854_v28 = vmul.f32 %v1852_v24, %v1848_v27 }
0x14dd   :  { %v1860_v51 = vadd.f32 %v1858_v21, %v1854_v28  ;;  %v2071_v21 = vrot.slane %v6382_v47, %v6411_v25 }
0x14df   :  { %v6372_v32 = vadd.f32 %v1860_v51, %v6341_v31  ;;  %v5075_v31 = vpop.f32.mrb[60].mxu1 }
0x14e0   :  { %v2060_v55 = vadd.f32 %v5075_v31, %v1968_v14  ;;  %v2051_v56 = vpop.f32.mrb[61].mxu1 }
0x14e1   :  { %v1864_v29 = vadd.f32 %v5573_v42, %v6372_v32  ;;  %v2052_v57 = vadd.f32 %v2051_v56, %v1968_v14  ;;  %v5076_v50 = vpop.f32.mrb[62].mxu1 }
0x14e2   :  { %v2063_v58 = vadd.f32 %v5076_v50, %v1968_v14  ;;  %v2054_v49 = vpop.f32.mrb[63].mxu1 }
0x14e3   :  { %v1865_v53 = vpack.c.bf16 %v1864_v29, %v1863_v41  ;;  %v2055_v60 = vadd.f32 %v2054_v49, %v1968_v14 }
0x14e4   :  { %v6386_v45 = vpack.c.bf16 %v2063_v58, %v2060_v55 }
0x14e5   :  { %5054 = vmatmul.mubr.bf16.vlgmr.msra.gmra.mrb[44].mxu0 %v1865_v53  ;;  %v6388_v63 = vpack.c.bf16 %v2055_v60, %v2052_v57 }
0x14e6   :  { %5078 = vmatpush3.bf16.msra.mxu0 %v5354_v11  ;;  %5093 = vmatprep.mubr.bf16.mxu0 %v2066_v16 }
0x14e7   :  { %v2176_v3 = vsel %vm534_vm1, %v6388_v63, 0  ;;  %5079 = vmatprep.subr.bf16.mxu0 %v5355_v43 }
0x14e8   :  { %5098 = vmatpush3.bf16.xpose.msra.mxu1 %v2176_v3 }
0x14e9   :  { %5103 = vmatprep.subr.bf16.mxu1 %v5824_v1 }
0x14ea   :  { %5080 = vmatpush3.bf16.msra.mxu0 %v5355_v43 }
0x14eb   :  { %5081 = vmatprep.subr.bf16.mxu0 %v5356_v15 }
0x14ee   :  { %5082 = vmatpush3.bf16.msra.mxu0 %v5356_v15 }
0x14ef   :  { %5083 = vmatprep.subr.bf16.mxu0 %v5357_v17 }
0x14f2   :  { %5084 = vmatpush3.bf16.msra.mxu0 %v5357_v17 }
0x14f3   :  { %5085 = vmatprep.subr.bf16.mxu0 %v5358_v46 }
0x14f6   :  { %5086 = vmatpush3.bf16.msra.mxu0 %v5358_v46 }
0x14f7   :  { %5087 = vmatprep.subr.bf16.mxu0 %v5359_v18 }
0x14fa   :  { %5088 = vmatpush3.bf16.msra.mxu0 %v5359_v18 }
0x14fb   :  { %5089 = vmatprep.subr.bf16.mxu0 %v5360_v33 }
0x14fe   :  { %5090 = vmatpush3.bf16.msra.mxu0 %v5360_v33 }
0x14ff   :  { %5091 = vmatprep.subr.bf16.mxu0 %v5361_v37 }
0x1502   :  { %5092 = vmatpush3.bf16.msra.mxu0 %v5361_v37 }
0x1503   :  { %5121 = vmatprep.subr.bf16.mxu0 %v5824_v1 }
0x1505   :  { %5094 = vmatmul.mubr.bf16.vlgmr.msra.gmra.mrb[48].mxu0 %v2067_v54 }
0x1506   :  { %5125 = vmatprep.mubr.msk.bf16.mxu0 %vm5825_vm0, %v5824_v1  ;;  %5122 = vmatpush3.bf16.msra.mxu0 %v6445_v39 }
0x1507   :  { %5123 = vmatprep.subr.bf16.mxu0 %v5824_v1 }
0x150a   :  { %5124 = vmatpush3.bf16.msra.mxu0 %v6448_v19 }
0x150b   :  { %5137 = vmatprep.subr.bf16.mxu0 %v5824_v1 }
0x15b8   :  { %v1952_v62 = vpop.f32.mrb[44].mxu0 }
0x15b9   :  { %v1953_v2 = vadd.f32 %v1952_v62, %v1869_v4  ;;  %v5055_v5 = vpop.f32.mrb[45].mxu0 }
0x15ba   :  { %v1955_v6 = vpop.f32.mrb[46].mxu0 }
0x15bb   :  { %v6398_v8 = vpack.c.bf16 %v1953_v2, %v1953_v2  ;;  %v6400_v9 = vadd.f32 %v1955_v6, %v1869_v4  ;;  %v5056_v10 = vpop.f32.mrb[47].mxu0 }
0x15bd   :  { %5100 = vmatmul.mubr.msk.bf16.vlgmr.msra.gmra.mrb[64].mxu1 %vm534_vm1, %v6398_v8 }
0x15be   :  { %5105 = vmatprep.mubr.msk.bf16.mxu1 %vm5825_vm0, %v5824_v1 }
0x15d8   :  { %v5095_v26 = vpop.f32.mrb[48].mxu0 }
0x15d9   :  { %v2163_v27 = vadd.f32 %v5095_v26, %v2071_v21  ;;  %v2154_v48 = vpop.f32.mrb[49].mxu0 }
0x15da   :  { %v2155_v28 = vadd.f32 %v2154_v48, %v2071_v21  ;;  %v5096_v51 = vpop.f32.mrb[50].mxu0 }
0x15db   :  { %v2166_v40 = vadd.f32 %v5096_v51, %v2071_v21  ;;  %v2157_v41 = vpop.f32.mrb[51].mxu0 }
0x15dc   :  { %v2158_v42 = vadd.f32 %v2157_v41, %v2071_v21 }
0x15dd   :  { %v6415_v29 = vpack.c.bf16 %v2166_v40, %v2163_v27 }
0x15de   :  { %v6417_v53 = vpack.c.bf16 %v2158_v42, %v2155_v28 }
0x15e0   :  { %5104 = vmatpush3.bf16.msra.mxu1 %v6417_v53 }
0x15e1   :  { %5109 = vmatprep.subr.bf16.mxu1 %v5824_v1 }
0x1690   :  { %v2212_v59 = vpop.f32.mrb[64].mxu1 }
0x1691   :  { %v5101_v20 = vpop.f32.mrb[65].mxu1  ;;  %v2219_v23 = vsel %vm2218_vm4, %v2212_v59, -inf }
0x1692   :  { %2220 = vmax.xlane.f32.xlu0 %v2219_v23  ;;  %v2215_v24 = vpop.f32.mrb[66].mxu1  ;;  %v6453_v23 = vld [vmem:[#allocation13 + $0x140] sm:$0xff]  }
0x1693   :  { %v5102_v22 = vpop.f32.mrb[67].mxu1 }
0x1694   :  { %v6457_v22 = vld [vmem:[#allocation13 + $0x148] sm:$0xff]  }
0x171f   :  { %v2221_v14 = vpop.xlane.xlu0 %2220 }
0x1720   :  { %v2222_v31 = vsub.f32 %v2212_v59, %v2221_v14 }
0x1722   :  { %v2223_v55 = vmul.f32 1.442695, %v2222_v31 }
0x1724   :  { %5502 = vpow2.f32 %v2223_v55 }
0x172e   :  { %v5503_v56 = vpop.eup %5502 }
0x172f   :  { %v2225_v57 = vsel %vm2218_vm4, %v5503_v56, 0.0 }
0x1730   :  { %2226 = vadd.xlane.f32.xlu0 %v2225_v57 }
0x1746   :  { %2279 = vrot.lane.b32.xlu0 %v6388_v63, %s5826_s26 }
0x174a   :  { %2276 = vrot.lane.b32.xlu0 %v6398_v8, %s5826_s26 }
0x17bd   :  { %v2227_v50 = vpop.xlane.xlu0 %2226 }
0x17be   :  { %5504 = vrcp.f32 %v2227_v50 }
0x17c1   :  { %v2280_v60 = vpop.permute.xlu0 %2279 }
0x17c2   :  { %v2285_v4 = vsel %vm534_vm1, %v2280_v60, 0 }
0x17c5   :  { %v2277_v62 = vpop.permute.xlu0 %2276 }
0x17c8   :  { %v5505_v58 = vpop.eup %5504 }
0x17c9   :  { %v2229_v49 = vmul.f32 %v5505_v58, %v5503_v56 }
0x17cb   :  { %v2230_v3 = vpack.c.bf16 %v2229_v49, %v2229_v49 }
0x17cd   :  { %5106 = vmatmul.mubr.msk.bf16.vlgmr.msra.gmra.mrb[68].mxu1 %vm2218_vm4, %v2230_v3 }
0x17ce   :  { %5110 = vmatpush3.bf16.xpose.msra.mxu1 %v2285_v4  ;;  %5111 = vmatprep.mubr.msk.bf16.mxu1 %vm5825_vm0, %v5824_v1 }
0x17cf   :  { %5115 = vmatprep.subr.bf16.mxu1 %v5824_v1 }
0x17d5   :  { %5112 = vmatmul.mubr.msk.bf16.vlgmr.msra.gmra.mrb[72].mxu1 %vm534_vm1, %v2277_v62 }
0x17d6   :  { %5117 = vmatprep.mubr.msk.bf16.mxu1 %vm5825_vm0, %v5824_v1 }
0x18a0   :  { %v2268_v2 = vpop.f32.mrb[68].mxu1 }
0x18a1   :  { %v5107_v5 = vpop.f32.mrb[69].mxu1  ;;  %v2274_v21 = vpack.c.bf16 %v2268_v2, %v2268_v2 }
0x18a2   :  { %v2271_v6 = vpop.f32.mrb[70].mxu1 }
0x18a3   :  { %v5108_v10 = vpop.f32.mrb[71].mxu1 }
0x18a8   :  { %v2321_v11 = vpop.f32.mrb[72].mxu1 }
0x18a9   :  { %v5113_v43 = vpop.f32.mrb[73].mxu1  ;;  %v2327_v13 = vsel %vm2218_vm4, %v2321_v11, -inf }
0x18aa   :  { %2328 = vmax.xlane.f32.xlu1 %v2327_v13  ;;  %v2324_v12 = vpop.f32.mrb[74].mxu1 }
0x18ab   :  { %v5114_v15 = vpop.f32.mrb[75].mxu1 }
0x18ac   :  { %v6484_v15 = vld [vmem:[#allocation13 + $0x160] sm:$0xff]  }
0x18bb   :  { %2340 = vrot.lane.b32.xlu1 %v6417_v53, %s5826_s26 }
0x18bf   :  { %2499 = vrot.lane.b32.xlu1 %v6388_v63, %s5820_s4 }
0x18c3   :  { %2497 = vrot.lane.b32.xlu1 %v6398_v8, %s5820_s4 }
0x1937   :  { %v2329_v16 = vpop.xlane.xlu1 %2328 }
0x1938   :  { %v2330_v17 = vsub.f32 %v2321_v11, %v2329_v16 }
0x193a   :  { %v2331_v46 = vmul.f32 1.442695, %v2330_v17 }
0x193b   :  { %v2341_v18 = vpop.permute.xlu1 %2340 }
0x193c   :  { %5506 = vpow2.f32 %v2331_v46  ;;  %5116 = vmatpush3.bf16.msra.mxu1 %v2341_v18 }
0x193d   :  { %5129 = vmatprep.subr.bf16.mxu1 %v5824_v1 }
0x193f   :  { %v2500_v27 = vpop.permute.xlu1 %2499 }
0x1940   :  { %v2505_v41 = vsel %vm534_vm1, %v2500_v27, 0 }
0x1943   :  { %v2498_v55 = vpop.permute.xlu1 %2497 }
0x1946   :  { %v5507_v33 = vpop.eup %5506 }
0x1947   :  { %v2333_v37 = vsel %vm2218_vm4, %v5507_v33, 0.0 }
0x1948   :  { %2334 = vadd.xlane.f32.xlu0 %v2333_v37 }
0x195e   :  { %2559 = vrot.lane.b32.xlu0 %v6417_v53, %s5820_s4 }
0x19d5   :  { %v2335_v54 = vpop.xlane.xlu0 %2334 }
0x19d6   :  { %5508 = vrcp.f32 %v2335_v54 }
0x19d9   :  { %v2560_v26 = vpop.permute.xlu0 %2559 }
0x19e0   :  { %v5509_v59 = vpop.eup %5508 }
0x19e1   :  { %v2337_v20 = vmul.f32 %v5509_v59, %v5507_v33 }
0x19e3   :  { %v2338_v24 = vpack.c.bf16 %v2337_v20, %v2337_v20 }
0x19e5   :  { %5118 = vmatmul.mubr.msk.bf16.vlgmr.msra.gmra.mrb[76].mxu1 %vm2218_vm4, %v2338_v24 }
0x19e6   :  { %5130 = vmatpush3.bf16.msra.mxu1 %v6453_v23  ;;  %5133 = vmatprep.mubr.msk.bf16.mxu1 %vm5825_vm0, %v5824_v1 }
0x19e7   :  { %5131 = vmatprep.subr.bf16.mxu1 %v5824_v1 }
0x19ea   :  { %5132 = vmatpush3.bf16.msra.mxu1 %v6457_v22 }
0x19eb   :  { %5143 = vmatprep.subr.bf16.mxu1 %v5824_v1 }
0x19ed   :  { %5134 = vmatmul.mubr.msk.bf16.vlgmr.msra.gmra.mrb[80].mxu1 %vm534_vm1, %v2274_v21 }
0x19ee   :  { %5144 = vmatpush3.bf16.msra.mxu1 %v2560_v26  ;;  %5145 = vmatprep.mubr.msk.bf16.mxu1 %vm5825_vm0, %v5824_v1 }
0x19ef   :  { %5157 = vmatprep.subr.bf16.mxu1 %v5824_v1 }
0x1ab8   :  { %v2380_v48 = vpop.f32.mrb[76].mxu1 }
0x1ab9   :  { %v2386_v28 = vpack.c.bf16 %v2380_v48, %v2380_v48  ;;  %v5119_v51 = vpop.f32.mrb[77].mxu1 }
0x1aba   :  { %v2383_v40 = vpop.f32.mrb[78].mxu1 }
0x1abb   :  { %v5120_v42 = vpop.f32.mrb[79].mxu1  ;;  %5126 = vmatmul.mubr.msk.bf16.vlgmr.msra.gmra.mrb[52].mxu0 %vm534_vm1, %v2386_v28  ;;  %v6510_v40 = vpack.c.bf16 %v6400_v9, %v6400_v9 }
0x1abc   :  { %5138 = vmatpush3.bf16.xpose.msra.mxu0 %v2505_v41  ;;  %5139 = vmatprep.mubr.msk.bf16.mxu0 %vm5825_vm0, %v5824_v1 }
0x1abd   :  { %5149 = vmatprep.subr.bf16.mxu0 %v5824_v1 }
0x1ac0   :  { %v2491_v14 = vpop.f32.mrb[80].mxu1 }
0x1ac1   :  { %v5135_v31 = vpop.f32.mrb[81].mxu1 }
0x1ac2   :  { %v2494_v56 = vpop.f32.mrb[82].mxu1 }
0x1ac3   :  { %v5136_v57 = vpop.f32.mrb[83].mxu1  ;;  %5140 = vmatmul.mubr.msk.bf16.vlgmr.msra.gmra.mrb[56].mxu0 %vm534_vm1, %v2498_v55  ;;  %v6516_v56 = vld [vmem:[#allocation13 + $0x170] sm:$0xff]  }
0x1ac4   :  { %5153 = vmatprep.mubr.msk.bf16.mxu0 %vm5825_vm0, %v5824_v1  ;;  %5150 = vmatpush3.bf16.msra.mxu0 %v6484_v15 }
0x1ac5   :  { %5151 = vmatprep.subr.bf16.mxu0 %v5824_v1 }
0x1b8e   :  { %v2436_v50 = vpop.f32.mrb[52].mxu0 }
0x1b8f   :  { %v6476_v58 = vadd.f32 %v2491_v14, %v2436_v50  ;;  %v5127_v49 = vpop.f32.mrb[53].mxu0 }
0x1b90   :  { %v2439_v60 = vpop.f32.mrb[54].mxu0  ;;  %v6522_v49 = vld [vmem:[#allocation13 + $0x178] sm:$0xff]  }
0x1b91   :  { %v5128_v3 = vpop.f32.mrb[55].mxu0 }
0x1b96   :  { %v2541_v4 = vpop.f32.mrb[56].mxu0 }
0x1b97   :  { %v5141_v62 = vpop.f32.mrb[57].mxu0  ;;  %v2547_v2 = vsel %vm2218_vm4, %v2541_v4, -inf }
0x1b98   :  { %2548 = vmax.xlane.f32.xlu1 %v2547_v2  ;;  %v2544_v5 = vpop.f32.mrb[58].mxu0 }
0x1b99   :  { %v5142_v6 = vpop.f32.mrb[59].mxu0 }
0x1c25   :  { %v2549_v10 = vpop.xlane.xlu1 %2548 }
0x1c26   :  { %v2550_v11 = vsub.f32 %v2541_v4, %v2549_v10 }
0x1c28   :  { %v2551_v43 = vmul.f32 1.442695, %v2550_v11 }
0x1c2a   :  { %5510 = vpow2.f32 %v2551_v43 }
0x1c34   :  { %v5511_v13 = vpop.eup %5510 }
0x1c35   :  { %v2553_v12 = vsel %vm2218_vm4, %v5511_v13, 0.0 }
0x1c36   :  { %2554 = vadd.xlane.f32.xlu0 %v2553_v12 }
0x1c4c   :  { %2664 = vrot.lane.b32.xlu0 %v6388_v63, %s5827_s28 }
0x1c50   :  { %2662 = vrot.lane.b32.xlu0 %v6398_v8, %s5827_s28  ;;  %v6496_v8 = vld [vmem:[#allocation13 + $0x168] sm:$0xff]  }
0x1c51   :  { %5152 = vmatpush3.bf16.msra.mxu0 %v6496_v8 }
0x1c52   :  { %5163 = vmatprep.subr.bf16.mxu0 %v5824_v1 }
0x1cc3   :  { %v2555_v16 = vpop.xlane.xlu0 %2554 }
0x1cc4   :  { %5512 = vrcp.f32 %v2555_v16 }
0x1cc7   :  { %v2665_v18 = vpop.permute.xlu0 %2664 }
0x1cc8   :  { %v2670_v37 = vsel %vm534_vm1, %v2665_v18, 0 }
0x1ccb   :  { %v2663_v63 = vpop.permute.xlu0 %2662 }
0x1cce   :  { %v5513_v17 = vpop.eup %5512 }
0x1ccf   :  { %v2557_v46 = vmul.f32 %v5513_v17, %v5511_v13 }
0x1cd1   :  { %v2558_v33 = vpack.c.bf16 %v2557_v46, %v2557_v46 }
0x1cd3   :  { %5146 = vmatmul.mubr.msk.bf16.vlgmr.msra.gmra.mrb[84].mxu1 %vm2218_vm4, %v2558_v33 }
0x1cd4   :  { %5158 = vmatpush3.bf16.xpose.msra.mxu1 %v2670_v37  ;;  %5159 = vmatprep.mubr.msk.bf16.mxu1 %vm5825_vm0, %v5824_v1 }
0x1cd5   :  { %5169 = vmatprep.subr.bf16.mxu1 %v5824_v1 }
0x1cdb   :  { %5160 = vmatmul.mubr.msk.bf16.vlgmr.msra.gmra.mrb[88].mxu1 %vm534_vm1, %v2663_v63 }
0x1cdc   :  { %5173 = vmatprep.mubr.msk.bf16.mxu1 %vm5825_vm0, %v5824_v1  ;;  %5170 = vmatpush3.bf16.msra.mxu1 %v6516_v56 }
0x1cdd   :  { %5171 = vmatprep.subr.bf16.mxu1 %v5824_v1 }
0x1ce0   :  { %5172 = vmatpush3.bf16.msra.mxu1 %v6522_v49 }
0x1ce1   :  { %5183 = vmatprep.subr.bf16.mxu1 %v5824_v1 }
0x1da6   :  { %v2599_v54 = vpop.f32.mrb[84].mxu1 }
0x1da7   :  { %v2605_v59 = vpack.c.bf16 %v2599_v54, %v2599_v54  ;;  %v5147_v20 = vpop.f32.mrb[85].mxu1 }
0x1da8   :  { %v2602_v24 = vpop.f32.mrb[86].mxu1 }
0x1da9   :  { %v5148_v21 = vpop.f32.mrb[87].mxu1  ;;  %5154 = vmatmul.mubr.msk.bf16.vlgmr.msra.gmra.mrb[60].mxu0 %vm534_vm1, %v2605_v59 }
0x1daa   :  { %5165 = vmatprep.mubr.msk.bf16.mxu0 %vm5825_vm0, %v5824_v1 }
0x1dae   :  { %v2706_v26 = vpop.f32.mrb[88].mxu1 }
0x1daf   :  { %v5161_v27 = vpop.f32.mrb[89].mxu1  ;;  %v2712_v48 = vsel %vm2218_vm4, %v2706_v26, -inf }
0x1db0   :  { %2713 = vmax.xlane.f32.xlu1 %v2712_v48  ;;  %v2709_v28 = vpop.f32.mrb[90].mxu1 }
0x1db1   :  { %v5162_v51 = vpop.f32.mrb[91].mxu1 }
0x1dc1   :  { %2724 = vrot.lane.b32.xlu1 %v6417_v53, %s5827_s28 }
0x1dc5   :  { %2936 = vrot.lane.b32.xlu1 %v6386_v45, %s5826_s26 }
0x1dc9   :  { %2933 = vrot.lane.b32.xlu1 %v6510_v40, %s5826_s26 }
0x1e3d   :  { %v2714_v41 = vpop.xlane.xlu1 %2713 }
0x1e3e   :  { %v2715_v42 = vsub.f32 %v2706_v26, %v2714_v41 }
0x1e40   :  { %v2716_v14 = vmul.f32 1.442695, %v2715_v42 }
0x1e41   :  { %v2725_v31 = vpop.permute.xlu1 %2724 }
0x1e42   :  { %5514 = vpow2.f32 %v2716_v14  ;;  %5164 = vmatpush3.bf16.msra.mxu0 %v2725_v31 }
0x1e43   :  { %5177 = vmatprep.subr.bf16.mxu0 %v5824_v1 }
0x1e45   :  { %v2937_v6 = vpop.permute.xlu1 %2936 }
0x1e46   :  { %v2942_v10 = vsel %vm534_vm1, %v2937_v6, 0 }
0x1e49   :  { %v2934_v11 = vpop.permute.xlu1 %2933 }
0x1e4c   :  { %v5515_v55 = vpop.eup %5514 }
0x1e4d   :  { %v2718_v53 = vsel %vm2218_vm4, %v5515_v55, 0.0 }
0x1e4e   :  { %2719 = vadd.xlane.f32.xlu0 %v2718_v53 }
0x1e7c   :  { %v2655_v57 = vpop.f32.mrb[60].mxu0 }
0x1e7d   :  { %v6519_v9 = vadd.f32 %v2655_v57, %v6476_v58  ;;  %v5155_v50 = vpop.f32.mrb[61].mxu0  ;;  %v2834_v58 = vsel %vm534_vm1, %v6386_v45, 0 }
0x1e7e   :  { %v2658_v60 = vpop.f32.mrb[62].mxu0 }
0x1e7f   :  { %v5156_v3 = vpop.f32.mrb[63].mxu0 }
0x1edb   :  { %v2720_v4 = vpop.xlane.xlu0 %2719 }
0x1edc   :  { %5516 = vrcp.f32 %v2720_v4 }
0x1ee6   :  { %v5517_v62 = vpop.eup %5516 }
0x1ee7   :  { %v2722_v2 = vmul.f32 %v5517_v62, %v5515_v55 }
0x1ee9   :  { %v2723_v5 = vpack.c.bf16 %v2722_v2, %v2722_v2 }
0x1eeb   :  { %5166 = vmatmul.mubr.msk.bf16.vlgmr.msra.gmra.mrb[64].mxu0 %vm2218_vm4, %v2723_v5 }
0x1eec   :  { %5178 = vmatpush3.bf16.xpose.msra.mxu0 %v2834_v58  ;;  %5179 = vmatprep.mubr.msk.bf16.mxu0 %vm5825_vm0, %v5824_v1 }
0x1eed   :  { %5189 = vmatprep.subr.bf16.mxu0 %v5824_v1 }
0x1ef3   :  { %5180 = vmatmul.mubr.msk.bf16.vlgmr.msra.gmra.mrb[68].mxu0 %vm534_vm1, %v6510_v40 }
0x1ef4   :  { %5190 = vmatpush3.bf16.xpose.msra.mxu0 %v2942_v10  ;;  %5191 = vmatprep.mubr.msk.bf16.mxu0 %vm5825_vm0, %v5824_v1 }
0x1ef5   :  { %5201 = vmatprep.subr.bf16.mxu0 %v5824_v1 }
0x1efb   :  { %5192 = vmatmul.mubr.msk.bf16.vlgmr.msra.gmra.mrb[72].mxu0 %vm534_vm1, %v2934_v11 }
0x1efc   :  { %5202 = vmatpush3.bf16.msra.mxu0 %v6445_v39  ;;  %5205 = vmatprep.mubr.msk.bf16.mxu0 %vm5825_vm0, %v5824_v1 }
0x1efd   :  { %5203 = vmatprep.subr.bf16.mxu0 %v5824_v1 }
0x1f00   :  { %5204 = vmatpush3.bf16.msra.mxu0 %v6448_v19 }
0x1f01   :  { %5217 = vmatprep.subr.bf16.mxu0 %v5824_v1 }
0x1fbe   :  { %v2764_v43 = vpop.f32.mrb[64].mxu0 }
0x1fbf   :  { %v2770_v13 = vpack.c.bf16 %v2764_v43, %v2764_v43  ;;  %v5167_v12 = vpop.f32.mrb[65].mxu0 }
0x1fc0   :  { %v2767_v16 = vpop.f32.mrb[66].mxu0 }
0x1fc1   :  { %v5168_v17 = vpop.f32.mrb[67].mxu0  ;;  %5174 = vmatmul.mubr.msk.bf16.vlgmr.msra.gmra.mrb[92].mxu1 %vm534_vm1, %v2770_v13 }
0x1fc2   :  { %5184 = vmatpush3.bf16.msra.mxu1 %v6415_v29  ;;  %5185 = vmatprep.mubr.msk.bf16.mxu1 %vm5825_vm0, %v5824_v1 }
0x1fc3   :  { %5195 = vmatprep.subr.bf16.mxu1 %v5824_v1 }
0x1fc6   :  { %v2870_v39 = vpop.f32.mrb[68].mxu0 }
0x1fc7   :  { %v5181_v46 = vpop.f32.mrb[69].mxu0  ;;  %v2876_v19 = vsel %vm2218_vm4, %v2870_v39, -inf }
0x1fc8   :  { %2877 = vmax.xlane.f32.xlu1 %v2876_v19  ;;  %v2873_v18 = vpop.f32.mrb[70].mxu0 }
0x1fc9   :  { %v5182_v33 = vpop.f32.mrb[71].mxu0 }
0x1fce   :  { %v2978_v37 = vpop.f32.mrb[72].mxu0 }
0x1fcf   :  { %v5193_v63 = vpop.f32.mrb[73].mxu0  ;;  %v2984_v54 = vsel %vm2218_vm4, %v2978_v37, -inf }
0x1fd0   :  { %2985 = vmax.xlane.f32.xlu0 %v2984_v54  ;;  %v2981_v59 = vpop.f32.mrb[74].mxu0 }
0x1fd1   :  { %v5194_v20 = vpop.f32.mrb[75].mxu0 }
0x1fd9   :  { %3132 = vrot.lane.b32.xlu1 %v6386_v45, %s5820_s4 }
0x2055   :  { %v2878_v24 = vpop.xlane.xlu1 %2877 }
0x2056   :  { %v2879_v21 = vsub.f32 %v2870_v39, %v2878_v24 }
0x2058   :  { %v2880_v26 = vmul.f32 1.442695, %v2879_v21 }
0x205a   :  { %5518 = vpow2.f32 %v2880_v26 }
0x205d   :  { %v2986_v27 = vpop.xlane.xlu0 %2985 }
0x205e   :  { %v2987_v48 = vsub.f32 %v2978_v37, %v2986_v27 }
0x2060   :  { %v2988_v28 = vmul.f32 1.442695, %v2987_v48 }
0x2062   :  { %5520 = vpow2.f32 %v2988_v28 }
0x2064   :  { %v5519_v51 = vpop.eup %5518 }
0x2065   :  { %v2882_v41 = vsel %vm2218_vm4, %v5519_v51, 0.0 }
0x2066   :  { %2883 = vadd.xlane.f32.xlu0 %v2882_v41 }
0x206c   :  { %v5521_v42 = vpop.eup %5520 }
0x206d   :  { %v2990_v14 = vsel %vm2218_vm4, %v5521_v42, 0.0 }
0x206e   :  { %2991 = vadd.xlane.f32.xlu0 %v2990_v14 }
0x2084   :  { %2997 = vrot.lane.b32.xlu0 %v6415_v29, %s5826_s26 }
0x2088   :  { %3130 = vrot.lane.b32.xlu0 %v6510_v40, %s5820_s4 }
0x2094   :  { %v2820_v31 = vpop.f32.mrb[92].mxu1 }
0x2095   :  { %v6562_v55 = vadd.f32 %v2820_v31, %v6519_v9  ;;  %v5175_v53 = vpop.f32.mrb[93].mxu1 }
0x2096   :  { %v2823_v57 = vpop.f32.mrb[94].mxu1 }
0x2097   :  { %v5176_v50 = vpop.f32.mrb[95].mxu1 }
0x20f3   :  { %v2884_v60 = vpop.xlane.xlu0 %2883 }
0x20f4   :  { %5522 = vrcp.f32 %v2884_v60 }
0x20fb   :  { %v2992_v3 = vpop.xlane.xlu0 %2991 }
0x20fc   :  { %5524 = vrcp.f32 %v2992_v3 }
0x20fe   :  { %v5523_v4 = vpop.eup %5522 }
0x20ff   :  { %v2886_v62 = vmul.f32 %v5523_v4, %v5519_v51  ;;  %v2998_v5 = vpop.permute.xlu0 %2997 }
0x2101   :  { %v2887_v2 = vpack.c.bf16 %v2886_v62, %v2886_v62 }
0x2103   :  { %5186 = vmatmul.mubr.msk.bf16.vlgmr.msra.gmra.mrb[96].mxu1 %vm2218_vm4, %v2887_v2  ;;  %v3131_v18 = vpop.permute.xlu0 %3130 }
0x2104   :  { %5196 = vmatpush3.bf16.msra.mxu1 %v2998_v5  ;;  %5197 = vmatprep.mubr.msk.bf16.mxu1 %vm5825_vm0, %v5824_v1 }
0x2105   :  { %5209 = vmatprep.subr.bf16.mxu1 %v5824_v1 }
0x2106   :  { %v5525_v9 = vpop.eup %5524 }
0x2107   :  { %v2994_v58 = vmul.f32 %v5525_v9, %v5521_v42 }
0x2109   :  { %v2995_v6 = vpack.c.bf16 %v2994_v58, %v2994_v58 }
0x210b   :  { %5198 = vmatmul.mubr.msk.bf16.vlgmr.msra.gmra.mrb[100].mxu1 %vm2218_vm4, %v2995_v6 }
0x210c   :  { %5210 = vmatpush3.bf16.msra.mxu1 %v6453_v23  ;;  %5213 = vmatprep.mubr.msk.bf16.mxu1 %vm5825_vm0, %v5824_v1  ;;  %v3133_v23 = vpop.permute.xlu1 %3132 }
0x210d   :  { %5211 = vmatprep.subr.bf16.mxu1 %v5824_v1  ;;  %v3138_v19 = vsel %vm534_vm1, %v3133_v23, 0 }
0x2110   :  { %5212 = vmatpush3.bf16.msra.mxu1 %v6457_v22 }
0x2111   :  { %5223 = vmatprep.subr.bf16.mxu1 %v5824_v1 }
0x21d6   :  { %v2925_v10 = vpop.f32.mrb[96].mxu1 }
0x21d7   :  { %v2931_v11 = vpack.c.bf16 %v2925_v10, %v2925_v10  ;;  %v5187_v43 = vpop.f32.mrb[97].mxu1 }
0x21d8   :  { %v2928_v13 = vpop.f32.mrb[98].mxu1 }
0x21d9   :  { %v5188_v12 = vpop.f32.mrb[99].mxu1  ;;  %5214 = vmatmul.mubr.msk.bf16.vlgmr.msra.gmra.mrb[104].mxu1 %vm534_vm1, %v2931_v11 }
0x21da   :  { %5225 = vmatprep.mubr.msk.bf16.mxu1 %vm5825_vm0, %v5824_v1 }
0x21de   :  { %v3037_v16 = vpop.f32.mrb[100].mxu1 }
0x21df   :  { %v3043_v17 = vpack.c.bf16 %v3037_v16, %v3037_v16  ;;  %v5199_v39 = vpop.f32.mrb[101].mxu1  ;;  %v3438_v16 = vsub.s32 7, %v6065_v35 }
0x21e0   :  { %v3040_v46 = vpop.f32.mrb[102].mxu1 }
0x21e1   :  { %v5200_v22 = vpop.f32.mrb[103].mxu1  ;;  %5206 = vmatmul.mubr.msk.bf16.vlgmr.msra.gmra.mrb[76].mxu0 %vm534_vm1, %v3043_v17  ;;  %v3439_v17 = vrot.slane %v6382_v47, %v3438_v16 }
0x21e2   :  { %5218 = vmatpush3.bf16.xpose.msra.mxu0 %v3138_v19  ;;  %5219 = vmatprep.mubr.msk.bf16.mxu0 %vm5825_vm0, %v5824_v1 }
0x21e3   :  { %5229 = vmatprep.subr.bf16.mxu0 %v5824_v1  ;;  %v3440_v46 = vadd.f32 %v3439_v17, %v6562_v55 }
0x21e9   :  { %5220 = vmatmul.mubr.msk.bf16.vlgmr.msra.gmra.mrb[80].mxu0 %vm534_vm1, %v3131_v18 }
0x21ea   :  { %5230 = vmatpush3.bf16.msra.mxu0 %v6484_v15  ;;  %5233 = vmatprep.mubr.msk.bf16.mxu0 %vm5825_vm0, %v5824_v1 }
0x21eb   :  { %5231 = vmatprep.subr.bf16.mxu0 %v5824_v1 }
0x21ee   :  { %5232 = vmatpush3.bf16.msra.mxu0 %v6496_v8 }
0x21ef   :  { %5243 = vmatprep.subr.bf16.mxu0 %v5824_v1 }
0x22ac   :  { %v3124_v33 = vpop.f32.mrb[104].mxu1 }
0x22ad   :  { %v5215_v37 = vpop.f32.mrb[105].mxu1 }
0x22ae   :  { %v3127_v63 = vpop.f32.mrb[106].mxu1 }
0x22af   :  { %v5216_v54 = vpop.f32.mrb[107].mxu1 }
0x22b4   :  { %v3081_v59 = vpop.f32.mrb[76].mxu0 }
0x22b5   :  { %v6590_v20 = vadd.f32 %v3124_v33, %v3081_v59  ;;  %v5207_v24 = vpop.f32.mrb[77].mxu0 }
0x22b6   :  { %v3084_v21 = vpop.f32.mrb[78].mxu0 }
0x22b7   :  { %v5208_v26 = vpop.f32.mrb[79].mxu0 }
0x22bc   :  { %v3174_v15 = vpop.f32.mrb[80].mxu0 }
0x22bd   :  { %v5221_v27 = vpop.f32.mrb[81].mxu0  ;;  %v3180_v48 = vsel %vm2218_vm4, %v3174_v15, -inf }
0x22be   :  { %3181 = vmax.xlane.f32.xlu0 %v3180_v48  ;;  %v3177_v28 = vpop.f32.mrb[82].mxu0 }
0x22bf   :  { %v5222_v51 = vpop.f32.mrb[83].mxu0 }
0x22d4   :  { %3192 = vrot.lane.b32.xlu0 %v6415_v29, %s5820_s4 }
0x22d8   :  { %3283 = vrot.lane.b32.xlu0 %v6510_v40, %s5827_s28 }
0x234b   :  { %v3182_v8 = vpop.xlane.xlu0 %3181 }
0x234c   :  { %v3183_v41 = vsub.f32 %v3174_v15, %v3182_v8 }
0x234e   :  { %v3184_v42 = vmul.f32 1.442695, %v3183_v41 }
0x234f   :  { %v3193_v14 = vpop.permute.xlu0 %3192 }
0x2350   :  { %5526 = vpow2.f32 %v3184_v42  ;;  %5224 = vmatpush3.bf16.msra.mxu1 %v3193_v14 }
0x2351   :  { %5237 = vmatprep.subr.bf16.mxu1 %v5824_v1 }
0x2353   :  { %v3284_v62 = vpop.permute.xlu0 %3283 }
0x235a   :  { %v5527_v31 = vpop.eup %5526 }
0x235b   :  { %v3186_v53 = vsel %vm2218_vm4, %v5527_v31, 0.0 }
0x235c   :  { %3187 = vadd.xlane.f32.xlu1 %v3186_v53 }
0x236d   :  { %3285 = vrot.lane.b32.xlu1 %v6386_v45, %s5827_s28 }
0x23e9   :  { %v3188_v57 = vpop.xlane.xlu1 %3187 }
0x23ea   :  { %5528 = vrcp.f32 %v3188_v57  ;;  %v5370_v57 = vld [vmem:[#allocation14] ss:$24 sps:$4 sm:$0xff]  }
0x23ed   :  { %v3286_v40 = vpop.permute.xlu1 %3285 }
0x23ee   :  { %v3291_v4 = vsel %vm534_vm1, %v3286_v40, 0  ;;  %v5375_v40 = vld [vmem:[#allocation14 + $0xc] ss:$24 sps:$4 sm:$0xff]  }
0x23f4   :  { %v5529_v50 = vpop.eup %5528 }
0x23f5   :  { %v3190_v60 = vmul.f32 %v5529_v50, %v5527_v31  ;;  %v5372_v50 = vld [vmem:[#allocation14 + $0x4] ss:$24 sps:$4 sm:$0xff]  }
0x23f7   :  { %v3191_v3 = vpack.c.bf16 %v3190_v60, %v3190_v60  ;;  %v5373_v60 = vld [vmem:[#allocation14 + $0x8] ss:$24 sps:$4 sm:$0xff]  }
0x23f9   :  { %5226 = vmatmul.mubr.msk.bf16.vlgmr.msra.gmra.mrb[108].mxu1 %vm2218_vm4, %v3191_v3  ;;  %v5378_v3 = vld [vmem:[#allocation14 + $0x34] ss:$24 sps:$4 sm:$0xff]  }
0x23fa   :  { %5238 = vmatpush3.bf16.xpose.msra.mxu1 %v3291_v4  ;;  %5239 = vmatprep.mubr.msk.bf16.mxu1 %vm5825_vm0, %v5824_v1  ;;  %v5381_v4 = vld [vmem:[#allocation14 + $0x3c] ss:$24 sps:$4 sm:$0xff]  }
0x23fb   :  { %5249 = vmatprep.subr.bf16.mxu1 %v5824_v1 }
0x2401   :  { %5240 = vmatmul.mubr.msk.bf16.vlgmr.msra.gmra.mrb[112].mxu1 %vm534_vm1, %v3284_v62  ;;  %v5376_v62 = vld [vmem:[#allocation14 + $0x30] ss:$24 sps:$4 sm:$0xff]  }
0x2402   :  { %5250 = vmatpush3.bf16.msra.mxu1 %v6516_v56  ;;  %5253 = vmatprep.mubr.msk.bf16.mxu1 %vm5825_vm0, %v5824_v1 }
0x2403   :  { %5251 = vmatprep.subr.bf16.mxu1 %v5824_v1 }
0x2406   :  { %5252 = vmatpush3.bf16.msra.mxu1 %v6522_v49 }
0x2407   :  { %3810 = vmatprep.subr.bf16.mxu1 %v5375_v40 }
0x24cc   :  { %v3232_v45 = vpop.f32.mrb[108].mxu1 }
0x24cd   :  { %v3238_v2 = vpack.c.bf16 %v3232_v45, %v3232_v45  ;;  %v5227_v5 = vpop.f32.mrb[109].mxu1  ;;  %v5384_v45 = vld [vmem:[#allocation14 + $0x64] ss:$24 sps:$4 sm:$0xff]  }
0x24ce   :  { %v3235_v9 = vpop.f32.mrb[110].mxu1  ;;  %v5382_v5 = vld [vmem:[#allocation14 + $0x60] ss:$24 sps:$4 sm:$0xff]  }
0x24cf   :  { %v5228_v58 = vpop.f32.mrb[111].mxu1  ;;  %5234 = vmatmul.mubr.msk.bf16.vlgmr.msra.gmra.mrb[84].mxu0 %vm534_vm1, %v3238_v2  ;;  %v5387_v2 = vld [vmem:[#allocation14 + $0x6c] ss:$24 sps:$4 sm:$0xff]   ;;  %v5385_v9 = vld [vmem:[#allocation14 + $0x68] ss:$24 sps:$4 sm:$0xff]  }
0x24d0   :  { %5245 = vmatprep.mubr.msk.bf16.mxu0 %vm5825_vm0, %v5824_v1 }
0x24d4   :  { %v3327_v6 = vpop.f32.mrb[112].mxu1 }
0x24d5   :  { %v5241_v10 = vpop.f32.mrb[113].mxu1  ;;  %v3333_v56 = vsel %vm2218_vm4, %v3327_v6, -inf }
0x24d6   :  { %3334 = vmax.xlane.f32.xlu0 %v3333_v56  ;;  %v3330_v11 = vpop.f32.mrb[114].mxu1 }
0x24d7   :  { %v5242_v43 = vpop.f32.mrb[115].mxu1  ;;  %v5390_v11 = vld [vmem:[#allocation14 + $0x94] ss:$24 sps:$4 sm:$0xff]  }
0x24d8   :  { %v5388_v43 = vld [vmem:[#allocation14 + $0x90] ss:$24 sps:$4 sm:$0xff]  }
0x24ec   :  { %3345 = vrot.lane.b32.xlu0 %v6415_v29, %s5827_s28  ;;  %v6625_v29 = vadd.f32 %v3440_v46, %v6369_v30  ;;  %v5402_v46 = vld [vmem:[#allocation14 + $0xf4] ss:$24 sps:$4 sm:$0xff]  }
0x2563   :  { %v3335_v49 = vpop.xlane.xlu0 %3334 }
0x2564   :  { %v3336_v13 = vsub.f32 %v3327_v6, %v3335_v49  ;;  %v5393_v49 = vld [vmem:[#allocation14 + $0x9c] ss:$24 sps:$4 sm:$0xff]  }
0x2566   :  { %v3337_v12 = vmul.f32 1.442695, %v3336_v13  ;;  %v5391_v13 = vld [vmem:[#allocation14 + $0x98] ss:$24 sps:$4 sm:$0xff]  }
0x2567   :  { %v3346_v23 = vpop.permute.xlu0 %3345 }
0x2568   :  { %5530 = vpow2.f32 %v3337_v12  ;;  %5244 = vmatpush3.bf16.msra.mxu0 %v3346_v23  ;;  %v5396_v12 = vld [vmem:[#allocation14 + $0xc4] ss:$24 sps:$4 sm:$0xff]   ;;  %v5394_v23 = vld [vmem:[#allocation14 + $0xc0] ss:$24 sps:$4 sm:$0xff]  }
0x2569   :  { %3767 = vmatprep.subr.bf16.mxu0 %v5372_v50 }
0x2572   :  { %v5531_v39 = vpop.eup %5530 }
0x2573   :  { %v3339_v19 = vsel %vm2218_vm4, %v5531_v39, 0.0 }
0x2574   :  { %3340 = vadd.xlane.f32.xlu1 %v3339_v19  ;;  %v5400_v19 = vld [vmem:[#allocation14 + $0xf0] ss:$24 sps:$4 sm:$0xff]  }
0x2578   :  { %3444 = vadd.xlane.f32.xlu1 %v6625_v29 }
0x25a2   :  { %v3276_v22 = vpop.f32.mrb[84].mxu0 }
0x25a3   :  { %v3282_v18 = vadd.f32 %v3276_v22, %v6590_v20  ;;  %v5235_v33 = vpop.f32.mrb[85].mxu0  ;;  %v5405_v22 = vld [vmem:[#allocation14 + $0xfc] ss:$24 sps:$4 sm:$0xff]  }
0x25a4   :  { %v3279_v37 = vpop.f32.mrb[86].mxu0  ;;  %v5408_v33 = vld [vmem:[#allocation14 + $0x124] ss:$24 sps:$4 sm:$0xff]  }
0x25a5   :  { %v5236_v63 = vpop.f32.mrb[87].mxu0  ;;  %v5406_v37 = vld [vmem:[#allocation14 + $0x120] ss:$24 sps:$4 sm:$0xff]  }
0x25a6   :  { %v5411_v63 = vld [vmem:[#allocation14 + $0x12c] ss:$24 sps:$4 sm:$0xff]  }
0x2601   :  { %v3341_v54 = vpop.xlane.xlu1 %3340 }
0x2602   :  { %5532 = vrcp.f32 %v3341_v54  ;;  %v5409_v54 = vld [vmem:[#allocation14 + $0x128] ss:$24 sps:$4 sm:$0xff]  }
0x2605   :  { %v3445_v20 = vpop.xlane.xlu1 %3444 }
0x2606   :  { %v3448_v48 = vmul.f32 0.0078125, %v3445_v20 }
0x2608   :  { %v6634_v14 = vsub.f32 %v6625_v29, %v3448_v48 }
0x260a   :  { %v3452_v53 = vmul.f32 %v6634_v14, %v6634_v14 }
0x260c   :  { %v5533_v47 = vpop.eup %5532 }
0x260d   :  { %v3343_v59 = vmul.f32 %v5533_v47, %v5531_v39  ;;  %v5397_v39 = vld [vmem:[#allocation14 + $0xc8] ss:$24 sps:$4 sm:$0xff]   ;;  %v5414_v47 = vld [vmem:[#allocation14 + $0x154] ss:$24 sps:$4 sm:$0xff]  }
0x260f   :  { %v3344_v24 = vpack.c.bf16 %v3343_v59, %v3343_v59  ;;  %v5412_v59 = vld [vmem:[#allocation14 + $0x150] ss:$24 sps:$4 sm:$0xff]  }
0x2611   :  { %5246 = vmatmul.mubr.msk.bf16.vlgmr.msra.gmra.mrb[88].mxu0 %vm2218_vm4, %v3344_v24  ;;  %v5417_v24 = vld [vmem:[#allocation14 + $0x15c] ss:$24 sps:$4 sm:$0xff]  }
0x2612   :  { %3799 = vmatprep.mubr.bf16.mxu0 %v5823_v0  ;;  %3768 = vmatpush1.bf16.msra.mxu0 %v5370_v57 }
0x2613   :  { %3769 = vmatprep.subr.bf16.mxu0 %v5378_v3 }
0x2616   :  { %3770 = vmatpush1.bf16.msra.mxu0 %v5376_v62 }
0x2617   :  { %3771 = vmatprep.subr.bf16.mxu0 %v5384_v45  ;;  %v5426_v45 = vld [vmem:[#allocation14 + $0x74] ss:$24 sps:$4 sm:$0xff]  }
0x261a   :  { %3772 = vmatpush1.bf16.msra.mxu0 %v5382_v5  ;;  %v5429_v5 = vld [vmem:[#allocation14 + $0xa4] ss:$24 sps:$4 sm:$0xff]  }
0x261b   :  { %3773 = vmatprep.subr.bf16.mxu0 %v5390_v11  ;;  %v5438_v11 = vld [vmem:[#allocation14 + $0x134] ss:$24 sps:$4 sm:$0xff]  }
0x261e   :  { %3774 = vmatpush1.bf16.msra.mxu0 %v5388_v43  ;;  %v5441_v43 = vld [vmem:[#allocation14 + $0x164] ss:$24 sps:$4 sm:$0xff]  }
0x261f   :  { %3775 = vmatprep.subr.bf16.mxu0 %v5396_v12  ;;  %v6665_v12 = vld [vmem:[%s6784_s10 + $0x8] sm:$0xf] }
0x2622   :  { %3776 = vmatpush1.bf16.msra.mxu0 %v5394_v23 }
0x2623   :  { %3777 = vmatprep.subr.bf16.mxu0 %v5402_v46 }
0x2626   :  { %3778 = vmatpush1.bf16.msra.mxu0 %v5400_v19 }
0x2627   :  { %3779 = vmatprep.subr.bf16.mxu0 %v5408_v33 }
0x262a   :  { %3780 = vmatpush1.bf16.msra.mxu0 %v5406_v37 }
0x262b   :  { %3781 = vmatprep.subr.bf16.mxu0 %v5414_v47 }
0x262e   :  { %3782 = vmatpush1.bf16.msra.mxu0 %v5412_v59 }
0x26e4   :  { %v3385_v55 = vpop.f32.mrb[88].mxu0 }
0x26e5   :  { %v3391_v30 = vpack.c.bf16 %v3385_v55, %v3385_v55  ;;  %v5247_v21 = vpop.f32.mrb[89].mxu0  ;;  %v5415_v55 = vld [vmem:[#allocation14 + $0x158] ss:$24 sps:$4 sm:$0xff]  }
0x26e6   :  { %v3388_v26 = vpop.f32.mrb[90].mxu0 }
0x26e7   :  { %v5248_v15 = vpop.f32.mrb[91].mxu0  ;;  %5254 = vmatmul.mubr.msk.bf16.vlgmr.msra.gmra.mrb[116].mxu1 %vm534_vm1, %v3391_v30  ;;  %v5420_v30 = vld [vmem:[#allocation14 + $0x14] ss:$24 sps:$4 sm:$0xff]  }
0x26e8   :  { %3842 = vmatprep.mubr.bf16.mxu1 %v5823_v0  ;;  %3811 = vmatpush1.bf16.msra.mxu1 %v5373_v60 }
0x26e9   :  { %3812 = vmatprep.subr.bf16.mxu1 %v5381_v4  ;;  %3853 = vmatprep.subr.bf16.mxu0 %v5420_v30  ;;  %v5418_v4 = vld [vmem:[#allocation14 + $0x10] ss:$24 sps:$4 sm:$0xff]  }
0x27ba   :  { %v3429_v27 = vpop.f32.mrb[116].mxu1 }
0x27bb   :  { %v3435_v28 = vadd.f32 %v3429_v27, %v3282_v18  ;;  %v5255_v51 = vpop.f32.mrb[117].mxu1  ;;  %v5403_v18 = vld [vmem:[#allocation14 + $0xf8] ss:$24 sps:$4 sm:$0xff]  }
0x27bc   :  { %v3432_v8 = vpop.f32.mrb[118].mxu1 }
0x27bd   :  { %v3441_v41 = vadd.f32 %v3439_v17, %v3435_v28  ;;  %v5256_v42 = vpop.f32.mrb[119].mxu1  ;;  %v5399_v17 = vld [vmem:[#allocation14 + $0xcc] ss:$24 sps:$4 sm:$0xff]  }
0x27be   :  { %v6647_v8 = vld [vmem:[%s6783_s9 + $0x8] sm:$0xff] }
0x27bf   :  { %v6637_v31 = vadd.f32 %v3441_v41, %v6372_v32  ;;  %v5379_v32 = vld [vmem:[#allocation14 + $0x38] ss:$24 sps:$4 sm:$0xff]   ;;  %v3469_v41 = vrot.slane %v6647_v8, %v6102_v52  ;;  %v3475_v50 = vrot.slane %v6647_v8, %v6323_v7 }
0x27c0   :  { %3813 = vmatpush1.bf16.msra.mxu1 %v5379_v32  ;;  %v5421_v32 = vld [vmem:[#allocation14 + $0x40] ss:$24 sps:$4 sm:$0xff]  }
0x27c1   :  { %3446 = vadd.xlane.f32.xlu1 %v6637_v31  ;;  %3814 = vmatprep.subr.bf16.mxu1 %v5387_v2  ;;  %v5424_v2 = vld [vmem:[#allocation14 + $0x70] ss:$24 sps:$4 sm:$0xff]  }
0x27c4   :  { %3815 = vmatpush1.bf16.msra.mxu1 %v5385_v9  ;;  %v5427_v9 = vld [vmem:[#allocation14 + $0xa0] ss:$24 sps:$4 sm:$0xff]  }
0x27c5   :  { %3454 = vadd.xlane.f32.xlu1 %v3452_v53  ;;  %3816 = vmatprep.subr.bf16.mxu1 %v5393_v49  ;;  %v5439_v49 = vld [vmem:[#allocation14 + $0x160] ss:$24 sps:$4 sm:$0xff]  }
0x27c8   :  { %3817 = vmatpush1.bf16.msra.mxu1 %v5391_v13  ;;  %v6660_v13 = vld [vmem:[%s6784_s10] sm:$0xff]  ;;  %s5828_s10 = smov [#allocation17]  }
0x27c9   :  { %3818 = vmatprep.subr.bf16.mxu1 %v5399_v17  ;;  %v3901_v23 = vrot.slane %v6660_v13, %v6076_v38  ;;  %v3909_v17 = vrot.slane %v6665_v12, %v6076_v38  ;;  %v4115_v35 = vrot.slane %v6660_v13, %v6323_v7  ;;  %s4469_s3 = sshll.u32 %s5828_s10, 4  ;;  %s4470_s3 = int_to_ptr.vmem [resolvable:$true] %s4469_s3 }
0x27ca   :  { %s5774_s20 = scalar_lea.vmem %s4470_s3, 256  ;;  %p5779_p3 = scmp.lt.s32.totalorder %s4470_s3, %s4470_s3 }
0x27cb   :  { %v3916_v46 = vrot.slane %v3901_v23, %v6076_v38  ;;  %v3924_v19 = vrot.slane %v3909_v17, %v6076_v38  ;;  %p5775_p2 = scmp.ne.s32.totalorder %s4470_s3, %s5774_s20  ;;  %p5780_p4 = scmp.lt.s32.totalorder %s5774_s20, %s5774_s20 }
0x27cc   :  { %3819 = vmatpush1.bf16.msra.mxu1 %v5397_v39  ;;  %v3905_v39 = vrot.slane %v6660_v13, %v6394_v61 }
0x27cd   :  { %3820 = vmatprep.subr.bf16.mxu1 %v5405_v22  ;;  %p5781_p5 = por %p5780_p4, %p5779_p3 }
0x27ce   :  { %v3920_v22 = vrot.slane %v3905_v39, %v6076_v38 }
0x27cf   :  { %p5782_p6 = pnand %p5781_p5, %p5775_p2 }
0x27d0   :  { %3821 = vmatpush1.bf16.msra.mxu1 %v5403_v18 }
0x27d1   :  { %3822 = vmatprep.subr.bf16.mxu1 %v5411_v63 }
0x27d4   :  { %3823 = vmatpush1.bf16.msra.mxu1 %v5409_v54 }
0x27d5   :  { %3824 = vmatprep.subr.bf16.mxu1 %v5417_v24 }
0x27d8   :  { %3825 = vmatpush1.bf16.msra.mxu1 %v5415_v55 }
0x284e   :  { %v3447_v58 = vpop.xlane.xlu1 %3446 }
0x284f   :  { %v3449_v6 = vmul.f32 0.0078125, %v3447_v58  ;;  %v5432_v58 = vld [vmem:[#allocation14 + $0xd4] ss:$24 sps:$4 sm:$0xff]  }
0x2851   :  { %v3451_v10 = vsub.f32 %v6637_v31, %v3449_v6  ;;  %v5430_v6 = vld [vmem:[#allocation14 + $0xd0] ss:$24 sps:$4 sm:$0xff]  }
0x2852   :  { %v3455_v21 = vpop.xlane.xlu1 %3454 }
0x2853   :  { %v3453_v56 = vmul.f32 %v3451_v10, %v3451_v10  ;;  %v3458_v26 = vmul.f32 0.0078125, %v3455_v21 }
0x2855   :  { %3456 = vadd.xlane.f32.xlu0 %v3453_v56  ;;  %v3460_v15 = vadd.f32 1e-05, %v3458_v26  ;;  %v5433_v56 = vld [vmem:[#allocation14 + $0x100] ss:$24 sps:$4 sm:$0xff]  }
0x2857   :  { %5534 = vrsqrt.f32 %v3460_v15 }
0x2861   :  { %v5535_v28 = vpop.eup %5534 }
0x2862   :  { %v3464_v51 = vmul.f32 %v5535_v28, %v6634_v14  ;;  %v5423_v14 = vld [vmem:[#allocation14 + $0x44] ss:$24 sps:$4 sm:$0xff]  }
0x2864   :  { %v3470_v57 = vmul.f32 %v3469_v41, %v3464_v51 }
0x2866   :  { %v3476_v40 = vadd.f32 %v3475_v50, %v3470_v57 }
0x28e2   :  { %v3457_v20 = vpop.xlane.xlu0 %3456 }
0x28e3   :  { %v3459_v27 = vmul.f32 0.0078125, %v3457_v20 }
0x28e5   :  { %v3461_v48 = vadd.f32 1e-05, %v3459_v27 }
0x28e7   :  { %5536 = vrsqrt.f32 %v3461_v48 }
0x28f1   :  { %v5537_v42 = vpop.eup %5536 }
0x28f2   :  { %v3465_v53 = vmul.f32 %v5537_v42, %v3451_v10  ;;  %v5435_v10 = vld [vmem:[#allocation14 + $0x104] ss:$24 sps:$4 sm:$0xff]  }
0x28f4   :  { %v3471_v60 = vmul.f32 %v3469_v41, %v3465_v53 }
0x28f6   :  { %v3477_v3 = vadd.f32 %v3475_v50, %v3471_v60 }
0x28f8   :  { %v3526_v62 = vpack.c.bf16 %v3477_v3, %v3476_v40 }
0x28fa   :  { %3800 = vmatmul.mubr.bf16.vlgmr.msra.gmra.mrb[92].mxu0 %v3526_v62  ;;  %3843 = vmatmul.mubr.bf16.vlgmr.msra.gmra.mrb[120].mxu1 %v3526_v62 }
0x28fb   :  { %3854 = vmatpush1.bf16.msra.mxu0 %v5418_v4  ;;  %3885 = vmatprep.mubr.bf16.mxu0 %v5823_v0  ;;  %v5436_v0 = vld [vmem:[#allocation14 + $0x130] ss:$24 sps:$4 sm:$0xff]  }
0x28fc   :  { %3855 = vmatprep.subr.bf16.mxu0 %v5423_v14 }
0x28ff   :  { %3856 = vmatpush1.bf16.msra.mxu0 %v5421_v32 }
0x2900   :  { %3857 = vmatprep.subr.bf16.mxu0 %v5426_v45  ;;  %v3934_v45 = vrot.slane %v6660_v13, %v6068_v36 }
0x2903   :  { %3858 = vmatpush1.bf16.msra.mxu0 %v5424_v2 }
0x2904   :  { %3859 = vmatprep.subr.bf16.mxu0 %v5429_v5  ;;  %v4013_v5 = vand.u32 127, %v425_v34 }
0x2907   :  { %3860 = vmatpush1.bf16.msra.mxu0 %v5427_v9  ;;  %v3949_v9 = vrot.slane %v3934_v45, %v6068_v36 }
0x2908   :  { %3861 = vmatprep.subr.bf16.mxu0 %v5432_v58  ;;  %v3938_v58 = vrot.slane %v6660_v13, %v6377_v44 }
0x290b   :  { %3862 = vmatpush1.bf16.msra.mxu0 %v5430_v6  ;;  %v3942_v6 = vrot.slane %v6665_v12, %v6068_v36 }
0x290c   :  { %3863 = vmatprep.subr.bf16.mxu0 %v5435_v10 }
0x290d   :  { %v3957_v17 = vrot.slane %v3942_v6, %v6068_v36 }
0x290f   :  { %3864 = vmatpush1.bf16.msra.mxu0 %v5433_v56  ;;  %v4015_v56 = vadd.s32 256, %v4013_v5 }
0x2910   :  { %3865 = vmatprep.subr.bf16.mxu0 %v5438_v11 }
0x2911   :  { %vm4018_vm5 = vcmp.lt.s32.totalorder %v4015_v56, 341 }
0x2913   :  { %3866 = vmatpush1.bf16.msra.mxu0 %v5436_v0 }
0x2914   :  { %3867 = vmatprep.subr.bf16.mxu0 %v5441_v43 }
0x2917   :  { %3868 = vmatpush1.bf16.msra.mxu0 %v5439_v49  ;;  %v3953_v49 = vrot.slane %v3938_v58, %v6068_v36 }
0x2918   :  { %5257 = vmatprep.subr.bf16.mxu0 %v5824_v1 }
0x291a   :  { %3886 = vmatmul.mubr.bf16.vlgmr.msra.gmra.mrb[96].mxu0 %v3526_v62 }
0x291b   :  { %5273 = vmatprep.mubr.msk.bf16.mxu0 %vm5825_vm0, %v5824_v1 }
0x29cd   :  { %v3801_v18 = vpop.f32.mrb[92].mxu0  ;;  %v3844_v33 = vpop.f32.mrb[120].mxu1 }
0x29ce   :  { %v3925_v37 = vadd.f32 %v3916_v46, %v3801_v18  ;;  %v6676_v63 = vadd.f32 %v3924_v19, %v3844_v33  ;;  %v3803_v54 = vpop.f32.mrb[93].mxu0  ;;  %v3846_v47 = vpop.f32.mrb[121].mxu1 }
0x29cf   :  { %v3926_v59 = vadd.f32 %v3920_v22, %v3803_v54  ;;  %v3805_v24 = vpop.f32.mrb[94].mxu0  ;;  %v3848_v55 = vpop.f32.mrb[122].mxu1  ;;  %v3958_v43 = vadd.f32 %v3949_v9, %v3846_v47 }
0x29d0   :  { %v4645_v30 = vmul.f32 -1.442695, %v3925_v37  ;;  %v4647_v21 = vmul.f32 -1.442695, %v6676_v63  ;;  %v3928_v26 = vadd.f32 %v3916_v46, %v3805_v24  ;;  %v6679_v15 = vadd.f32 %v3924_v19, %v3848_v55  ;;  %v3807_v20 = vpop.f32.mrb[95].mxu0  ;;  %v3850_v27 = vpop.f32.mrb[123].mxu1 }
0x29d1   :  { %v4646_v48 = vmul.f32 -1.442695, %v3926_v59  ;;  %v3929_v38 = vadd.f32 %v3920_v22, %v3807_v20  ;;  %v3961_v22 = vadd.f32 %v3949_v9, %v3850_v27 }
0x29d2   :  { %5538 = vpow2.f32 %v4645_v30  ;;  %v4648_v28 = vmul.f32 -1.442695, %v3928_v26  ;;  %v4650_v51 = vmul.f32 -1.442695, %v6679_v15 }
0x29d3   :  { %5540 = vpow2.f32 %v4647_v21  ;;  %v4649_v41 = vmul.f32 -1.442695, %v3929_v38 }
0x29d4   :  { %5542 = vpow2.f32 %v4646_v48 }
0x29d5   :  { %5544 = vpow2.f32 %v4648_v28 }
0x29d6   :  { %5546 = vpow2.f32 %v4650_v51  ;;  %v4651_v51 = vsel %vm4018_vm5, 1.0, %v5824_v1 }
0x29d7   :  { %5548 = vpow2.f32 %v4649_v41 }
0x29dc   :  { %v5539_v42 = vpop.eup %5538 }
0x29dd   :  { %v5541_v53 = vpop.eup %5540  ;;  %v3982_v57 = vadd.f32 1.0, %v5539_v42 }
0x29de   :  { %v5543_v50 = vpop.eup %5542  ;;  %v3984_v60 = vadd.f32 1.0, %v5541_v53 }
0x29df   :  { %v5545_v40 = vpop.eup %5544  ;;  %5550 = vrcp.f32 %v3982_v57  ;;  %v3983_v3 = vadd.f32 1.0, %v5543_v50 }
0x29e0   :  { %v5547_v4 = vpop.eup %5546  ;;  %5552 = vrcp.f32 %v3984_v60  ;;  %v3985_v62 = vadd.f32 1.0, %v5545_v40 }
0x29e1   :  { %v5549_v14 = vpop.eup %5548  ;;  %5554 = vrcp.f32 %v3983_v3  ;;  %v3987_v32 = vadd.f32 1.0, %v5547_v4  ;;  %v5443_v3 = vld [vmem:[#allocation16 + $0x80] sm:$0xff]  }
0x29e2   :  { %5556 = vrcp.f32 %v3985_v62  ;;  %v3986_v2 = vadd.f32 1.0, %v5549_v14  ;;  %v5444_v4 = vld [vmem:[#allocation16] sm:$0xff]   ;;  %5258 = vmatpush3.bf16.msra.mxu0 %v5443_v3  ;;  %v4090_v3 = vrot.slane %v6665_v12, %v6102_v52 }
0x29e3   :  { %5558 = vrcp.f32 %v3987_v32  ;;  %5259 = vmatprep.subr.bf16.mxu0 %v5824_v1 }
0x29e4   :  { %5560 = vrcp.f32 %v3986_v2 }
0x29e9   :  { %v5551_v10 = vpop.eup %5550 }
0x29ea   :  { %v5553_v11 = vpop.eup %5552  ;;  %v4000_v0 = vmul.f32 %v5551_v10, %v3925_v37 }
0x29eb   :  { %v5555_v23 = vpop.eup %5554  ;;  %v4002_v30 = vmul.f32 %v5553_v11, %v6676_v63 }
0x29ec   :  { %v5557_v39 = vpop.eup %5556  ;;  %v4006_v34 = vmul.f32 %v4000_v0, %v3958_v43  ;;  %v4001_v54 = vmul.f32 %v5555_v23, %v3926_v59 }
0x29ed   :  { %v5559_v46 = vpop.eup %5558  ;;  %v4003_v19 = vmul.f32 %v5557_v39, %v3928_v26  ;;  %v3887_v18 = vpop.f32.mrb[96].mxu0 }
0x29ee   :  { %v5561_v33 = vpop.eup %5560  ;;  %v3959_v24 = vadd.f32 %v3953_v49, %v3887_v18  ;;  %v3889_v55 = vpop.f32.mrb[97].mxu0  ;;  %v4005_v26 = vmul.f32 %v5559_v46, %v6679_v15  ;;  %v5446_v18 = vld [vmem:[#allocation16 + $0x88] sm:$0xff]  }
0x29ef   :  { %v4009_v37 = vmul.f32 %v4003_v19, %v3961_v22  ;;  %v3960_v47 = vadd.f32 %v3957_v17, %v3889_v55  ;;  %v3891_v21 = vpop.f32.mrb[98].mxu0  ;;  %v4004_v20 = vmul.f32 %v5561_v33, %v3929_v38  ;;  %v5442_v38 = vld [vmem:[#allocation16 + $0x40] sm:$0xff]   ;;  %v5445_v22 = vld [vmem:[#allocation16 + $0x48] sm:$0xff]   ;;  %5260 = vmatpush3.bf16.msra.mxu0 %v5446_v18  ;;  %v5450_v55 = vld [vmem:[#allocation16 + $0x10] sm:$0xff]  }
0x29f0   :  { %v4007_v48 = vmul.f32 %v4001_v54, %v3959_v24  ;;  %v3962_v28 = vadd.f32 %v3953_v49, %v3891_v21  ;;  %v3893_v36 = vpop.f32.mrb[99].mxu0  ;;  %4826 = vmatprep.subr.bf16.mxu1 %v5442_v38  ;;  %v5447_v33 = vld [vmem:[#allocation16 + $0x8] sm:$0xff]   ;;  %5261 = vmatprep.subr.bf16.mxu0 %v5824_v1  ;;  %v5448_v54 = vld [vmem:[#allocation16 + $0x50] sm:$0xff]   ;;  %v5454_v21 = vld [vmem:[#allocation16 + $0x60] sm:$0xff]  }
0x29f1   :  { %v4008_v27 = vmul.f32 %v4002_v30, %v3960_v47  ;;  %v3963_v41 = vadd.f32 %v3957_v17, %v3893_v36  ;;  %4827 = vmatpush3.bf16.msra.mxu1 %v5444_v4  ;;  %v5449_v24 = vld [vmem:[#allocation16 + $0x90] sm:$0xff]   ;;  %v5451_v30 = vld [vmem:[#allocation16 + $0x58] sm:$0xff]   ;;  %v5458_v36 = vld [vmem:[#allocation16 + $0xa8] sm:$0xff]   ;;  %v4086_v4 = vrot.slane %v6660_v13, %v6411_v25 }
0x29f2   :  { %v4010_v42 = vmul.f32 %v4004_v20, %v3962_v28  ;;  %v4031_v53 = vadd.f32 %v4007_v48, %v4006_v34  ;;  %4828 = vmatprep.subr.bf16.mxu1 %v5445_v22  ;;  %v5453_v47 = vld [vmem:[#allocation16 + $0x18] sm:$0xff]   ;;  %v5455_v20 = vld [vmem:[#allocation16 + $0xa0] sm:$0xff]   ;;  %v5457_v28 = vld [vmem:[#allocation16 + $0x68] sm:$0xff]  }
0x29f3   :  { %v4011_v59 = vmul.f32 %v4005_v26, %v3963_v41  ;;  %v4027_v57 = vmul.f32 %v4651_v51, %v4008_v27  ;;  %5262 = vmatpush3.bf16.msra.mxu0 %v5449_v24  ;;  %v5460_v26 = vld [vmem:[#allocation16 + $0x70] sm:$0xff]  }
0x29f4   :  { %v4035_v63 = vadd.f32 %v4010_v42, %v4009_v37  ;;  %5263 = vmatprep.subr.bf16.mxu0 %v5824_v1  ;;  %v5461_v27 = vld [vmem:[#allocation16 + $0xb0] sm:$0xff]  }
0x29f5   :  { %v4032_v50 = vadd.f32 %v4031_v53, %v4027_v57  ;;  %v4030_v60 = vmul.f32 %v4651_v51, %v4011_v59  ;;  %4829 = vmatpush3.bf16.msra.mxu1 %v5447_v33  ;;  %v5462_v41 = vld [vmem:[#allocation16 + $0x30] sm:$0xff]   ;;  %v5464_v53 = vld [vmem:[#allocation16 + $0xb8] sm:$0xff]  }
0x29f6   :  { %4830 = vmatprep.subr.bf16.mxu1 %v5448_v54  ;;  %v5465_v59 = vld [vmem:[#allocation16 + $0x38] sm:$0xff]  }
0x29f7   :  { %4033 = vadd.xlane.f32.xlu1 %v4032_v50  ;;  %v4036_v40 = vadd.f32 %v4035_v63, %v4030_v60 }
0x29f9   :  { %4831 = vmatpush3.bf16.msra.mxu1 %v5450_v55 }
0x29fa   :  { %4832 = vmatprep.subr.bf16.mxu1 %v5451_v30 }
0x29fb   :  { %4037 = vadd.xlane.f32.xlu1 %v4036_v40 }
0x29fd   :  { %4833 = vmatpush3.bf16.msra.mxu1 %v5453_v47 }
0x29fe   :  { %4834 = vmatprep.subr.bf16.mxu1 %v5454_v21 }
0x2a84   :  { %v4034_v15 = vpop.xlane.xlu1 %4033 }
0x2a85   :  { %v4039_v62 = vmul.f32 0.0029325513, %v4034_v15 }
0x2a87   :  { %v6696_v14 = vsub.f32 %v4006_v34, %v4039_v62  ;;  %v6698_v32 = vsub.f32 %v4007_v48, %v4039_v62  ;;  %v4043_v45 = vsub.f32 %v4027_v57, %v4039_v62  ;;  %v5456_v48 = vld [vmem:[#allocation16 + $0x20] sm:$0xff]   ;;  %v4119_v62 = vrot.slane %v6660_v13, %v3438_v16 }
0x2a88   :  { %v4038_v2 = vpop.xlane.xlu1 %4037  ;;  %4835 = vmatpush3.bf16.msra.mxu1 %v5456_v48 }
0x2a89   :  { %v4040_v5 = vmul.f32 0.0029325513, %v4038_v2  ;;  %v6700_v9 = vmul.f32 %v4651_v51, %v4043_v45  ;;  %v4053_v58 = vmul.f32 %v6696_v14, %v6696_v14  ;;  %v4054_v6 = vmul.f32 %v6698_v32, %v6698_v32  ;;  %4836 = vmatprep.subr.bf16.mxu1 %v5457_v28 }
0x2a8a   :  { %v4123_v45 = vrot.slane %v6665_v12, %v6323_v7  ;;  %v4134_v16 = vrot.slane %v4119_v62, %v6323_v7 }
0x2a8b   :  { %v6706_v10 = vsub.f32 %v4009_v37, %v4040_v5  ;;  %v6708_v56 = vsub.f32 %v4010_v42, %v4040_v5  ;;  %v4046_v11 = vsub.f32 %v4030_v60, %v4040_v5  ;;  %v4055_v0 = vmul.f32 %v6700_v9, %v6700_v9  ;;  %v5452_v37 = vld [vmem:[#allocation16 + $0x98] sm:$0xff]  }
0x2a8c   :  { %v4059_v43 = vadd.f32 %v4054_v6, %v4053_v58  ;;  %5264 = vmatpush3.bf16.msra.mxu0 %v5452_v37  ;;  %v5463_v42 = vld [vmem:[#allocation16 + $0x78] sm:$0xff]   ;;  %v4101_v5 = vrot.slane %v4086_v4, %v6102_v52  ;;  %v4105_v6 = vrot.slane %v4090_v3, %v6102_v52  ;;  %v4138_v12 = vrot.slane %v4123_v45, %v6323_v7 }
0x2a8d   :  { %v6712_v49 = vmul.f32 %v4651_v51, %v4046_v11  ;;  %v4056_v23 = vmul.f32 %v6706_v10, %v6706_v10  ;;  %v4057_v17 = vmul.f32 %v6708_v56, %v6708_v56  ;;  %5265 = vmatprep.subr.bf16.mxu0 %v5824_v1  ;;  %v5459_v51 = vld [vmem:[#allocation16 + $0x28] sm:$0xff]  }
0x2a8e   :  { %v4060_v39 = vadd.f32 %v4059_v43, %v4055_v0  ;;  %4837 = vmatpush3.bf16.msra.mxu1 %v5459_v51 }
0x2a8f   :  { %v4058_v34 = vmul.f32 %v6712_v49, %v6712_v49  ;;  %v4063_v46 = vadd.f32 %v4057_v17, %v4056_v23  ;;  %4838 = vmatprep.subr.bf16.mxu1 %v5460_v26 }
0x2a90   :  { %4061 = vadd.xlane.f32.xlu1 %v4060_v39  ;;  %5266 = vmatpush3.bf16.msra.mxu0 %v5455_v20 }
0x2a91   :  { %v4064_v19 = vadd.f32 %v4063_v46, %v4058_v34  ;;  %5267 = vmatprep.subr.bf16.mxu0 %v5824_v1 }
0x2a92   :  { %4839 = vmatpush3.bf16.msra.mxu1 %v5462_v41 }
0x2a93   :  { %4840 = vmatprep.subr.bf16.mxu1 %v5463_v42 }
0x2a94   :  { %4065 = vadd.xlane.f32.xlu1 %v4064_v19  ;;  %5268 = vmatpush3.bf16.msra.mxu0 %v5458_v36 }
0x2a95   :  { %5269 = vmatprep.subr.bf16.mxu0 %v5824_v1 }
0x2a96   :  { %4841 = vmatpush3.bf16.msra.mxu1 %v5465_v59 }
0x2a98   :  { %5270 = vmatpush3.bf16.msra.mxu0 %v5461_v27 }
0x2a99   :  { %5271 = vmatprep.subr.bf16.mxu0 %v5824_v1  ;;  %v4082_v1 = vrot.slane %v6660_v13, %v6102_v52 }
0x2a9b   :  { %v4097_v0 = vrot.slane %v4082_v1, %v6102_v52 }
0x2a9c   :  { %5272 = vmatpush3.bf16.msra.mxu0 %v5464_v53 }
0x2b1d   :  { %v4062_v57 = vpop.xlane.xlu1 %4061 }
0x2b1e   :  { %v4067_v50 = vmul.f32 0.0029325513, %v4062_v57 }
0x2b20   :  { %v4069_v60 = vadd.f32 1e-05, %v4067_v50 }
0x2b21   :  { %v4066_v63 = vpop.xlane.xlu1 %4065 }
0x2b22   :  { %5562 = vrsqrt.f32 %v4069_v60  ;;  %v4068_v40 = vmul.f32 0.0029325513, %v4066_v63 }
0x2b24   :  { %v4070_v38 = vadd.f32 1e-05, %v4068_v40 }
0x2b26   :  { %5564 = vrsqrt.f32 %v4070_v38 }
0x2b2c   :  { %v5563_v15 = vpop.eup %5562 }
0x2b2d   :  { %v4074_v2 = vmul.f32 %v5563_v15, %v6698_v32  ;;  %v4075_v58 = vmul.f32 %v5563_v15, %v6700_v9  ;;  %v4073_v11 = vmul.f32 %v5563_v15, %v6696_v14  ;;  %v4130_v14 = vrot.slane %v4115_v35, %v6323_v7 }
0x2b2e   :  { %v4199_v7 = vrot.slane %v6647_v8, %v6411_v25 }
0x2b2f   :  { %v4107_v23 = vmul.f32 %v4101_v5, %v4074_v2  ;;  %v4108_v9 = vmul.f32 %v4105_v6, %v4075_v58  ;;  %v4106_v34 = vmul.f32 %v4097_v0, %v4073_v11  ;;  %v4459_v58 = vrot.slane %v6647_v8, %v6377_v44 }
0x2b30   :  { %v5565_v43 = vpop.eup %5564 }
0x2b31   :  { %v4077_v32 = vmul.f32 %v5565_v43, %v6708_v56  ;;  %v4078_v17 = vmul.f32 %v5565_v43, %v6712_v49  ;;  %v4076_v39 = vmul.f32 %v5565_v43, %v6706_v10  ;;  %v4140_v13 = vadd.f32 %v4134_v16, %v4107_v23 }
0x2b32   :  { %v4141_v18 = vadd.f32 %v4138_v12, %v4108_v9  ;;  %v4139_v54 = vadd.f32 %v4130_v14, %v4106_v34 }
0x2b33   :  { %v4110_v52 = vmul.f32 %v4101_v5, %v4077_v32  ;;  %v4111_v46 = vmul.f32 %v4105_v6, %v4078_v17  ;;  %v4109_v19 = vmul.f32 %v4097_v0, %v4076_v39 }
0x2b35   :  { %v4143_v22 = vadd.f32 %v4134_v16, %v4110_v52  ;;  %v4144_v33 = vadd.f32 %v4138_v12, %v4111_v46  ;;  %v4142_v24 = vadd.f32 %v4130_v14, %v4109_v19 }
0x2b37   :  { %v4194_v55 = vpack.c.bf16 %v4143_v22, %v4140_v13  ;;  %v4195_v56 = vpack.c.bf16 %v4144_v33, %v4141_v18  ;;  %v4193_v30 = vpack.c.bf16 %v4142_v24, %v4139_v54 }
0x2b39   :  { %4376 = vmatprep.mubr.bf16.mxu1 %v4194_v55  ;;  %5274 = vmatmul.mubr.bf16.vlgmr.msra.gmra.mrb[100].mxu0 %v4195_v56 }
0x2b3a   :  { %4377 = vmatmul.mubr.bf16.vlgmr.msra.gmra.mrb[124].mxu1 %v4193_v30 }
0x2c0c   :  { %v4419_v49 = vpop.f32.mrb[100].mxu0 }
0x2c0d   :  { %v4842_v10 = vpop.f32.mrb[124].mxu1  ;;  %v5275_v37 = vpop.f32.mrb[101].mxu0 }
0x2c0e   :  { %v4843_v47 = vpop.f32.mrb[125].mxu1  ;;  %v4422_v21 = vpop.f32.mrb[102].mxu0 }
0x2c0f   :  { %v4844_v20 = vadd.f32 %v4843_v47, %v4842_v10  ;;  %v4845_v48 = vpop.f32.mrb[126].mxu1  ;;  %v5276_v28 = vpop.f32.mrb[103].mxu0 }
0x2c10   :  { %v4846_v36 = vpop.f32.mrb[127].mxu1 }
0x2c11   :  { %v4379_v51 = vadd.f32 %v4844_v20, %v4199_v7  ;;  %v4847_v26 = vadd.f32 %v4846_v36, %v4845_v48 }
0x2c13   :  { %v4382_v27 = vadd.f32 %v4847_v26, %v4199_v7  ;;  %v4420_v41 = vadd.f32 %v4419_v49, %v4379_v51 }
0x2c15   :  { %v4426_v42 = vadd.f32 %v4420_v41, %v6625_v29  ;;  %v4423_v53 = vadd.f32 %v4422_v21, %v4382_v27 }
0x2c17   :  { %4428 = vadd.xlane.f32.xlu1 %v4426_v42  ;;  %v4427_v59 = vadd.f32 %v4423_v53, %v6637_v31  ;;  %v4453_v31 = vrot.slane %v6647_v8, %v6394_v61 }
0x2c1b   :  { %4430 = vadd.xlane.f32.xlu1 %v4427_v59 }
0x2ca4   :  { %v4429_v57 = vpop.xlane.xlu1 %4428 }
0x2ca5   :  { %v4432_v50 = vmul.f32 0.0078125, %v4429_v57 }
0x2ca7   :  { %v4434_v25 = vsub.f32 %v4426_v42, %v4432_v50 }
0x2ca8   :  { %v4431_v60 = vpop.xlane.xlu1 %4430 }
0x2ca9   :  { %v4433_v63 = vmul.f32 0.0078125, %v4431_v60  ;;  %v4436_v40 = vmul.f32 %v4434_v25, %v4434_v25 }
0x2cab   :  { %v4435_v38 = vsub.f32 %v4427_v59, %v4433_v63  ;;  %4438 = vadd.xlane.f32.xlu1 %v4436_v40 }
0x2cad   :  { %v4437_v3 = vmul.f32 %v4435_v38, %v4435_v38 }
0x2caf   :  { %4440 = vadd.xlane.f32.xlu1 %v4437_v3 }
0x2d38   :  { %v4439_v4 = vpop.xlane.xlu1 %4438 }
0x2d39   :  { %v4442_v1 = vmul.f32 0.0078125, %v4439_v4 }
0x2d3b   :  { %v4444_v15 = vadd.f32 1e-05, %v4442_v1 }
0x2d3c   :  { %v4441_v62 = vpop.xlane.xlu1 %4440 }
0x2d3d   :  { %5566 = vrsqrt.f32 %v4444_v15  ;;  %v4443_v29 = vmul.f32 0.0078125, %v4441_v62 }
0x2d3f   :  { %v4445_v45 = vadd.f32 1e-05, %v4443_v29 }
0x2d41   :  { %5568 = vrsqrt.f32 %v4445_v45 }
0x2d47   :  { %v5567_v2 = vpop.eup %5566 }
0x2d48   :  { %v4448_v5 = vmul.f32 %v5567_v2, %v4434_v25 }
0x2d4a   :  { %v4454_v6 = vmul.f32 %v4453_v31, %v4448_v5 }
0x2d4b   :  { %v5569_v11 = vpop.eup %5568 }
0x2d4c   :  { %v4449_v0 = vmul.f32 %v5569_v11, %v4435_v38  ;;  %v4460_v35 = vadd.f32 %v4459_v58, %v4454_v6 }
0x2d4e   :  { %v4455_v43 = vmul.f32 %v4453_v31, %v4449_v0  ;;  %4462 = vst [vmem:[#allocation17] sm:$0xff] %v4460_v35 }
0x2d50   :  { %v4461_v16 = vadd.f32 %v4459_v58, %v4455_v43 }
0x2d52   :  { %4463 = vst [vmem:[#allocation17 + $0x8] sm:$0xff] %v4461_v16 }
0x2d53   :  { %5785 = shalt.err (!%p5782_p6)
}
0x2d54   :  { %s5786_s23 = scalar_lea.hbm %s6785_s11, 256 }
0x2d55   :  { %p5787_p7 = scmp.ne.s32.totalorder %s6785_s11, %s5786_s23  ;;  %p5790_p8 = scmp.lt.u32.totalorder %s5786_s23, %s6785_s11 }
0x2d57   :  { %p5792_p9 = pnand %p5790_p8, %p5787_p7 }
0x2d59   :  { %5795 = shalt.err (!%p5792_p9)
}
0x2d5a   :  { %4475 = dma.vmem_to_hbm [thread:$0]  %s4470_s3, 256, %s6785_s11, [#allocation4], %s5810_s29, %s5810_s29, %s5811_s30  }
0x2d5b   :  { %5806 = dma.done.wait [#allocation4], 256  }
0x2d5c   :  { %5807 = vsyncadd [#allocation4], 4294967040 }
0x2d5d   :  { %4479 = vsyncpa [#allocation3], 1 }
0x2d5e   :  { %4480 = vsyncpa [#allocation6], 1 }
0x2d5f   :  { %4481 = vsyncpa [#allocation9], 1 }
0x2d60   :  { %4482 = vsyncpa [#allocation12], 1 }
0x2d61   :  { %4483 = vsyncpa [#allocation15], 1 }
0x2d62   :  { %4484 = vsyncpa [#allocation4], 1 }

</bundles_post_ra>
